<compile_context>
chip_gen: v7x
topology: tpu7x:2x2x1
jax: 0.10.0
libtpu: 0.0.40
codegen_flags: <defaults>
</compile_context>

<pallas_src>
import jax
import jax.numpy as jnp
from jax.experimental import pallas as pl
from jax.experimental.pallas import tpu as pltpu


# ------------------------------ small helpers ------------------------------

def _pad_axis_to(a, axis, target):
    n = a.shape[axis]
    if target == n:
        return a
    pads = [(0, 0)] * a.ndim
    pads[axis] = (0, target - n)
    return jnp.pad(a, pads)


# ------------------------------ Pallas kernels ------------------------------

def _conv_relu_pool_kernel(p_ref, w_ref, b_ref, o_ref):
    """Fused conv (matmul over im2col patches) + bias + ReLU + 2x2 max-pool.

    p_ref: (4, TM, K) bf16  -- 4 pool-window positions x row tile x patch dim
    w_ref: (K, Cout) bf16, b_ref: (1, Cout) f32, o_ref: (TM, Cout) bf16
    """
    w = w_ref[...]
    acc = None
    for i in range(4):                       # static unroll: 4 MXU matmuls
        z = jnp.dot(p_ref[i], w, preferred_element_type=jnp.float32)
        acc = z if acc is None else jnp.maximum(acc, z)    # 2x2 max-pool
    # bias + ReLU once, after the max (identical math, fewer VPU ops)
    o_ref[...] = jnp.maximum(acc + b_ref[...], 0.0).astype(o_ref.dtype)


def _mlp_head_kernel(x_ref, w1_ref, b1_ref, w2_ref, b2_ref, w3_ref, b3_ref,
                     o_ref):
    """fc1+ReLU -> fc2+ReLU -> fc3 -> log_softmax; weights VMEM-resident."""
    h = jnp.dot(x_ref[...], w1_ref[...], preferred_element_type=jnp.float32)
    h = jnp.maximum(h + b1_ref[...], 0.0)
    h = jnp.dot(h.astype(jnp.bfloat16), w2_ref[...],
                preferred_element_type=jnp.float32)
    h = jnp.maximum(h + b2_ref[...], 0.0)
    z = jnp.dot(h.astype(jnp.bfloat16), w3_ref[...],
                preferred_element_type=jnp.float32)
    z = z + b3_ref[...]
    m = jnp.max(z, axis=-1, keepdims=True)
    s = z - m
    lse = jnp.log(jnp.sum(jnp.exp(s), axis=-1, keepdims=True))
    o_ref[...] = s - lse


# ------------------------------ Pallas wrappers -----------------------------

def conv_relu_pool(p, w, b, *, tm=512):
    """p: (4, M, K) bf16, w: (K, Cout) bf16, b: (1, Cout) f32 -> (M, Cout) bf16."""
    four, M, K = p.shape
    assert four == 4 and w.shape[0] == K
    Cout = w.shape[1]
    tm = min(tm, M)                 # block == full dim when M is small (legal)
    grid = (pl.cdiv(M, tm),)
    flops = 2 * 4 * M * K * Cout
    bytes_accessed = (4 * M * K + K * Cout + M * Cout) * 2 + Cout * 4
    return pl.pallas_call(
        _conv_relu_pool_kernel,
        out_shape=jax.ShapeDtypeStruct((M, Cout), jnp.bfloat16),
        grid=grid,
        in_specs=[
            pl.BlockSpec((4, tm, K), lambda i: (0, i, 0)),   # row-tiled patches
            pl.BlockSpec((K, Cout), lambda i: (0, 0)),       # resident weights
            pl.BlockSpec((1, Cout), lambda i: (0, 0)),       # resident bias
        ],
        out_specs=pl.BlockSpec((tm, Cout), lambda i: (i, 0)),
        compiler_params=pltpu.CompilerParams(
            dimension_semantics=("parallel",)),
        cost_estimate=pl.CostEstimate(flops=flops, transcendentals=0,
                                      bytes_accessed=bytes_accessed),
    )(p, w, b)


def mlp_head(x, w1, b1, w2, b2, w3, b3, *, tb=256):
    """x: (B, 1600) bf16 -> (B, 10) f32 log-probabilities (fc1/fc2/fc3 + lsm)."""
    B, K = x.shape
    H1, H2, N = w1.shape[1], w2.shape[1], w3.shape[1]
    tb = min(tb, B)
    grid = (pl.cdiv(B, tb),)
    return pl.pallas_call(
        _mlp_head_kernel,
        out_shape=jax.ShapeDtypeStruct((B, N), jnp.float32),
        grid=grid,
        in_specs=[
            pl.BlockSpec((tb, K), lambda i: (i, 0)),     # batch-tiled input
            pl.BlockSpec((K, H1), lambda i: (0, 0)),     # resident weights
            pl.BlockSpec((1, H1), lambda i: (0, 0)),
            pl.BlockSpec((H1, H2), lambda i: (0, 0)),
            pl.BlockSpec((1, H2), lambda i: (0, 0)),
            pl.BlockSpec((H2, N), lambda i: (0, 0)),
            pl.BlockSpec((1, N), lambda i: (0, 0)),
        ],
        out_specs=pl.BlockSpec((tb, N), lambda i: (i, 0)),
        compiler_params=pltpu.CompilerParams(
            dimension_semantics=("parallel",)),
    )(x, w1, b1, w2, b2, w3, b3)


# ------------------------------- host-side glue -----------------------------

def im2col_pooled(x, k):
    """x: (B, H, W, C) NHWC -> patches grouped by 2x2 pool window.

    Returns (4, B*ph*pw, k*k*C) with
      * axis 0: pool-window position (dy*2 + dx), dy,dx in {0,1}
      * axis 1: rows ordered (batch, pool_y, pool_x)
      * axis 2: patch, ordered (kh, kw, Cin)  [matches weight permute at init]
    """
    B, H, W, C = x.shape
    oh, ow = H - k + 1, W - k + 1
    ph, pw = oh // 2, ow // 2
    K = k * k * C
    rows = []
    for i in range(k):
        cols = []
        for j in range(k):
            cols.append(x[:, i:i + oh, j:j + ow, :])        # (B, oh, ow, C)
        rows.append(jnp.stack(cols, axis=3))                # (B, oh, ow, k, C)
    p = jnp.stack(rows, axis=3)                             # (B, oh, ow, k, k, C)
    p = p.reshape(B, oh, ow, K)
    p = p.reshape(B, ph, 2, pw, 2, K)
    p = p.transpose(2, 4, 0, 1, 3, 5)                       # (2, 2, B, ph, pw, K)
    return p.reshape(4, B * ph * pw, K), ph, pw


def init_params(key):
    """PyTorch-default init; conv/fc1 weights pre-permuted to NHWC order,
    fc hidden dims zero-padded to 128, weight matrices stored as bf16."""
    ks = jax.random.split(key, 10)

    def u(k, shape, fan_in):
        bound = 1.0 / jnp.sqrt(fan_in)
        return jax.random.uniform(k, shape, jnp.float32, -bound, bound)

    def conv_w(k, cout, cin, ksz):
        w = u(k, (cout, cin, ksz, ksz), cin * ksz * ksz)    # torch layout
        w = jnp.transpose(w, (2, 3, 1, 0)).reshape(ksz * ksz * cin, cout)
        return w.astype(jnp.bfloat16)                       # natural K, no pad

    p = {}
    p["w1"] = conv_w(ks[0], 32, 3, 5)                       # (75, 32) bf16
    p["b1"] = u(ks[1], (1, 32), 3 * 5 * 5)                  # f32
    p["w2"] = conv_w(ks[2], 64, 32, 5)                      # (800, 64) bf16
    p["b2"] = u(ks[3], (1, 64), 32 * 5 * 5)                 # f32

    wf1 = u(ks[4], (120, 1600), 1600)                       # torch (C,H,W) cols
    wf1 = wf1.reshape(120, 64, 5, 5).transpose(0, 2, 3, 1).reshape(120, 1600)
    wf1 = wf1.T                                             # (1600, 120), (H,W,C)
    p["wf1"] = _pad_axis_to(wf1, 1, 128).astype(jnp.bfloat16)        # (1600, 128)
    p["bf1"] = _pad_axis_to(u(ks[5], (1, 120), 1600), 1, 128)        # (1, 128) f32
    wf2 = _pad_axis_to(_pad_axis_to(u(ks[6], (84, 120), 120).T, 0, 128), 1, 128)
    p["wf2"] = wf2.astype(jnp.bfloat16)                              # (128, 128)
    p["bf2"] = _pad_axis_to(u(ks[7], (1, 84), 120), 1, 128)          # (1, 128) f32
    p["wf3"] = _pad_axis_to(u(ks[8], (10, 84), 84).T, 0, 128).astype(
        jnp.bfloat16)                                                # (128, 10)
    p["bf3"] = u(ks[9], (1, 10), 84)                                 # (1, 10) f32
    return p


def net_forward(x, params):
    """x: (B, 3, 32, 32) NCHW float32 -> (B, 10) f32 log-probabilities."""
    B = x.shape[0]
    xh = jnp.transpose(x, (0, 2, 3, 1)).astype(jnp.bfloat16)   # NHWC, bf16

    # conv1 (3->32, k=5) + ReLU + 2x2 pool  (single fused kernel)
    p1, ph1, pw1 = im2col_pooled(xh, 5)                     # (4, B*196, 75)
    a1 = conv_relu_pool(p1, params["w1"], params["b1"], tm=1024)   # (B*196, 32)
    x2 = a1.reshape(B, ph1, pw1, 32)                        # NHWC bf16

    # conv2 (32->64, k=5) + ReLU + 2x2 pool  (single fused kernel)
    p2, ph2, pw2 = im2col_pooled(x2, 5)                     # (4, B*25, 800)
    a2 = conv_relu_pool(p2, params["w2"], params["b2"], tm=512)    # (B*25, 64)

    flat = a2.reshape(B, ph2 * pw2 * 64)                    # (B, 1600), (H,W,C)

    # fc1+ReLU -> fc2+ReLU -> fc3 -> log_softmax  (single fused kernel)
    return mlp_head(flat, params["wf1"], params["bf1"],
                    params["wf2"], params["bf2"],
                    params["wf3"], params["bf3"])


if __name__ == "__main__":
    key = jax.random.PRNGKey(0)
    k_x, k_p = jax.random.split(key)
    # The 64*5*5 flatten implies a 32x32 spatial input (CIFAR-style), batch=2.
    x = jax.random.normal(k_x, (2, 3, 32, 32), dtype=jnp.float32)
    params = init_params(k_p)

    logp = jax.jit(net_forward)(x, params)
    jax.block_until_ready(logp)

    assert logp.shape == (2, 10)
    # log_softmax rows must sum (in prob space) to 1 (computed in f32)
    assert bool(jnp.allclose(jnp.sum(jnp.exp(logp), axis=1), 1.0, atol=1e-4))
    print("KERNEL_OK")
</pallas_src>

<mosaic_0001>
module attributes {stable_mosaic.version = 11 : i64} {
  func.func @_conv_relu_pool_kernel(%arg0: i32, %arg1: memref<4x392x75xbf16, #tpu.memory_space<vmem>>, %arg2: memref<75x32xbf16, #tpu.memory_space<vmem>>, %arg3: memref<1x32xf32, #tpu.memory_space<vmem>>, %arg4: memref<392x32xbf16, #tpu.memory_space<vmem>>) attributes {dimension_semantics = [#tpu.dimension_semantics<parallel>], iteration_bounds = array<i64: 1>, scalar_prefetch = 0 : i64, scratch_operands = 0 : i64, tpu.core_type = #tpu.core_type<tc>, window_params = [{transform_indices = @transform_0, window_bounds = array<i64: 4, 392, 75>}, {pipeline_mode = #tpu.pipeline_mode<synchronous>, transform_indices = @transform_1, window_bounds = array<i64: 75, 32>}, {pipeline_mode = #tpu.pipeline_mode<synchronous>, transform_indices = @transform_2, window_bounds = array<i64: 1, 32>}, {transform_indices = @transform_3, window_bounds = array<i64: 392, 32>}]} {
    %c0 = arith.constant 0 : index
    %c0_0 = arith.constant 0 : index
    %0 = vector.load %arg2[%c0, %c0_0] : memref<75x32xbf16, #tpu.memory_space<vmem>>, vector<75x32xbf16>
    %c0_1 = arith.constant 0 : index
    %c0_2 = arith.constant 0 : index
    %c0_3 = arith.constant 0 : index
    %1 = vector.load %arg1[%c0_1, %c0_2, %c0_3] : memref<4x392x75xbf16, #tpu.memory_space<vmem>>, vector<1x392x75xbf16>
    %2 = vector.shape_cast %1 : vector<1x392x75xbf16> to vector<392x75xbf16>
    %cst = arith.constant dense<0.000000e+00> : vector<392x32xf32>
    %3 = tpu.matmul %2, %0, %cst {dimension_numbers = #tpu.dot_dimension_numbers<[1], [0], [0], [1], [0, 0, 1, 1], [], []>} : vector<392x75xbf16>, vector<75x32xbf16>, vector<392x32xf32> -> vector<392x32xf32>
    %c1 = arith.constant 1 : index
    %c0_4 = arith.constant 0 : index
    %c0_5 = arith.constant 0 : index
    %4 = vector.load %arg1[%c1, %c0_4, %c0_5] : memref<4x392x75xbf16, #tpu.memory_space<vmem>>, vector<1x392x75xbf16>
    %5 = vector.shape_cast %4 : vector<1x392x75xbf16> to vector<392x75xbf16>
    %cst_6 = arith.constant dense<0.000000e+00> : vector<392x32xf32>
    %6 = tpu.matmul %5, %0, %cst_6 {dimension_numbers = #tpu.dot_dimension_numbers<[1], [0], [0], [1], [0, 0, 1, 1], [], []>} : vector<392x75xbf16>, vector<75x32xbf16>, vector<392x32xf32> -> vector<392x32xf32>
    %7 = arith.maximumf %3, %6 : vector<392x32xf32>
    %c2 = arith.constant 2 : index
    %c0_7 = arith.constant 0 : index
    %c0_8 = arith.constant 0 : index
    %8 = vector.load %arg1[%c2, %c0_7, %c0_8] : memref<4x392x75xbf16, #tpu.memory_space<vmem>>, vector<1x392x75xbf16>
    %9 = vector.shape_cast %8 : vector<1x392x75xbf16> to vector<392x75xbf16>
    %cst_9 = arith.constant dense<0.000000e+00> : vector<392x32xf32>
    %10 = tpu.matmul %9, %0, %cst_9 {dimension_numbers = #tpu.dot_dimension_numbers<[1], [0], [0], [1], [0, 0, 1, 1], [], []>} : vector<392x75xbf16>, vector<75x32xbf16>, vector<392x32xf32> -> vector<392x32xf32>
    %11 = arith.maximumf %7, %10 : vector<392x32xf32>
    %c3 = arith.constant 3 : index
    %c0_10 = arith.constant 0 : index
    %c0_11 = arith.constant 0 : index
    %12 = vector.load %arg1[%c3, %c0_10, %c0_11] : memref<4x392x75xbf16, #tpu.memory_space<vmem>>, vector<1x392x75xbf16>
    %13 = vector.shape_cast %12 : vector<1x392x75xbf16> to vector<392x75xbf16>
    %cst_12 = arith.constant dense<0.000000e+00> : vector<392x32xf32>
    %14 = tpu.matmul %13, %0, %cst_12 {dimension_numbers = #tpu.dot_dimension_numbers<[1], [0], [0], [1], [0, 0, 1, 1], [], []>} : vector<392x75xbf16>, vector<75x32xbf16>, vector<392x32xf32> -> vector<392x32xf32>
    %15 = arith.maximumf %11, %14 : vector<392x32xf32>
    %c0_13 = arith.constant 0 : index
    %c0_14 = arith.constant 0 : index
    %16 = vector.load %arg3[%c0_13, %c0_14] : memref<1x32xf32, #tpu.memory_space<vmem>>, vector<1x32xf32>
    %17 = vector.broadcast %16 : vector<1x32xf32> to vector<392x32xf32>
    %18 = arith.addf %15, %17 : vector<392x32xf32>
    %cst_15 = arith.constant 0.000000e+00 : f32
    %19 = vector.broadcast %cst_15 : f32 to vector<392x32xf32>
    %20 = arith.maximumf %18, %19 : vector<392x32xf32>
    %21 = arith.truncf %20 : vector<392x32xf32> to vector<392x32xbf16>
    %c0_16 = arith.constant 0 : index
    %c0_17 = arith.constant 0 : index
    %22 = vector.load %arg4[%c0_16, %c0_17] : memref<392x32xbf16, #tpu.memory_space<vmem>>, vector<392x32xbf16>
    tpu.vector_store %arg4[%c0_16, %c0_17], %21 {strides = array<i32>} : memref<392x32xbf16, #tpu.memory_space<vmem>>, vector<392x32xbf16>,
    return
  }
  func.func @transform_0(%arg0: i32) -> (i32, i32, i32) {
    %c0_i32 = arith.constant 0 : i32
    %c0_i32_0 = arith.constant 0 : i32
    %c0_i32_1 = arith.constant 0 : i32
    return %c0_i32, %arg0, %c0_i32_0 : i32, i32, i32
  }
  func.func @transform_1(%arg0: i32) -> (i32, i32) {
    %c0_i32 = arith.constant 0 : i32
    %c0_i32_0 = arith.constant 0 : i32
    %c0_i32_1 = arith.constant 0 : i32
    return %c0_i32, %c0_i32_0 : i32, i32
  }
  func.func @transform_2(%arg0: i32) -> (i32, i32) {
    %c0_i32 = arith.constant 0 : i32
    %c0_i32_0 = arith.constant 0 : i32
    %c0_i32_1 = arith.constant 0 : i32
    return %c0_i32, %c0_i32_0 : i32, i32
  }
  func.func @transform_3(%arg0: i32) -> (i32, i32) {
    %c0_i32 = arith.constant 0 : i32
    %c0_i32_0 = arith.constant 0 : i32
    return %arg0, %c0_i32 : i32, i32
  }
}

module attributes {stable_mosaic.version = 11 : i64} {
  func.func @_conv_relu_pool_kernel(%arg0: i32, %arg1: memref<4x50x800xbf16, #tpu.memory_space<vmem>>, %arg2: memref<800x64xbf16, #tpu.memory_space<vmem>>, %arg3: memref<1x64xf32, #tpu.memory_space<vmem>>, %arg4: memref<50x64xbf16, #tpu.memory_space<vmem>>) attributes {dimension_semantics = [#tpu.dimension_semantics<parallel>], iteration_bounds = array<i64: 1>, scalar_prefetch = 0 : i64, scratch_operands = 0 : i64, tpu.core_type = #tpu.core_type<tc>, window_params = [{transform_indices = @transform_0, window_bounds = array<i64: 4, 50, 800>}, {pipeline_mode = #tpu.pipeline_mode<synchronous>, transform_indices = @transform_1, window_bounds = array<i64: 800, 64>}, {pipeline_mode = #tpu.pipeline_mode<synchronous>, transform_indices = @transform_2, window_bounds = array<i64: 1, 64>}, {transform_indices = @transform_3, window_bounds = array<i64: 50, 64>}]} {
    %c0 = arith.constant 0 : index
    %c0_0 = arith.constant 0 : index
    %0 = vector.load %arg2[%c0, %c0_0] : memref<800x64xbf16, #tpu.memory_space<vmem>>, vector<800x64xbf16>
    %c0_1 = arith.constant 0 : index
    %c0_2 = arith.constant 0 : index
    %c0_3 = arith.constant 0 : index
    %1 = vector.load %arg1[%c0_1, %c0_2, %c0_3] : memref<4x50x800xbf16, #tpu.memory_space<vmem>>, vector<1x50x800xbf16>
    %2 = vector.shape_cast %1 : vector<1x50x800xbf16> to vector<50x800xbf16>
    %cst = arith.constant dense<0.000000e+00> : vector<50x64xf32>
    %3 = tpu.matmul %2, %0, %cst {dimension_numbers = #tpu.dot_dimension_numbers<[1], [0], [0], [1], [0, 0, 1, 1], [], []>} : vector<50x800xbf16>, vector<800x64xbf16>, vector<50x64xf32> -> vector<50x64xf32>
    %c1 = arith.constant 1 : index
    %c0_4 = arith.constant 0 : index
    %c0_5 = arith.constant 0 : index
    %4 = vector.load %arg1[%c1, %c0_4, %c0_5] : memref<4x50x800xbf16, #tpu.memory_space<vmem>>, vector<1x50x800xbf16>
    %5 = vector.shape_cast %4 : vector<1x50x800xbf16> to vector<50x800xbf16>
    %cst_6 = arith.constant dense<0.000000e+00> : vector<50x64xf32>
    %6 = tpu.matmul %5, %0, %cst_6 {dimension_numbers = #tpu.dot_dimension_numbers<[1], [0], [0], [1], [0, 0, 1, 1], [], []>} : vector<50x800xbf16>, vector<800x64xbf16>, vector<50x64xf32> -> vector<50x64xf32>
    %7 = arith.maximumf %3, %6 : vector<50x64xf32>
    %c2 = arith.constant 2 : index
    %c0_7 = arith.constant 0 : index
    %c0_8 = arith.constant 0 : index
    %8 = vector.load %arg1[%c2, %c0_7, %c0_8] : memref<4x50x800xbf16, #tpu.memory_space<vmem>>, vector<1x50x800xbf16>
    %9 = vector.shape_cast %8 : vector<1x50x800xbf16> to vector<50x800xbf16>
    %cst_9 = arith.constant dense<0.000000e+00> : vector<50x64xf32>
    %10 = tpu.matmul %9, %0, %cst_9 {dimension_numbers = #tpu.dot_dimension_numbers<[1], [0], [0], [1], [0, 0, 1, 1], [], []>} : vector<50x800xbf16>, vector<800x64xbf16>, vector<50x64xf32> -> vector<50x64xf32>
    %11 = arith.maximumf %7, %10 : vector<50x64xf32>
    %c3 = arith.constant 3 : index
    %c0_10 = arith.constant 0 : index
    %c0_11 = arith.constant 0 : index
    %12 = vector.load %arg1[%c3, %c0_10, %c0_11] : memref<4x50x800xbf16, #tpu.memory_space<vmem>>, vector<1x50x800xbf16>
    %13 = vector.shape_cast %12 : vector<1x50x800xbf16> to vector<50x800xbf16>
    %cst_12 = arith.constant dense<0.000000e+00> : vector<50x64xf32>
    %14 = tpu.matmul %13, %0, %cst_12 {dimension_numbers = #tpu.dot_dimension_numbers<[1], [0], [0], [1], [0, 0, 1, 1], [], []>} : vector<50x800xbf16>, vector<800x64xbf16>, vector<50x64xf32> -> vector<50x64xf32>
    %15 = arith.maximumf %11, %14 : vector<50x64xf32>
    %c0_13 = arith.constant 0 : index
    %c0_14 = arith.constant 0 : index
    %16 = vector.load %arg3[%c0_13, %c0_14] : memref<1x64xf32, #tpu.memory_space<vmem>>, vector<1x64xf32>
    %17 = vector.broadcast %16 : vector<1x64xf32> to vector<50x64xf32>
    %18 = arith.addf %15, %17 : vector<50x64xf32>
    %cst_15 = arith.constant 0.000000e+00 : f32
    %19 = vector.broadcast %cst_15 : f32 to vector<50x64xf32>
    %20 = arith.maximumf %18, %19 : vector<50x64xf32>
    %21 = arith.truncf %20 : vector<50x64xf32> to vector<50x64xbf16>
    %c0_16 = arith.constant 0 : index
    %c0_17 = arith.constant 0 : index
    %22 = vector.load %arg4[%c0_16, %c0_17] : memref<50x64xbf16, #tpu.memory_space<vmem>>, vector<50x64xbf16>
    tpu.vector_store %arg4[%c0_16, %c0_17], %21 {strides = array<i32>} : memref<50x64xbf16, #tpu.memory_space<vmem>>, vector<50x64xbf16>,
    return
  }
  func.func @transform_0(%arg0: i32) -> (i32, i32, i32) {
    %c0_i32 = arith.constant 0 : i32
    %c0_i32_0 = arith.constant 0 : i32
    %c0_i32_1 = arith.constant 0 : i32
    return %c0_i32, %arg0, %c0_i32_0 : i32, i32, i32
  }
  func.func @transform_1(%arg0: i32) -> (i32, i32) {
    %c0_i32 = arith.constant 0 : i32
    %c0_i32_0 = arith.constant 0 : i32
    %c0_i32_1 = arith.constant 0 : i32
    return %c0_i32, %c0_i32_0 : i32, i32
  }
  func.func @transform_2(%arg0: i32) -> (i32, i32) {
    %c0_i32 = arith.constant 0 : i32
    %c0_i32_0 = arith.constant 0 : i32
    %c0_i32_1 = arith.constant 0 : i32
    return %c0_i32, %c0_i32_0 : i32, i32
  }
  func.func @transform_3(%arg0: i32) -> (i32, i32) {
    %c0_i32 = arith.constant 0 : i32
    %c0_i32_0 = arith.constant 0 : i32
    return %arg0, %c0_i32 : i32, i32
  }
}

module attributes {stable_mosaic.version = 11 : i64} {
  func.func @_mlp_head_kernel(%arg0: i32, %arg1: memref<2x1600xbf16, #tpu.memory_space<vmem>>, %arg2: memref<1600x128xbf16, #tpu.memory_space<vmem>>, %arg3: memref<1x128xf32, #tpu.memory_space<vmem>>, %arg4: memref<128x128xbf16, #tpu.memory_space<vmem>>, %arg5: memref<1x128xf32, #tpu.memory_space<vmem>>, %arg6: memref<128x10xbf16, #tpu.memory_space<vmem>>, %arg7: memref<1x10xf32, #tpu.memory_space<vmem>>, %arg8: memref<2x10xf32, #tpu.memory_space<vmem>>) attributes {dimension_semantics = [#tpu.dimension_semantics<parallel>], iteration_bounds = array<i64: 1>, scalar_prefetch = 0 : i64, scratch_operands = 0 : i64, tpu.core_type = #tpu.core_type<tc>, window_params = [{transform_indices = @transform_0, window_bounds = array<i64: 2, 1600>}, {pipeline_mode = #tpu.pipeline_mode<synchronous>, transform_indices = @transform_1, window_bounds = array<i64: 1600, 128>}, {pipeline_mode = #tpu.pipeline_mode<synchronous>, transform_indices = @transform_2, window_bounds = array<i64: 1, 128>}, {pipeline_mode = #tpu.pipeline_mode<synchronous>, transform_indices = @transform_3, window_bounds = array<i64: 128, 128>}, {pipeline_mode = #tpu.pipeline_mode<synchronous>, transform_indices = @transform_4, window_bounds = array<i64: 1, 128>}, {pipeline_mode = #tpu.pipeline_mode<synchronous>, transform_indices = @transform_5, window_bounds = array<i64: 128, 10>}, {pipeline_mode = #tpu.pipeline_mode<synchronous>, transform_indices = @transform_6, window_bounds = array<i64: 1, 10>}, {transform_indices = @transform_7, window_bounds = array<i64: 2, 10>}]} {
    %c0 = arith.constant 0 : index
    %c0_0 = arith.constant 0 : index
    %0 = vector.load %arg1[%c0, %c0_0] : memref<2x1600xbf16, #tpu.memory_space<vmem>>, vector<2x1600xbf16>
    %c0_1 = arith.constant 0 : index
    %c0_2 = arith.constant 0 : index
    %1 = vector.load %arg2[%c0_1, %c0_2] : memref<1600x128xbf16, #tpu.memory_space<vmem>>, vector<1600x128xbf16>
    %cst = arith.constant dense<0.000000e+00> : vector<2x128xf32>
    %2 = tpu.matmul %0, %1, %cst {dimension_numbers = #tpu.dot_dimension_numbers<[1], [0], [0], [1], [0, 0, 1, 1], [], []>} : vector<2x1600xbf16>, vector<1600x128xbf16>, vector<2x128xf32> -> vector<2x128xf32>
    %c0_3 = arith.constant 0 : index
    %c0_4 = arith.constant 0 : index
    %3 = vector.load %arg3[%c0_3, %c0_4] : memref<1x128xf32, #tpu.memory_space<vmem>>, vector<1x128xf32>
    %4 = vector.broadcast %3 : vector<1x128xf32> to vector<2x128xf32>
    %5 = arith.addf %2, %4 : vector<2x128xf32>
    %cst_5 = arith.constant 0.000000e+00 : f32
    %6 = vector.broadcast %cst_5 : f32 to vector<2x128xf32>
    %7 = arith.maximumf %5, %6 : vector<2x128xf32>
    %8 = arith.truncf %7 : vector<2x128xf32> to vector<2x128xbf16>
    %c0_6 = arith.constant 0 : index
    %c0_7 = arith.constant 0 : index
    %9 = vector.load %arg4[%c0_6, %c0_7] : memref<128x128xbf16, #tpu.memory_space<vmem>>, vector<128x128xbf16>
    %cst_8 = arith.constant dense<0.000000e+00> : vector<2x128xf32>
    %10 = tpu.matmul %8, %9, %cst_8 {dimension_numbers = #tpu.dot_dimension_numbers<[1], [0], [0], [1], [0, 0, 1, 1], [], []>} : vector<2x128xbf16>, vector<128x128xbf16>, vector<2x128xf32> -> vector<2x128xf32>
    %c0_9 = arith.constant 0 : index
    %c0_10 = arith.constant 0 : index
    %11 = vector.load %arg5[%c0_9, %c0_10] : memref<1x128xf32, #tpu.memory_space<vmem>>, vector<1x128xf32>
    %12 = vector.broadcast %11 : vector<1x128xf32> to vector<2x128xf32>
    %13 = arith.addf %10, %12 : vector<2x128xf32>
    %cst_11 = arith.constant 0.000000e+00 : f32
    %14 = vector.broadcast %cst_11 : f32 to vector<2x128xf32>
    %15 = arith.maximumf %13, %14 : vector<2x128xf32>
    %16 = arith.truncf %15 : vector<2x128xf32> to vector<2x128xbf16>
    %c0_12 = arith.constant 0 : index
    %c0_13 = arith.constant 0 : index
    %17 = vector.load %arg6[%c0_12, %c0_13] : memref<128x10xbf16, #tpu.memory_space<vmem>>, vector<128x10xbf16>
    %cst_14 = arith.constant dense<0.000000e+00> : vector<2x10xf32>
    %18 = tpu.matmul %16, %17, %cst_14 {dimension_numbers = #tpu.dot_dimension_numbers<[1], [0], [0], [1], [0, 0, 1, 1], [], []>} : vector<2x128xbf16>, vector<128x10xbf16>, vector<2x10xf32> -> vector<2x10xf32>
    %c0_15 = arith.constant 0 : index
    %c0_16 = arith.constant 0 : index
    %19 = vector.load %arg7[%c0_15, %c0_16] : memref<1x10xf32, #tpu.memory_space<vmem>>, vector<1x10xf32>
    %20 = vector.broadcast %19 : vector<1x10xf32> to vector<2x10xf32>
    %21 = arith.addf %18, %20 : vector<2x10xf32>
    %cst_17 = arith.constant dense<0xFF800000> : vector<2xf32>
    %22 = vector.multi_reduction <maximumf>, %21, %cst_17 [1] : vector<2x10xf32> to vector<2xf32>
    %23 = vector.shape_cast %22 : vector<2xf32> to vector<2x1xf32>
    %24 = vector.broadcast %23 : vector<2x1xf32> to vector<2x10xf32>
    %25 = arith.subf %21, %24 : vector<2x10xf32>
    %26 = math.exp %25 : vector<2x10xf32>
    %cst_18 = arith.constant dense<0.000000e+00> : vector<2xf32>
    %27 = vector.multi_reduction <add>, %26, %cst_18 [1] : vector<2x10xf32> to vector<2xf32>
    %28 = vector.shape_cast %27 : vector<2xf32> to vector<2x1xf32>
    %29 = math.log %28 : vector<2x1xf32>
    %30 = vector.broadcast %29 : vector<2x1xf32> to vector<2x10xf32>
    %31 = arith.subf %25, %30 : vector<2x10xf32>
    %c0_19 = arith.constant 0 : index
    %c0_20 = arith.constant 0 : index
    %32 = vector.load %arg8[%c0_19, %c0_20] : memref<2x10xf32, #tpu.memory_space<vmem>>, vector<2x10xf32>
    tpu.vector_store %arg8[%c0_19, %c0_20], %31 {strides = array<i32>} : memref<2x10xf32, #tpu.memory_space<vmem>>, vector<2x10xf32>,
    return
  }
  func.func @transform_0(%arg0: i32) -> (i32, i32) {
    %c0_i32 = arith.constant 0 : i32
    %c0_i32_0 = arith.constant 0 : i32
    return %arg0, %c0_i32 : i32, i32
  }
  func.func @transform_1(%arg0: i32) -> (i32, i32) {
    %c0_i32 = arith.constant 0 : i32
    %c0_i32_0 = arith.constant 0 : i32
    %c0_i32_1 = arith.constant 0 : i32
    return %c0_i32, %c0_i32_0 : i32, i32
  }
  func.func @transform_2(%arg0: i32) -> (i32, i32) {
    %c0_i32 = arith.constant 0 : i32
    %c0_i32_0 = arith.constant 0 : i32
    %c0_i32_1 = arith.constant 0 : i32
    return %c0_i32, %c0_i32_0 : i32, i32
  }
  func.func @transform_3(%arg0: i32) -> (i32, i32) {
    %c0_i32 = arith.constant 0 : i32
    %c0_i32_0 = arith.constant 0 : i32
    %c0_i32_1 = arith.constant 0 : i32
    return %c0_i32, %c0_i32_0 : i32, i32
  }
  func.func @transform_4(%arg0: i32) -> (i32, i32) {
    %c0_i32 = arith.constant 0 : i32
    %c0_i32_0 = arith.constant 0 : i32
    %c0_i32_1 = arith.constant 0 : i32
    return %c0_i32, %c0_i32_0 : i32, i32
  }
  func.func @transform_5(%arg0: i32) -> (i32, i32) {
    %c0_i32 = arith.constant 0 : i32
    %c0_i32_0 = arith.constant 0 : i32
    %c0_i32_1 = arith.constant 0 : i32
    return %c0_i32, %c0_i32_0 : i32, i32
  }
  func.func @transform_6(%arg0: i32) -> (i32, i32) {
    %c0_i32 = arith.constant 0 : i32
    %c0_i32_0 = arith.constant 0 : i32
    %c0_i32_1 = arith.constant 0 : i32
    return %c0_i32, %c0_i32_0 : i32, i32
  }
  func.func @transform_7(%arg0: i32) -> (i32, i32) {
    %c0_i32 = arith.constant 0 : i32
    %c0_i32_0 = arith.constant 0 : i32
    return %arg0, %c0_i32 : i32, i32
  }
}

</mosaic_0001>

<bundles_post_ra>
// kernel: net_forward.3
= control target key start
LH: loop header
LB: loop body
LE: loop exit
PB: predicated region body
PF: predicated region fallthrough
CT: control target
= control target key end

     0   :  { %v4956_v0 = vmov 0.0   ;;  %vm3604_vm0 = vmmov 0   ;;  %vm302_vm1 = vcmask 1044480   ;;  %vm303_vm2 = vcmask 1045504   ;;  %s4952_s1 = inlined_call_operand.vmem [shape: bf16[75,32], index: 1, kind: input, shape index: {}]   ;;  %s4953_s0 = inlined_call_operand.vmem [shape: bf16[4,392,75], index: 0, kind: input, shape index: {}]   ;;  %s4954_s2 = inlined_call_operand.vmem [shape: f32[1,32], index: 2, kind: input, shape index: {}]   ;;  %s4955_s3 = inlined_call_operand.vmem [shape: bf16[392,32], index: 3, kind: output, shape index: {}]  }
   0x1   :  { %3055 = vmatprep.subr.bf16.mxu0 %v4956_v0  ;;  %3165 = vmatprep.subr.bf16.mxu1 %v4956_v0  ;;  %v3498_v1 = vld [vmem:[%s4952_s1] sm:$0xff]   ;;  %v3499_v2 = vld [vmem:[%s4952_s1 + $0x8] sm:$0xff]   ;;  %v3500_v3 = vld [vmem:[%s4952_s1 + $0x10] sm:$0xff]   ;;  %v3605_v4 = vmov 65535   ;;  %vm226_vm3 = vcmask 613376   ;;  %vm2430_vm4 = vcmask 257024  }
   0x2   :  { %3056 = vmatpush3.bf16.msra.mxu0 %v3498_v1  ;;  %3166 = vmatpush3.bf16.msra.mxu1 %v3498_v1  ;;  %v304_v5 = vsel %vm302_vm1, 4294967295, %v3605_v4  ;;  %v3501_v6 = vld [vmem:[%s4952_s1 + $0x18] sm:$0xff]   ;;  %v3502_v7 = vld [vmem:[%s4952_s1 + $0x20] sm:$0x3f]   ;;  %v3505_v12 = vld [vmem:[%s4953_s0 + $0x8] sm:$0xff]  }
   0x3   :  { %3057 = vmatprep.subr.bf16.mxu0 %v4956_v0  ;;  %3167 = vmatprep.subr.bf16.mxu1 %v4956_v0  ;;  %v305_v8 = vsel %vm303_vm2, %v304_v5, 0  ;;  %v3503_v10 = vld [vmem:[%s4953_s0] sm:$0xff]   ;;  %v3506_v13 = vld [vmem:[%s4953_s0 + $0xcc] sm:$0xff]   ;;  %v3508_v15 = vld [vmem:[%s4953_s0 + $0xd4] sm:$0xff]  }
   0x4   :  { %3065 = vmatprep.mubr.msk.bf16.mxu0 %vm3604_vm0, %v4956_v0  ;;  %3175 = vmatprep.mubr.msk.bf16.mxu1 %vm3604_vm0, %v4956_v0  ;;  %v307_v9 = vand.u32 %v3502_v7, %v305_v8  ;;  %v3504_v11 = vld [vmem:[%s4953_s0 + $0xc4] sm:$0xff]   ;;  %v3507_v14 = vld [vmem:[%s4953_s0 + $0x10] sm:$0xff]   ;;  %v3509_v16 = vld [vmem:[%s4953_s0 + $0x18] sm:$0xff]  }
   0x5   :  { %v3510_v17 = vld [vmem:[%s4953_s0 + $0xdc] sm:$0xff]   ;;  %v3512_v19 = vld [vmem:[%s4953_s0 + $0xe4] sm:$0xff]   ;;  %v3514_v21 = vld [vmem:[%s4953_s0 + $0xec] sm:$0xff]  }
   0x6   :  { %3058 = vmatpush3.bf16.msra.mxu0 %v3499_v2  ;;  %3168 = vmatpush3.bf16.msra.mxu1 %v3499_v2  ;;  %v3511_v18 = vld [vmem:[%s4953_s0 + $0x20] sm:$0xff]   ;;  %v3513_v20 = vld [vmem:[%s4953_s0 + $0x28] sm:$0xff]   ;;  %v3515_v22 = vld [vmem:[%s4953_s0 + $0x30] sm:$0xff]  }
   0x7   :  { %3059 = vmatprep.subr.bf16.mxu0 %v4956_v0  ;;  %3169 = vmatprep.subr.bf16.mxu1 %v4956_v0  ;;  %v3516_v23 = vld [vmem:[%s4953_s0 + $0xf4] sm:$0xff]   ;;  %v3518_v25 = vld [vmem:[%s4953_s0 + $0xfc] sm:$0xff]   ;;  %v3520_v27 = vld [vmem:[%s4953_s0 + $0x104] sm:$0xff]  }
   0x8   :  { %v3517_v24 = vld [vmem:[%s4953_s0 + $0x38] sm:$0xff]   ;;  %v3519_v26 = vld [vmem:[%s4953_s0 + $0x40] sm:$0xff]   ;;  %v3521_v28 = vld [vmem:[%s4953_s0 + $0x48] sm:$0xff]  }
   0x9   :  { %v3522_v29 = vld [vmem:[%s4953_s0 + $0x10c] sm:$0xff]   ;;  %v3524_v31 = vld [vmem:[%s4953_s0 + $0x114] sm:$0xff]   ;;  %v3526_v33 = vld [vmem:[%s4953_s0 + $0x11c] sm:$0xff]  }
   0xa   :  { %3060 = vmatpush3.bf16.msra.mxu0 %v3500_v3  ;;  %3170 = vmatpush3.bf16.msra.mxu1 %v3500_v3  ;;  %v3523_v30 = vld [vmem:[%s4953_s0 + $0x50] sm:$0xff]   ;;  %v3525_v32 = vld [vmem:[%s4953_s0 + $0x58] sm:$0xff]   ;;  %v3527_v34 = vld [vmem:[%s4953_s0 + $0x60] sm:$0xff]  }
   0xb   :  { %3061 = vmatprep.subr.bf16.mxu0 %v4956_v0  ;;  %3171 = vmatprep.subr.bf16.mxu1 %v4956_v0  ;;  %v3528_v35 = vld [vmem:[%s4953_s0 + $0x124] sm:$0xff]   ;;  %v3530_v37 = vld [vmem:[%s4953_s0 + $0x12c] sm:$0xff]   ;;  %v3532_v39 = vld [vmem:[%s4953_s0 + $0x134] sm:$0xff]  }
   0xc   :  { %v3529_v36 = vld [vmem:[%s4953_s0 + $0x68] sm:$0xff]   ;;  %v3531_v38 = vld [vmem:[%s4953_s0 + $0x70] sm:$0xff]   ;;  %v3533_v40 = vld [vmem:[%s4953_s0 + $0x78] sm:$0xff]  }
   0xd   :  { %v3534_v41 = vld [vmem:[%s4953_s0 + $0x13c] sm:$0xff]   ;;  %v3536_v43 = vld [vmem:[%s4953_s0 + $0x144] sm:$0xff]   ;;  %v3538_v45 = vld [vmem:[%s4953_s0 + $0x14c] sm:$0xff]  }
   0xe   :  { %3062 = vmatpush3.bf16.msra.mxu0 %v3501_v6  ;;  %3172 = vmatpush3.bf16.msra.mxu1 %v3501_v6  ;;  %v3535_v42 = vld [vmem:[%s4953_s0 + $0x80] sm:$0xff]   ;;  %v3537_v44 = vld [vmem:[%s4953_s0 + $0x88] sm:$0xff]   ;;  %v3539_v46 = vld [vmem:[%s4953_s0 + $0x90] sm:$0xff]  }
   0xf   :  { %3063 = vmatprep.subr.bf16.mxu0 %v4956_v0  ;;  %3173 = vmatprep.subr.bf16.mxu1 %v4956_v0  ;;  %v3540_v47 = vld [vmem:[%s4953_s0 + $0x154] sm:$0xff]   ;;  %v3542_v49 = vld [vmem:[%s4953_s0 + $0x15c] sm:$0xff]   ;;  %v3544_v51 = vld [vmem:[%s4953_s0 + $0x164] sm:$0xff]  }
  0x10   :  { %v3541_v48 = vld [vmem:[%s4953_s0 + $0x98] sm:$0xff]   ;;  %v3543_v50 = vld [vmem:[%s4953_s0 + $0xa0] sm:$0xff]   ;;  %v3545_v52 = vld [vmem:[%s4953_s0 + $0xa8] sm:$0xff]  }
  0x11   :  { %v3546_v53 = vld [vmem:[%s4953_s0 + $0x16c] sm:$0xff]   ;;  %v3548_v55 = vld [vmem:[%s4953_s0 + $0x174] sm:$0xff]   ;;  %v3550_v57 = vld [vmem:[%s4953_s0 + $0x17c] sm:$0xff]  }
  0x12   :  { %3064 = vmatpush3.bf16.msra.mxu0 %v307_v9  ;;  %3174 = vmatpush3.bf16.msra.mxu1 %v307_v9  ;;  %v3547_v54 = vld [vmem:[%s4953_s0 + $0xb0] sm:$0xff]   ;;  %v3549_v56 = vld [vmem:[%s4953_s0 + $0xb8] sm:$0xff]   ;;  %v3551_v58 = vld [vmem:[%s4953_s0 + $0xc0] ss:$0 sps:$4 sm:$0xff]  }
  0x13   :  { %3275 = vmatprep.subr.bf16.mxu0 %v4956_v0  ;;  %3385 = vmatprep.subr.bf16.mxu1 %v4956_v0  ;;  %v3552_v59 = vld [vmem:[%s4953_s0 + $0x184] ss:$0 sps:$4 sm:$0xff]   ;;  %v3553_v60 = vld [vmem:[%s4953_s0 + $0x188] sm:$0xff]   ;;  %v3555_v62 = vld [vmem:[%s4953_s0 + $0x190] sm:$0xff]  }
  0x14   :  { %v3554_v61 = vld [vmem:[%s4953_s0 + $0x24c] sm:$0xff]   ;;  %v3556_v63 = vld [vmem:[%s4953_s0 + $0x254] sm:$0xff]   ;;  %v3558_v7 = vld [vmem:[%s4953_s0 + $0x25c] sm:$0xff]  }
  0x15   :  { %3066 = vmatmul.mubr.msk.bf16.vlgmr.msra.gmra.mrb[0].mxu0 %vm226_vm3, %v3503_v10  ;;  %3176 = vmatmul.mubr.msk.bf16.vlgmr.msra.gmra.mrb[0].mxu1 %vm226_vm3, %v3504_v11 }
  0x16   :  { %3276 = vmatpush3.bf16.msra.mxu0 %v3498_v1  ;;  %3386 = vmatpush3.bf16.msra.mxu1 %v3498_v1 }
  0x17   :  { %3069 = vmatprep.mubr.msk.bf16.mxu0 %vm3604_vm0, %v4956_v0  ;;  %3179 = vmatprep.mubr.msk.bf16.mxu1 %vm3604_vm0, %v4956_v0 }
  0x18   :  { %3277 = vmatprep.subr.bf16.mxu0 %v4956_v0  ;;  %3387 = vmatprep.subr.bf16.mxu1 %v4956_v0 }
  0x1a   :  { %3278 = vmatpush3.bf16.msra.mxu0 %v3499_v2  ;;  %3388 = vmatpush3.bf16.msra.mxu1 %v3499_v2 }
  0x1b   :  { %3279 = vmatprep.subr.bf16.mxu0 %v4956_v0  ;;  %3389 = vmatprep.subr.bf16.mxu1 %v4956_v0 }
  0x1d   :  { %3070 = vmatmul.mubr.msk.bf16.gmra.mrb[4].mxu0 %vm226_vm3, %v3505_v12  ;;  %3180 = vmatmul.mubr.msk.bf16.gmra.mrb[4].mxu1 %vm226_vm3, %v3506_v13 }
  0x1e   :  { %3073 = vmatprep.mubr.msk.bf16.mxu0 %vm3604_vm0, %v4956_v0  ;;  %3183 = vmatprep.mubr.msk.bf16.mxu1 %vm3604_vm0, %v4956_v0 }
  0x1f   :  { %3280 = vmatpush3.bf16.msra.mxu0 %v3500_v3  ;;  %3390 = vmatpush3.bf16.msra.mxu1 %v3500_v3 }
  0x20   :  { %3281 = vmatprep.subr.bf16.mxu0 %v4956_v0  ;;  %3391 = vmatprep.subr.bf16.mxu1 %v4956_v0 }
  0x23   :  { %3282 = vmatpush3.bf16.msra.mxu0 %v3501_v6  ;;  %3392 = vmatpush3.bf16.msra.mxu1 %v3501_v6  ;;  %v3557_v6 = vld [vmem:[%s4953_s0 + $0x198] sm:$0xff]  }
  0x24   :  { %3283 = vmatprep.subr.bf16.mxu0 %v4956_v0  ;;  %3393 = vmatprep.subr.bf16.mxu1 %v4956_v0 }
  0x25   :  { %3074 = vmatmul.mubr.msk.bf16.gmra.mrb[8].mxu0 %vm226_vm3, %v3507_v14  ;;  %3184 = vmatmul.mubr.msk.bf16.gmra.mrb[8].mxu1 %vm226_vm3, %v3508_v15 }
  0x26   :  { %3077 = vmatprep.mubr.msk.bf16.mxu0 %vm3604_vm0, %v4956_v0  ;;  %3187 = vmatprep.mubr.msk.bf16.mxu1 %vm3604_vm0, %v4956_v0 }
  0x27   :  { %3284 = vmatpush3.bf16.msra.mxu0 %v307_v9  ;;  %3394 = vmatpush3.bf16.msra.mxu1 %v307_v9 }
  0x2d   :  { %3078 = vmatmul.mubr.msk.bf16.gmra.mrb[12].mxu0 %vm226_vm3, %v3509_v16  ;;  %3188 = vmatmul.mubr.msk.bf16.gmra.mrb[12].mxu1 %vm226_vm3, %v3510_v17 }
  0x2e   :  { %3081 = vmatprep.mubr.msk.bf16.mxu0 %vm3604_vm0, %v4956_v0  ;;  %3191 = vmatprep.mubr.msk.bf16.mxu1 %vm3604_vm0, %v4956_v0 }
  0x35   :  { %3082 = vmatmul.mubr.msk.bf16.gmra.mrb[16].mxu0 %vm226_vm3, %v3511_v18  ;;  %3192 = vmatmul.mubr.msk.bf16.gmra.mrb[16].mxu1 %vm226_vm3, %v3512_v19  ;;  %v3559_v18 = vld [vmem:[%s4953_s0 + $0x1a0] sm:$0xff]  }
  0x36   :  { %3085 = vmatprep.mubr.msk.bf16.mxu0 %vm3604_vm0, %v4956_v0  ;;  %3195 = vmatprep.mubr.msk.bf16.mxu1 %vm3604_vm0, %v4956_v0  ;;  %v3560_v19 = vld [vmem:[%s4953_s0 + $0x264] sm:$0xff]  }
  0x3d   :  { %3086 = vmatmul.mubr.msk.bf16.gmra.mrb[20].mxu0 %vm226_vm3, %v3513_v20  ;;  %3196 = vmatmul.mubr.msk.bf16.gmra.mrb[20].mxu1 %vm226_vm3, %v3514_v21 }
  0x3e   :  { %3089 = vmatprep.mubr.msk.bf16.mxu0 %vm3604_vm0, %v4956_v0  ;;  %3199 = vmatprep.mubr.msk.bf16.mxu1 %vm3604_vm0, %v4956_v0 }
  0x45   :  { %3090 = vmatmul.mubr.msk.bf16.gmra.mrb[24].mxu0 %vm226_vm3, %v3515_v22  ;;  %3200 = vmatmul.mubr.msk.bf16.gmra.mrb[24].mxu1 %vm226_vm3, %v3516_v23 }
  0x46   :  { %3093 = vmatprep.mubr.msk.bf16.mxu0 %vm3604_vm0, %v4956_v0  ;;  %3203 = vmatprep.mubr.msk.bf16.mxu1 %vm3604_vm0, %v4956_v0 }
  0x4d   :  { %3094 = vmatmul.mubr.msk.bf16.gmra.mrb[28].mxu0 %vm226_vm3, %v3517_v24  ;;  %3204 = vmatmul.mubr.msk.bf16.gmra.mrb[28].mxu1 %vm226_vm3, %v3518_v25 }
  0x4e   :  { %3097 = vmatprep.mubr.msk.bf16.mxu0 %vm3604_vm0, %v4956_v0  ;;  %3207 = vmatprep.mubr.msk.bf16.mxu1 %vm3604_vm0, %v4956_v0 }
  0x55   :  { %3098 = vmatmul.mubr.msk.bf16.gmra.mrb[32].mxu0 %vm226_vm3, %v3519_v26  ;;  %3208 = vmatmul.mubr.msk.bf16.gmra.mrb[32].mxu1 %vm226_vm3, %v3520_v27 }
  0x56   :  { %3101 = vmatprep.mubr.msk.bf16.mxu0 %vm3604_vm0, %v4956_v0  ;;  %3211 = vmatprep.mubr.msk.bf16.mxu1 %vm3604_vm0, %v4956_v0 }
  0x5d   :  { %3102 = vmatmul.mubr.msk.bf16.gmra.mrb[36].mxu0 %vm226_vm3, %v3521_v28  ;;  %3212 = vmatmul.mubr.msk.bf16.gmra.mrb[36].mxu1 %vm226_vm3, %v3522_v29 }
  0x5e   :  { %3105 = vmatprep.mubr.msk.bf16.mxu0 %vm3604_vm0, %v4956_v0  ;;  %3215 = vmatprep.mubr.msk.bf16.mxu1 %vm3604_vm0, %v4956_v0 }
  0x65   :  { %3106 = vmatmul.mubr.msk.bf16.gmra.mrb[40].mxu0 %vm226_vm3, %v3523_v30  ;;  %3216 = vmatmul.mubr.msk.bf16.gmra.mrb[40].mxu1 %vm226_vm3, %v3524_v31  ;;  %v3561_v30 = vld [vmem:[%s4953_s0 + $0x1a8] sm:$0xff]  }
  0x66   :  { %3109 = vmatprep.mubr.msk.bf16.mxu0 %vm3604_vm0, %v4956_v0  ;;  %3219 = vmatprep.mubr.msk.bf16.mxu1 %vm3604_vm0, %v4956_v0  ;;  %v3562_v31 = vld [vmem:[%s4953_s0 + $0x26c] sm:$0xff]  }
  0x6d   :  { %3110 = vmatmul.mubr.msk.bf16.gmra.mrb[44].mxu0 %vm226_vm3, %v3525_v32  ;;  %3220 = vmatmul.mubr.msk.bf16.gmra.mrb[44].mxu1 %vm226_vm3, %v3526_v33 }
  0x6e   :  { %3113 = vmatprep.mubr.msk.bf16.mxu0 %vm3604_vm0, %v4956_v0  ;;  %3223 = vmatprep.mubr.msk.bf16.mxu1 %vm3604_vm0, %v4956_v0 }
  0x75   :  { %3114 = vmatmul.mubr.msk.bf16.gmra.mrb[48].mxu0 %vm226_vm3, %v3527_v34  ;;  %3224 = vmatmul.mubr.msk.bf16.gmra.mrb[48].mxu1 %vm226_vm3, %v3528_v35 }
  0x76   :  { %3117 = vmatprep.mubr.msk.bf16.mxu0 %vm3604_vm0, %v4956_v0  ;;  %3227 = vmatprep.mubr.msk.bf16.mxu1 %vm3604_vm0, %v4956_v0 }
  0x7d   :  { %3118 = vmatmul.mubr.msk.bf16.gmra.mrb[52].mxu0 %vm226_vm3, %v3529_v36  ;;  %3228 = vmatmul.mubr.msk.bf16.gmra.mrb[52].mxu1 %vm226_vm3, %v3530_v37 }
  0x7e   :  { %3121 = vmatprep.mubr.msk.bf16.mxu0 %vm3604_vm0, %v4956_v0  ;;  %3231 = vmatprep.mubr.msk.bf16.mxu1 %vm3604_vm0, %v4956_v0 }
  0x85   :  { %3122 = vmatmul.mubr.msk.bf16.gmra.mrb[56].mxu0 %vm226_vm3, %v3531_v38  ;;  %3232 = vmatmul.mubr.msk.bf16.gmra.mrb[56].mxu1 %vm226_vm3, %v3532_v39 }
  0x86   :  { %3125 = vmatprep.mubr.msk.bf16.mxu0 %vm3604_vm0, %v4956_v0  ;;  %3235 = vmatprep.mubr.msk.bf16.mxu1 %vm3604_vm0, %v4956_v0 }
  0x8d   :  { %3126 = vmatmul.mubr.msk.bf16.gmra.mrb[60].mxu0 %vm226_vm3, %v3533_v40  ;;  %3236 = vmatmul.mubr.msk.bf16.gmra.mrb[60].mxu1 %vm226_vm3, %v3534_v41 }
  0x8e   :  { %3129 = vmatprep.mubr.msk.bf16.mxu0 %vm3604_vm0, %v4956_v0  ;;  %3239 = vmatprep.mubr.msk.bf16.mxu1 %vm3604_vm0, %v4956_v0 }
  0x95   :  { %3130 = vmatmul.mubr.msk.bf16.gmra.mrb[64].mxu0 %vm226_vm3, %v3535_v42  ;;  %3240 = vmatmul.mubr.msk.bf16.gmra.mrb[64].mxu1 %vm226_vm3, %v3536_v43  ;;  %v3563_v42 = vld [vmem:[%s4953_s0 + $0x1b0] sm:$0xff]  }
  0x96   :  { %3133 = vmatprep.mubr.msk.bf16.mxu0 %vm3604_vm0, %v4956_v0  ;;  %3243 = vmatprep.mubr.msk.bf16.mxu1 %vm3604_vm0, %v4956_v0  ;;  %v3564_v43 = vld [vmem:[%s4953_s0 + $0x274] sm:$0xff]  }
  0x9d   :  { %3134 = vmatmul.mubr.msk.bf16.gmra.mrb[68].mxu0 %vm226_vm3, %v3537_v44  ;;  %3244 = vmatmul.mubr.msk.bf16.gmra.mrb[68].mxu1 %vm226_vm3, %v3538_v45 }
  0x9e   :  { %3137 = vmatprep.mubr.msk.bf16.mxu0 %vm3604_vm0, %v4956_v0  ;;  %3247 = vmatprep.mubr.msk.bf16.mxu1 %vm3604_vm0, %v4956_v0 }
  0xa5   :  { %3138 = vmatmul.mubr.msk.bf16.gmra.mrb[72].mxu0 %vm226_vm3, %v3539_v46  ;;  %3248 = vmatmul.mubr.msk.bf16.gmra.mrb[72].mxu1 %vm226_vm3, %v3540_v47 }
  0xa6   :  { %3141 = vmatprep.mubr.msk.bf16.mxu0 %vm3604_vm0, %v4956_v0  ;;  %3251 = vmatprep.mubr.msk.bf16.mxu1 %vm3604_vm0, %v4956_v0 }
  0xad   :  { %3142 = vmatmul.mubr.msk.bf16.gmra.mrb[76].mxu0 %vm226_vm3, %v3541_v48  ;;  %3252 = vmatmul.mubr.msk.bf16.gmra.mrb[76].mxu1 %vm226_vm3, %v3542_v49 }
  0xae   :  { %3145 = vmatprep.mubr.msk.bf16.mxu0 %vm3604_vm0, %v4956_v0  ;;  %3255 = vmatprep.mubr.msk.bf16.mxu1 %vm3604_vm0, %v4956_v0 }
  0xb5   :  { %3146 = vmatmul.mubr.msk.bf16.gmra.mrb[80].mxu0 %vm226_vm3, %v3543_v50  ;;  %3256 = vmatmul.mubr.msk.bf16.gmra.mrb[80].mxu1 %vm226_vm3, %v3544_v51 }
  0xb6   :  { %3149 = vmatprep.mubr.msk.bf16.mxu0 %vm3604_vm0, %v4956_v0  ;;  %3259 = vmatprep.mubr.msk.bf16.mxu1 %vm3604_vm0, %v4956_v0 }
  0xbd   :  { %3150 = vmatmul.mubr.msk.bf16.gmra.mrb[84].mxu0 %vm226_vm3, %v3545_v52  ;;  %3260 = vmatmul.mubr.msk.bf16.gmra.mrb[84].mxu1 %vm226_vm3, %v3546_v53 }
  0xbe   :  { %3153 = vmatprep.mubr.msk.bf16.mxu0 %vm3604_vm0, %v4956_v0  ;;  %3263 = vmatprep.mubr.msk.bf16.mxu1 %vm3604_vm0, %v4956_v0 }
  0xc5   :  { %3154 = vmatmul.mubr.msk.bf16.gmra.mrb[88].mxu0 %vm226_vm3, %v3547_v54  ;;  %3264 = vmatmul.mubr.msk.bf16.gmra.mrb[88].mxu1 %vm226_vm3, %v3548_v55  ;;  %v3565_v54 = vld [vmem:[%s4953_s0 + $0x1b8] sm:$0xff]  }
  0xc6   :  { %3157 = vmatprep.mubr.msk.bf16.mxu0 %vm3604_vm0, %v4956_v0  ;;  %3267 = vmatprep.mubr.msk.bf16.mxu1 %vm3604_vm0, %v4956_v0  ;;  %v3566_v55 = vld [vmem:[%s4953_s0 + $0x27c] sm:$0xff]  }
  0xcd   :  { %3158 = vmatmul.mubr.msk.bf16.gmra.mrb[92].mxu0 %vm226_vm3, %v3549_v56  ;;  %3268 = vmatmul.mubr.msk.bf16.gmra.mrb[92].mxu1 %vm226_vm3, %v3550_v57 }
  0xce   :  { %3161 = vmatprep.mubr.msk.bf16.mxu0 %vm3604_vm0, %v4956_v0  ;;  %3271 = vmatprep.mubr.msk.bf16.mxu1 %vm3604_vm0, %v4956_v0 }
  0xd5   :  { %3162 = vmatmul.mubr.msk.bf16.gmra.mrb[96].mxu0 %vm226_vm3, %v3551_v58  ;;  %3272 = vmatmul.mubr.msk.bf16.gmra.mrb[96].mxu1 %vm226_vm3, %v3552_v59 }
  0xd6   :  { %3285 = vmatprep.mubr.msk.bf16.mxu0 %vm3604_vm0, %v4956_v0  ;;  %3395 = vmatprep.mubr.msk.bf16.mxu1 %vm3604_vm0, %v4956_v0 }
  0xdd   :  { %3286 = vmatmul.mubr.msk.bf16.vlgmr.msra.gmra.mrb[100].mxu0 %vm226_vm3, %v3553_v60  ;;  %3396 = vmatmul.mubr.msk.bf16.vlgmr.msra.gmra.mrb[100].mxu1 %vm226_vm3, %v3554_v61 }
  0xde   :  { %3289 = vmatprep.mubr.msk.bf16.mxu0 %vm3604_vm0, %v4956_v0  ;;  %3399 = vmatprep.mubr.msk.bf16.mxu1 %vm3604_vm0, %v4956_v0 }
  0xe5   :  { %3290 = vmatmul.mubr.msk.bf16.gmra.mrb[104].mxu0 %vm226_vm3, %v3555_v62  ;;  %3400 = vmatmul.mubr.msk.bf16.gmra.mrb[104].mxu1 %vm226_vm3, %v3556_v63 }
  0xe6   :  { %3293 = vmatprep.mubr.msk.bf16.mxu0 %vm3604_vm0, %v4956_v0  ;;  %3403 = vmatprep.mubr.msk.bf16.mxu1 %vm3604_vm0, %v4956_v0 }
  0xe8   :  { %v3989_v1 = vpop.f32.mrb[0].mxu0  ;;  %v3991_v2 = vpop.f32.mrb[0].mxu1 }
  0xe9   :  { %v3067_v4 = vpop.f32.mrb[1].mxu0  ;;  %v3177_v5 = vpop.f32.mrb[1].mxu1 }
  0xea   :  { %v4001_v8 = vpop.f32.mrb[2].mxu0  ;;  %v4003_v9 = vpop.f32.mrb[2].mxu1 }
  0xeb   :  { %v3068_v11 = vpop.f32.mrb[3].mxu0  ;;  %v3178_v12 = vpop.f32.mrb[3].mxu1 }
  0xed   :  { %3294 = vmatmul.mubr.msk.bf16.gmra.mrb[108].mxu0 %vm226_vm3, %v3557_v6  ;;  %3404 = vmatmul.mubr.msk.bf16.gmra.mrb[108].mxu1 %vm226_vm3, %v3558_v7  ;;  %v3567_v6 = vld [vmem:[%s4953_s0 + $0x1c0] sm:$0xff]  }
  0xee   :  { %3297 = vmatprep.mubr.msk.bf16.mxu0 %vm3604_vm0, %v4956_v0  ;;  %3407 = vmatprep.mubr.msk.bf16.mxu1 %vm3604_vm0, %v4956_v0  ;;  %v3568_v7 = vld [vmem:[%s4953_s0 + $0x284] sm:$0xff]  }
  0xf0   :  { %v4013_v13 = vpop.f32.mrb[4].mxu0  ;;  %v4015_v14 = vpop.f32.mrb[4].mxu1 }
  0xf1   :  { %v3071_v16 = vpop.f32.mrb[5].mxu0  ;;  %v3181_v17 = vpop.f32.mrb[5].mxu1 }
  0xf2   :  { %v4025_v20 = vpop.f32.mrb[6].mxu0  ;;  %v4027_v21 = vpop.f32.mrb[6].mxu1 }
  0xf3   :  { %v3072_v23 = vpop.f32.mrb[7].mxu0  ;;  %v3182_v24 = vpop.f32.mrb[7].mxu1 }
  0xf5   :  { %3298 = vmatmul.mubr.msk.bf16.gmra.mrb[112].mxu0 %vm226_vm3, %v3559_v18  ;;  %3408 = vmatmul.mubr.msk.bf16.gmra.mrb[112].mxu1 %vm226_vm3, %v3560_v19 }
  0xf6   :  { %3301 = vmatprep.mubr.msk.bf16.mxu0 %vm3604_vm0, %v4956_v0  ;;  %3411 = vmatprep.mubr.msk.bf16.mxu1 %vm3604_vm0, %v4956_v0 }
  0xf8   :  { %v4037_v25 = vpop.f32.mrb[8].mxu0  ;;  %v4039_v26 = vpop.f32.mrb[8].mxu1 }
  0xf9   :  { %v3075_v28 = vpop.f32.mrb[9].mxu0  ;;  %v3185_v29 = vpop.f32.mrb[9].mxu1 }
  0xfa   :  { %v4049_v32 = vpop.f32.mrb[10].mxu0  ;;  %v4051_v33 = vpop.f32.mrb[10].mxu1 }
  0xfb   :  { %v3076_v35 = vpop.f32.mrb[11].mxu0  ;;  %v3186_v36 = vpop.f32.mrb[11].mxu1 }
  0xfd   :  { %3302 = vmatmul.mubr.msk.bf16.gmra.mrb[116].mxu0 %vm226_vm3, %v3561_v30  ;;  %3412 = vmatmul.mubr.msk.bf16.gmra.mrb[116].mxu1 %vm226_vm3, %v3562_v31  ;;  %v3569_v30 = vld [vmem:[%s4953_s0 + $0x1c8] sm:$0xff]  }
  0xfe   :  { %3305 = vmatprep.mubr.msk.bf16.mxu0 %vm3604_vm0, %v4956_v0  ;;  %3415 = vmatprep.mubr.msk.bf16.mxu1 %vm3604_vm0, %v4956_v0  ;;  %v3570_v31 = vld [vmem:[%s4953_s0 + $0x28c] sm:$0xff]  }
 0x100   :  { %v4061_v37 = vpop.f32.mrb[12].mxu0  ;;  %v4063_v38 = vpop.f32.mrb[12].mxu1 }
 0x101   :  { %v3079_v40 = vpop.f32.mrb[13].mxu0  ;;  %v3189_v41 = vpop.f32.mrb[13].mxu1 }
 0x102   :  { %v4073_v44 = vpop.f32.mrb[14].mxu0  ;;  %v4075_v45 = vpop.f32.mrb[14].mxu1 }
 0x103   :  { %v3080_v47 = vpop.f32.mrb[15].mxu0  ;;  %v3190_v48 = vpop.f32.mrb[15].mxu1 }
 0x105   :  { %3306 = vmatmul.mubr.msk.bf16.gmra.mrb[120].mxu0 %vm226_vm3, %v3563_v42  ;;  %3416 = vmatmul.mubr.msk.bf16.gmra.mrb[120].mxu1 %vm226_vm3, %v3564_v43 }
 0x106   :  { %3309 = vmatprep.mubr.msk.bf16.mxu0 %vm3604_vm0, %v4956_v0  ;;  %3419 = vmatprep.mubr.msk.bf16.mxu1 %vm3604_vm0, %v4956_v0 }
 0x108   :  { %v4085_v49 = vpop.f32.mrb[16].mxu0  ;;  %v4087_v50 = vpop.f32.mrb[16].mxu1 }
 0x109   :  { %v3083_v52 = vpop.f32.mrb[17].mxu0  ;;  %v3193_v53 = vpop.f32.mrb[17].mxu1 }
 0x10a   :  { %v4097_v56 = vpop.f32.mrb[18].mxu0  ;;  %v4099_v57 = vpop.f32.mrb[18].mxu1 }
 0x10b   :  { %v3084_v59 = vpop.f32.mrb[19].mxu0  ;;  %v3194_v60 = vpop.f32.mrb[19].mxu1 }
 0x10d   :  { %3310 = vmatmul.mubr.msk.bf16.gmra.mrb[124].mxu0 %vm226_vm3, %v3565_v54  ;;  %3420 = vmatmul.mubr.msk.bf16.gmra.mrb[124].mxu1 %vm226_vm3, %v3566_v55  ;;  %v3571_v54 = vld [vmem:[%s4953_s0 + $0x1d0] sm:$0xff]  }
 0x10e   :  { %3313 = vmatprep.mubr.msk.bf16.mxu0 %vm3604_vm0, %v4956_v0  ;;  %3423 = vmatprep.mubr.msk.bf16.mxu1 %vm3604_vm0, %v4956_v0  ;;  %v3572_v55 = vld [vmem:[%s4953_s0 + $0x294] sm:$0xff]  }
 0x110   :  { %v4109_v61 = vpop.f32.mrb[20].mxu0  ;;  %v4111_v62 = vpop.f32.mrb[20].mxu1 }
 0x111   :  { %v3087_v4 = vpop.f32.mrb[21].mxu0  ;;  %v3197_v5 = vpop.f32.mrb[21].mxu1 }
 0x112   :  { %v4121_v11 = vpop.f32.mrb[22].mxu0  ;;  %v4123_v12 = vpop.f32.mrb[22].mxu1 }
 0x113   :  { %v3088_v17 = vpop.f32.mrb[23].mxu0  ;;  %v3198_v18 = vpop.f32.mrb[23].mxu1 }
 0x115   :  { %3314 = vmatmul.mubr.msk.bf16.gmra.mrb[128].mxu0 %vm226_vm3, %v3567_v6  ;;  %3424 = vmatmul.mubr.msk.bf16.gmra.mrb[128].mxu1 %vm226_vm3, %v3568_v7 }
 0x116   :  { %3317 = vmatprep.mubr.msk.bf16.mxu0 %vm3604_vm0, %v4956_v0  ;;  %3427 = vmatprep.mubr.msk.bf16.mxu1 %vm3604_vm0, %v4956_v0 }
 0x118   :  { %v4133_v19 = vpop.f32.mrb[24].mxu0  ;;  %v4135_v23 = vpop.f32.mrb[24].mxu1 }
 0x119   :  { %v3091_v28 = vpop.f32.mrb[25].mxu0  ;;  %v3201_v29 = vpop.f32.mrb[25].mxu1 }
 0x11a   :  { %v4145_v35 = vpop.f32.mrb[26].mxu0  ;;  %v4147_v36 = vpop.f32.mrb[26].mxu1 }
 0x11b   :  { %v3092_v41 = vpop.f32.mrb[27].mxu0  ;;  %v3202_v42 = vpop.f32.mrb[27].mxu1 }
 0x11d   :  { %3318 = vmatmul.mubr.msk.bf16.gmra.mrb[132].mxu0 %vm226_vm3, %v3569_v30  ;;  %3428 = vmatmul.mubr.msk.bf16.gmra.mrb[132].mxu1 %vm226_vm3, %v3570_v31  ;;  %v3573_v30 = vld [vmem:[%s4953_s0 + $0x1d8] sm:$0xff]  }
 0x11e   :  { %3321 = vmatprep.mubr.msk.bf16.mxu0 %vm3604_vm0, %v4956_v0  ;;  %3431 = vmatprep.mubr.msk.bf16.mxu1 %vm3604_vm0, %v4956_v0  ;;  %v3574_v31 = vld [vmem:[%s4953_s0 + $0x29c] sm:$0xff]  }
 0x120   :  { %v4157_v43 = vpop.f32.mrb[28].mxu0  ;;  %v4159_v47 = vpop.f32.mrb[28].mxu1 }
 0x121   :  { %v3095_v52 = vpop.f32.mrb[29].mxu0  ;;  %v3205_v53 = vpop.f32.mrb[29].mxu1 }
 0x122   :  { %v4169_v59 = vpop.f32.mrb[30].mxu0  ;;  %v4171_v60 = vpop.f32.mrb[30].mxu1 }
 0x123   :  { %v3096_v5 = vpop.f32.mrb[31].mxu0  ;;  %v3206_v6 = vpop.f32.mrb[31].mxu1 }
 0x125   :  { %3322 = vmatmul.mubr.msk.bf16.gmra.mrb[136].mxu0 %vm226_vm3, %v3571_v54  ;;  %3432 = vmatmul.mubr.msk.bf16.gmra.mrb[136].mxu1 %vm226_vm3, %v3572_v55 }
 0x126   :  { %3325 = vmatprep.mubr.msk.bf16.mxu0 %vm3604_vm0, %v4956_v0  ;;  %3435 = vmatprep.mubr.msk.bf16.mxu1 %vm3604_vm0, %v4956_v0 }
 0x128   :  { %v4181_v7 = vpop.f32.mrb[32].mxu0  ;;  %v4183_v17 = vpop.f32.mrb[32].mxu1 }
 0x129   :  { %v3099_v28 = vpop.f32.mrb[33].mxu0  ;;  %v3209_v29 = vpop.f32.mrb[33].mxu1 }
 0x12a   :  { %v4193_v41 = vpop.f32.mrb[34].mxu0  ;;  %v4195_v42 = vpop.f32.mrb[34].mxu1 }
 0x12b   :  { %v3100_v53 = vpop.f32.mrb[35].mxu0  ;;  %v3210_v54 = vpop.f32.mrb[35].mxu1 }
 0x12d   :  { %3326 = vmatmul.mubr.msk.bf16.gmra.mrb[140].mxu0 %vm226_vm3, %v3573_v30  ;;  %3436 = vmatmul.mubr.msk.bf16.gmra.mrb[140].mxu1 %vm226_vm3, %v3574_v31  ;;  %v3575_v30 = vld [vmem:[%s4953_s0 + $0x1e0] sm:$0xff]  }
 0x12e   :  { %3329 = vmatprep.mubr.msk.bf16.mxu0 %vm3604_vm0, %v4956_v0  ;;  %3439 = vmatprep.mubr.msk.bf16.mxu1 %vm3604_vm0, %v4956_v0  ;;  %v3576_v31 = vld [vmem:[%s4953_s0 + $0x2a4] sm:$0xff]  }
 0x130   :  { %v4205_v55 = vpop.f32.mrb[36].mxu0  ;;  %v4207_v5 = vpop.f32.mrb[36].mxu1 }
 0x131   :  { %v3103_v28 = vpop.f32.mrb[37].mxu0  ;;  %v3213_v29 = vpop.f32.mrb[37].mxu1 }
 0x132   :  { %v4217_v53 = vpop.f32.mrb[38].mxu0  ;;  %v4219_v54 = vpop.f32.mrb[38].mxu1 }
 0x133   :  { %v3104_v18 = vpop.f32.mrb[39].mxu0  ;;  %v3214_v4 = vpop.f32.mrb[39].mxu1 }
 0x134   :  { %v3577_v4 = vld [vmem:[%s4953_s0 + $0x1e8] sm:$0xff]  }
 0x135   :  { %3330 = vmatmul.mubr.msk.bf16.gmra.mrb[144].mxu0 %vm226_vm3, %v3575_v30  ;;  %3440 = vmatmul.mubr.msk.bf16.gmra.mrb[144].mxu1 %vm226_vm3, %v3576_v31  ;;  %v3578_v30 = vld [vmem:[%s4953_s0 + $0x2ac] sm:$0xff]  }
 0x136   :  { %3333 = vmatprep.mubr.msk.bf16.mxu0 %vm3604_vm0, %v4956_v0  ;;  %3443 = vmatprep.mubr.msk.bf16.mxu1 %vm3604_vm0, %v4956_v0 }
 0x138   :  { %v4229_v28 = vpop.f32.mrb[40].mxu0  ;;  %v4231_v29 = vpop.f32.mrb[40].mxu1 }
 0x139   :  { %v3107_v52 = vpop.f32.mrb[41].mxu0  ;;  %v3217_v18 = vpop.f32.mrb[41].mxu1 }
 0x13a   :  { %v4241_v31 = vpop.f32.mrb[42].mxu0  ;;  %v4243_v48 = vpop.f32.mrb[42].mxu1 }
 0x13b   :  { %v3108_v24 = vpop.f32.mrb[43].mxu0  ;;  %v3218_v16 = vpop.f32.mrb[43].mxu1 }
 0x13c   :  { %v3579_v16 = vld [vmem:[%s4953_s0 + $0x1f0] sm:$0xff]  }
 0x13d   :  { %3334 = vmatmul.mubr.msk.bf16.gmra.mrb[148].mxu0 %vm226_vm3, %v3577_v4  ;;  %3444 = vmatmul.mubr.msk.bf16.gmra.mrb[148].mxu1 %vm226_vm3, %v3578_v30  ;;  %v3580_v4 = vld [vmem:[%s4953_s0 + $0x2b4] sm:$0xff]  }
 0x13e   :  { %3337 = vmatprep.mubr.msk.bf16.mxu0 %vm3604_vm0, %v4956_v0  ;;  %3447 = vmatprep.mubr.msk.bf16.mxu1 %vm3604_vm0, %v4956_v0 }
 0x140   :  { %v4253_v52 = vpop.f32.mrb[44].mxu0  ;;  %v4255_v18 = vpop.f32.mrb[44].mxu1 }
 0x141   :  { %v3111_v40 = vpop.f32.mrb[45].mxu0  ;;  %v3221_v24 = vpop.f32.mrb[45].mxu1 }
 0x142   :  { %v4265_v30 = vpop.f32.mrb[46].mxu0  ;;  %v4267_v63 = vpop.f32.mrb[46].mxu1 }
 0x143   :  { %5009 = vst [vmem:[#allocation2_spill] sm:$0xff] %v4267_v63  ;;  %v3112_v51 = vpop.f32.mrb[47].mxu0  ;;  %v3222_v46 = vpop.f32.mrb[47].mxu1 }
 0x144   :  { %v3581_v46 = vld [vmem:[%s4953_s0 + $0x1f8] sm:$0xff]  }
 0x145   :  { %3338 = vmatmul.mubr.msk.bf16.gmra.mrb[152].mxu0 %vm226_vm3, %v3579_v16  ;;  %3448 = vmatmul.mubr.msk.bf16.gmra.mrb[152].mxu1 %vm226_vm3, %v3580_v4  ;;  %v3582_v16 = vld [vmem:[%s4953_s0 + $0x2bc] sm:$0xff]  }
 0x146   :  { %3341 = vmatprep.mubr.msk.bf16.mxu0 %vm3604_vm0, %v4956_v0  ;;  %3451 = vmatprep.mubr.msk.bf16.mxu1 %vm3604_vm0, %v4956_v0 }
 0x148   :  { %v4277_v40 = vpop.f32.mrb[48].mxu0  ;;  %v4279_v24 = vpop.f32.mrb[48].mxu1 }
 0x149   :  { %5010 = vst [vmem:[#allocation3_spill] sm:$0xff] %v4277_v40  ;;  %5011 = vst [vmem:[#allocation4_spill] sm:$0xff] %v4279_v24  ;;  %v3115_v58 = vpop.f32.mrb[49].mxu0  ;;  %v3225_v51 = vpop.f32.mrb[49].mxu1 }
 0x14a   :  { %v4289_v4 = vpop.f32.mrb[50].mxu0  ;;  %v4291_v39 = vpop.f32.mrb[50].mxu1 }
 0x14b   :  { %5012 = vst [vmem:[#allocation5_spill] sm:$0xff] %v4289_v4  ;;  %5013 = vst [vmem:[#allocation6_spill] sm:$0xff] %v4291_v39  ;;  %v3116_v27 = vpop.f32.mrb[51].mxu0  ;;  %v3226_v22 = vpop.f32.mrb[51].mxu1 }
 0x14c   :  { %v3583_v22 = vld [vmem:[%s4953_s0 + $0x200] sm:$0xff]  }
 0x14d   :  { %3342 = vmatmul.mubr.msk.bf16.gmra.mrb[156].mxu0 %vm226_vm3, %v3581_v46  ;;  %3452 = vmatmul.mubr.msk.bf16.gmra.mrb[156].mxu1 %vm226_vm3, %v3582_v16  ;;  %v3584_v46 = vld [vmem:[%s4953_s0 + $0x2c4] sm:$0xff]  }
 0x14e   :  { %3345 = vmatprep.mubr.msk.bf16.mxu0 %vm3604_vm0, %v4956_v0  ;;  %3455 = vmatprep.mubr.msk.bf16.mxu1 %vm3604_vm0, %v4956_v0 }
 0x150   :  { %v4301_v58 = vpop.f32.mrb[52].mxu0  ;;  %v4303_v51 = vpop.f32.mrb[52].mxu1 }
 0x151   :  { %5014 = vst [vmem:[#allocation7_spill] sm:$0xff] %v4301_v58  ;;  %5015 = vst [vmem:[#allocation8_spill] sm:$0xff] %v4303_v51  ;;  %v3119_v34 = vpop.f32.mrb[53].mxu0  ;;  %v3229_v27 = vpop.f32.mrb[53].mxu1 }
 0x152   :  { %v4313_v16 = vpop.f32.mrb[54].mxu0  ;;  %v4315_v15 = vpop.f32.mrb[54].mxu1  ;;  %v5018_v34 = vmov 0.0  }
 0x153   :  { %5016 = vst [vmem:[#allocation9_spill] sm:$0xff] %v4313_v16  ;;  %5017 = vst [vmem:[#allocation10_spill] sm:$0xff] %v4315_v15  ;;  %v3120_v3 = vpop.f32.mrb[55].mxu0  ;;  %v3230_v0 = vpop.f32.mrb[55].mxu1 }
 0x154   :  { %v3585_v0 = vld [vmem:[%s4953_s0 + $0x208] sm:$0xff]  }
 0x155   :  { %3346 = vmatmul.mubr.msk.bf16.gmra.mrb[160].mxu0 %vm226_vm3, %v3583_v22  ;;  %3456 = vmatmul.mubr.msk.bf16.gmra.mrb[160].mxu1 %vm226_vm3, %v3584_v46  ;;  %v3586_v22 = vld [vmem:[%s4953_s0 + $0x2cc] sm:$0xff]  }
 0x156   :  { %3349 = vmatprep.mubr.msk.bf16.mxu0 %vm3604_vm0, %v5018_v34  ;;  %3459 = vmatprep.mubr.msk.bf16.mxu1 %vm3604_vm0, %v5018_v34 }
 0x158   :  { %v4325_v27 = vpop.f32.mrb[56].mxu0  ;;  %v4327_v6 = vpop.f32.mrb[56].mxu1 }
 0x159   :  { %5019 = vst [vmem:[#allocation11_spill] sm:$0xff] %v4325_v27  ;;  %5020 = vst [vmem:[#allocation12_spill] sm:$0xff] %v4327_v6  ;;  %v3123_v10 = vpop.f32.mrb[57].mxu0  ;;  %v3233_v3 = vpop.f32.mrb[57].mxu1 }
 0x15a   :  { %v4337_v46 = vpop.f32.mrb[58].mxu0  ;;  %v4339_v15 = vpop.f32.mrb[58].mxu1 }
 0x15b   :  { %5021 = vst [vmem:[#allocation13_spill] sm:$0xff] %v4337_v46  ;;  %5022 = vst [vmem:[#allocation14_spill] sm:$0xff] %v4339_v15  ;;  %v3124_v58 = vpop.f32.mrb[59].mxu0  ;;  %v3234_v39 = vpop.f32.mrb[59].mxu1 }
 0x15c   :  { %v3587_v39 = vld [vmem:[%s4953_s0 + $0x210] sm:$0xff]  }
 0x15d   :  { %3350 = vmatmul.mubr.msk.bf16.gmra.mrb[164].mxu0 %vm226_vm3, %v3585_v0  ;;  %3460 = vmatmul.mubr.msk.bf16.gmra.mrb[164].mxu1 %vm226_vm3, %v3586_v22  ;;  %v3588_v0 = vld [vmem:[%s4953_s0 + $0x2d4] sm:$0xff]  }
 0x15e   :  { %3353 = vmatprep.mubr.msk.bf16.mxu0 %vm3604_vm0, %v5018_v34  ;;  %3463 = vmatprep.mubr.msk.bf16.mxu1 %vm3604_vm0, %v5018_v34 }
 0x160   :  { %v4349_v10 = vpop.f32.mrb[60].mxu0  ;;  %v4351_v3 = vpop.f32.mrb[60].mxu1 }
 0x161   :  { %5023 = vst [vmem:[#allocation15_spill] sm:$0xff] %v4349_v10  ;;  %5024 = vst [vmem:[#allocation16_spill] sm:$0xff] %v4351_v3  ;;  %v3127_v16 = vpop.f32.mrb[61].mxu0  ;;  %v3237_v58 = vpop.f32.mrb[61].mxu1 }
 0x162   :  { %v4361_v22 = vpop.f32.mrb[62].mxu0  ;;  %v4363_v15 = vpop.f32.mrb[62].mxu1 }
 0x163   :  { %5025 = vst [vmem:[#allocation17_spill] sm:$0xff] %v4361_v22  ;;  %5026 = vst [vmem:[#allocation18_spill] sm:$0xff] %v4363_v15  ;;  %v3128_v6 = vpop.f32.mrb[63].mxu0  ;;  %v3238_v27 = vpop.f32.mrb[63].mxu1 }
 0x164   :  { %v3589_v27 = vld [vmem:[%s4953_s0 + $0x218] sm:$0xff]  }
 0x165   :  { %3354 = vmatmul.mubr.msk.bf16.gmra.mrb[168].mxu0 %vm226_vm3, %v3587_v39  ;;  %3464 = vmatmul.mubr.msk.bf16.gmra.mrb[168].mxu1 %vm226_vm3, %v3588_v0  ;;  %v3590_v39 = vld [vmem:[%s4953_s0 + $0x2dc] sm:$0xff]  }
 0x166   :  { %3357 = vmatprep.mubr.msk.bf16.mxu0 %vm3604_vm0, %v5018_v34  ;;  %3467 = vmatprep.mubr.msk.bf16.mxu1 %vm3604_vm0, %v5018_v34 }
 0x168   :  { %v4373_v16 = vpop.f32.mrb[64].mxu0  ;;  %v4375_v58 = vpop.f32.mrb[64].mxu1 }
 0x169   :  { %5027 = vst [vmem:[#allocation19_spill] sm:$0xff] %v4373_v16  ;;  %5028 = vst [vmem:[#allocation20_spill] sm:$0xff] %v4375_v58  ;;  %v3131_v46 = vpop.f32.mrb[65].mxu0  ;;  %v3241_v6 = vpop.f32.mrb[65].mxu1 }
 0x16a   :  { %v4385_v0 = vpop.f32.mrb[66].mxu0  ;;  %v4387_v15 = vpop.f32.mrb[66].mxu1 }
 0x16b   :  { %5029 = vst [vmem:[#allocation21_spill] sm:$0xff] %v4385_v0  ;;  %5030 = vst [vmem:[#allocation22_spill] sm:$0xff] %v4387_v15  ;;  %v3132_v3 = vpop.f32.mrb[67].mxu0  ;;  %v3242_v10 = vpop.f32.mrb[67].mxu1 }
 0x16c   :  { %v3591_v10 = vld [vmem:[%s4953_s0 + $0x220] sm:$0xff]  }
 0x16d   :  { %3358 = vmatmul.mubr.msk.bf16.gmra.mrb[172].mxu0 %vm226_vm3, %v3589_v27  ;;  %3468 = vmatmul.mubr.msk.bf16.gmra.mrb[172].mxu1 %vm226_vm3, %v3590_v39  ;;  %v3592_v27 = vld [vmem:[%s4953_s0 + $0x2e4] sm:$0xff]  }
 0x16e   :  { %3361 = vmatprep.mubr.msk.bf16.mxu0 %vm3604_vm0, %v5018_v34  ;;  %3471 = vmatprep.mubr.msk.bf16.mxu1 %vm3604_vm0, %v5018_v34 }
 0x170   :  { %v4397_v46 = vpop.f32.mrb[68].mxu0  ;;  %v4399_v6 = vpop.f32.mrb[68].mxu1 }
 0x171   :  { %5031 = vst [vmem:[#allocation23_spill] sm:$0xff] %v4397_v46  ;;  %5032 = vst [vmem:[#allocation24_spill] sm:$0xff] %v4399_v6  ;;  %v3135_v22 = vpop.f32.mrb[69].mxu0  ;;  %v3245_v3 = vpop.f32.mrb[69].mxu1 }
 0x172   :  { %v4409_v39 = vpop.f32.mrb[70].mxu0  ;;  %v4411_v15 = vpop.f32.mrb[70].mxu1 }
 0x173   :  { %5033 = vst [vmem:[#allocation25_spill] sm:$0xff] %v4409_v39  ;;  %5034 = vst [vmem:[#allocation26_spill] sm:$0xff] %v4411_v15  ;;  %v3136_v58 = vpop.f32.mrb[71].mxu0  ;;  %v3246_v16 = vpop.f32.mrb[71].mxu1 }
 0x174   :  { %v3593_v16 = vld [vmem:[%s4953_s0 + $0x228] sm:$0xff]  }
 0x175   :  { %3362 = vmatmul.mubr.msk.bf16.gmra.mrb[176].mxu0 %vm226_vm3, %v3591_v10  ;;  %3472 = vmatmul.mubr.msk.bf16.gmra.mrb[176].mxu1 %vm226_vm3, %v3592_v27  ;;  %v3594_v10 = vld [vmem:[%s4953_s0 + $0x2ec] sm:$0xff]  }
 0x176   :  { %3365 = vmatprep.mubr.msk.bf16.mxu0 %vm3604_vm0, %v5018_v34  ;;  %3475 = vmatprep.mubr.msk.bf16.mxu1 %vm3604_vm0, %v5018_v34 }
 0x178   :  { %v4421_v22 = vpop.f32.mrb[72].mxu0  ;;  %v4423_v3 = vpop.f32.mrb[72].mxu1 }
 0x179   :  { %5035 = vst [vmem:[#allocation27_spill] sm:$0xff] %v4421_v22  ;;  %5036 = vst [vmem:[#allocation28_spill] sm:$0xff] %v4423_v3  ;;  %v3139_v0 = vpop.f32.mrb[73].mxu0  ;;  %v3249_v58 = vpop.f32.mrb[73].mxu1 }
 0x17a   :  { %v4433_v27 = vpop.f32.mrb[74].mxu0  ;;  %v4435_v15 = vpop.f32.mrb[74].mxu1 }
 0x17b   :  { %5037 = vst [vmem:[#allocation29_spill] sm:$0xff] %v4433_v27  ;;  %5038 = vst [vmem:[#allocation30_spill] sm:$0xff] %v4435_v15  ;;  %v3140_v6 = vpop.f32.mrb[75].mxu0  ;;  %v3250_v46 = vpop.f32.mrb[75].mxu1 }
 0x17c   :  { %v3595_v46 = vld [vmem:[%s4953_s0 + $0x230] sm:$0xff]  }
 0x17d   :  { %3366 = vmatmul.mubr.msk.bf16.gmra.mrb[180].mxu0 %vm226_vm3, %v3593_v16  ;;  %3476 = vmatmul.mubr.msk.bf16.gmra.mrb[180].mxu1 %vm226_vm3, %v3594_v10  ;;  %v3596_v16 = vld [vmem:[%s4953_s0 + $0x2f4] sm:$0xff]  }
 0x17e   :  { %3369 = vmatprep.mubr.msk.bf16.mxu0 %vm3604_vm0, %v5018_v34  ;;  %3479 = vmatprep.mubr.msk.bf16.mxu1 %vm3604_vm0, %v5018_v34 }
 0x180   :  { %v4445_v0 = vpop.f32.mrb[76].mxu0  ;;  %v4447_v58 = vpop.f32.mrb[76].mxu1 }
 0x181   :  { %5039 = vst [vmem:[#allocation31_spill] sm:$0xff] %v4445_v0  ;;  %5040 = vst [vmem:[#allocation32_spill] sm:$0xff] %v4447_v58  ;;  %v3143_v39 = vpop.f32.mrb[77].mxu0  ;;  %v3253_v6 = vpop.f32.mrb[77].mxu1 }
 0x182   :  { %v4457_v10 = vpop.f32.mrb[78].mxu0  ;;  %v4459_v15 = vpop.f32.mrb[78].mxu1 }
 0x183   :  { %5041 = vst [vmem:[#allocation33_spill] sm:$0xff] %v4457_v10  ;;  %5042 = vst [vmem:[#allocation34_spill] sm:$0xff] %v4459_v15  ;;  %v3144_v3 = vpop.f32.mrb[79].mxu0  ;;  %v3254_v22 = vpop.f32.mrb[79].mxu1 }
 0x184   :  { %v3597_v22 = vld [vmem:[%s4953_s0 + $0x238] sm:$0xff]  }
 0x185   :  { %3370 = vmatmul.mubr.msk.bf16.gmra.mrb[184].mxu0 %vm226_vm3, %v3595_v46  ;;  %3480 = vmatmul.mubr.msk.bf16.gmra.mrb[184].mxu1 %vm226_vm3, %v3596_v16  ;;  %v3598_v46 = vld [vmem:[%s4953_s0 + $0x2fc] sm:$0xff]  }
 0x186   :  { %3373 = vmatprep.mubr.msk.bf16.mxu0 %vm3604_vm0, %v5018_v34  ;;  %3483 = vmatprep.mubr.msk.bf16.mxu1 %vm3604_vm0, %v5018_v34 }
 0x188   :  { %v4469_v39 = vpop.f32.mrb[80].mxu0  ;;  %v4471_v6 = vpop.f32.mrb[80].mxu1 }
 0x189   :  { %5043 = vst [vmem:[#allocation35_spill] sm:$0xff] %v4469_v39  ;;  %5044 = vst [vmem:[#allocation36_spill] sm:$0xff] %v4471_v6  ;;  %v3147_v27 = vpop.f32.mrb[81].mxu0  ;;  %v3257_v3 = vpop.f32.mrb[81].mxu1 }
 0x18a   :  { %v4481_v16 = vpop.f32.mrb[82].mxu0  ;;  %v4483_v15 = vpop.f32.mrb[82].mxu1 }
 0x18b   :  { %5045 = vst [vmem:[#allocation37_spill] sm:$0xff] %v4481_v16  ;;  %5046 = vst [vmem:[#allocation38_spill] sm:$0xff] %v4483_v15  ;;  %v3148_v58 = vpop.f32.mrb[83].mxu0  ;;  %v3258_v0 = vpop.f32.mrb[83].mxu1 }
 0x18c   :  { %v3599_v0 = vld [vmem:[%s4953_s0 + $0x240] sm:$0xff]  }
 0x18d   :  { %3374 = vmatmul.mubr.msk.bf16.gmra.mrb[188].mxu0 %vm226_vm3, %v3597_v22  ;;  %3484 = vmatmul.mubr.msk.bf16.gmra.mrb[188].mxu1 %vm226_vm3, %v3598_v46  ;;  %v3600_v22 = vld [vmem:[%s4953_s0 + $0x304] sm:$0xff]  }
 0x18e   :  { %3377 = vmatprep.mubr.msk.bf16.mxu0 %vm3604_vm0, %v5018_v34  ;;  %3487 = vmatprep.mubr.msk.bf16.mxu1 %vm3604_vm0, %v5018_v34 }
 0x190   :  { %v4493_v27 = vpop.f32.mrb[84].mxu0  ;;  %v4495_v3 = vpop.f32.mrb[84].mxu1 }
 0x191   :  { %5047 = vst [vmem:[#allocation39_spill] sm:$0xff] %v4493_v27  ;;  %5048 = vst [vmem:[#allocation40_spill] sm:$0xff] %v4495_v3  ;;  %v3151_v10 = vpop.f32.mrb[85].mxu0  ;;  %v3261_v58 = vpop.f32.mrb[85].mxu1 }
 0x192   :  { %v4505_v46 = vpop.f32.mrb[86].mxu0  ;;  %v4507_v15 = vpop.f32.mrb[86].mxu1 }
 0x193   :  { %5049 = vst [vmem:[#allocation41_spill] sm:$0xff] %v4505_v46  ;;  %5050 = vst [vmem:[#allocation42_spill] sm:$0xff] %v4507_v15  ;;  %v3152_v6 = vpop.f32.mrb[87].mxu0  ;;  %v3262_v39 = vpop.f32.mrb[87].mxu1 }
 0x194   :  { %v3601_v39 = vld [vmem:[%s4953_s0 + $0x248] ss:$0 sps:$4 sm:$0xff]  }
 0x195   :  { %3378 = vmatmul.mubr.msk.bf16.gmra.mrb[192].mxu0 %vm226_vm3, %v3599_v0  ;;  %3488 = vmatmul.mubr.msk.bf16.gmra.mrb[192].mxu1 %vm226_vm3, %v3600_v22  ;;  %v3602_v0 = vld [vmem:[%s4953_s0 + $0x30c] ss:$0 sps:$4 sm:$0xff]  }
 0x196   :  { %3381 = vmatprep.mubr.msk.bf16.mxu0 %vm3604_vm0, %v5018_v34  ;;  %3491 = vmatprep.mubr.msk.bf16.mxu1 %vm3604_vm0, %v5018_v34 }
 0x198   :  { %v4517_v10 = vpop.f32.mrb[88].mxu0  ;;  %v4519_v58 = vpop.f32.mrb[88].mxu1 }
 0x199   :  { %5051 = vst [vmem:[#allocation43_spill] sm:$0xff] %v4517_v10  ;;  %5052 = vst [vmem:[#allocation44_spill] sm:$0xff] %v4519_v58  ;;  %v3155_v16 = vpop.f32.mrb[89].mxu0  ;;  %v3265_v6 = vpop.f32.mrb[89].mxu1 }
 0x19a   :  { %v4529_v22 = vpop.f32.mrb[90].mxu0  ;;  %v4531_v34 = vpop.f32.mrb[90].mxu1 }
 0x19b   :  { %5053 = vst [vmem:[#allocation45_spill] sm:$0xff] %v4529_v22  ;;  %5054 = vst [vmem:[#allocation46_spill] sm:$0xff] %v4531_v34  ;;  %v3156_v46 = vpop.f32.mrb[91].mxu0  ;;  %v3266_v3 = vpop.f32.mrb[91].mxu1 }
 0x19c   :  { %v5061_v3 = vmax.f32 %v3989_v1, %v3991_v2 }
 0x19d   :  { %3382 = vmatmul.mubr.msk.bf16.gmra.mrb[196].mxu0 %vm226_vm3, %v3601_v39  ;;  %3492 = vmatmul.mubr.msk.bf16.gmra.mrb[196].mxu1 %vm226_vm3, %v3602_v0 }
 0x1a0   :  { %v4537_v16 = vpop.f32.mrb[92].mxu0  ;;  %v4539_v6 = vpop.f32.mrb[92].mxu1 }
 0x1a1   :  { %5055 = vst [vmem:[#allocation47_spill] sm:$0xff] %v4537_v16  ;;  %5056 = vst [vmem:[#allocation48_spill] sm:$0xff] %v4539_v6  ;;  %v3159_v58 = vpop.f32.mrb[93].mxu0  ;;  %v3269_v10 = vpop.f32.mrb[93].mxu1 }
 0x1a2   :  { %v4543_v27 = vpop.f32.mrb[94].mxu0  ;;  %v4545_v4 = vpop.f32.mrb[94].mxu1 }
 0x1a3   :  { %5057 = vst [vmem:[#allocation49_spill] sm:$0xff] %v4543_v27  ;;  %5058 = vst [vmem:[#allocation50_spill] sm:$0xff] %v4545_v4  ;;  %v3160_v46 = vpop.f32.mrb[95].mxu0  ;;  %v3270_v39 = vpop.f32.mrb[95].mxu1  ;;  %v4561_v27 = vld [vmem:[%s4954_s2] ss:$0 sm:$0xff] }
 0x1a8   :  { %v4549_v15 = vpop.f32.mrb[96].mxu0  ;;  %v4551_v0 = vpop.f32.mrb[96].mxu1 }
 0x1a9   :  { %5059 = vst [vmem:[#allocation51_spill] sm:$0xff] %v4549_v15  ;;  %5060 = vst [vmem:[#allocation52_spill] sm:$0xff] %v4551_v0  ;;  %v3163_v22 = vpop.f32.mrb[97].mxu0  ;;  %v3273_v51 = vpop.f32.mrb[97].mxu1 }
 0x1aa   :  { %v538_v58 = vpop.f32.mrb[98].mxu0  ;;  %v1018_v10 = vpop.f32.mrb[98].mxu1 }
 0x1ab   :  { %v3164_v6 = vpop.f32.mrb[99].mxu0  ;;  %v3274_v16 = vpop.f32.mrb[99].mxu1 }
 0x1ac   :  { %v5062_v6 = vmax.f32 %v4001_v8, %v4003_v9 }
 0x1b0   :  { %v1352_v24 = vpop.f32.mrb[100].mxu0  ;;  %v1881_v40 = vpop.f32.mrb[100].mxu1 }
 0x1b1   :  { %v1550_v46 = vmax.f32 %v5061_v3, %v1352_v24  ;;  %v3287_v39 = vpop.f32.mrb[101].mxu0  ;;  %v3397_v4 = vpop.f32.mrb[101].mxu1 }
 0x1b2   :  { %v1355_v34 = vpop.f32.mrb[102].mxu0  ;;  %v1884_v22 = vpop.f32.mrb[102].mxu1 }
 0x1b3   :  { %v2079_v51 = vmax.f32 %v1550_v46, %v1881_v40  ;;  %v1551_v16 = vmax.f32 %v5062_v6, %v1355_v34  ;;  %v3288_v58 = vpop.f32.mrb[103].mxu0  ;;  %v3398_v10 = vpop.f32.mrb[103].mxu1  ;;  %v5063_v40 = vmax.f32 %v4013_v13, %v4015_v14 }
 0x1b5   :  { %v2135_v0 = vadd.f32 %v4561_v27, %v2079_v51  ;;  %v2080_v1 = vmax.f32 %v1551_v16, %v1884_v22  ;;  %v5064_v51 = vmax.f32 %v4025_v20, %v4027_v21  ;;  %v5065_v20 = vmax.f32 %v4037_v25, %v4039_v26 }
 0x1b7   :  { %v2184_v2 = vmax.f32 %v2135_v0, 0.0  ;;  %v2136_v24 = vadd.f32 %v4561_v27, %v2080_v1 }
 0x1b8   :  { %v1360_v4 = vpop.f32.mrb[104].mxu0  ;;  %v1889_v3 = vpop.f32.mrb[104].mxu1 }
 0x1b9   :  { %v2886_v39 = vpack.c.bf16 %v2184_v2, %v2184_v2  ;;  %v2185_v15 = vmax.f32 %v2136_v24, 0.0  ;;  %v1552_v46 = vmax.f32 %v5063_v40, %v1360_v4  ;;  %v3291_v63 = vpop.f32.mrb[105].mxu0  ;;  %v3401_v8 = vpop.f32.mrb[105].mxu1 }
 0x1ba   :  { %v1363_v9 = vpop.f32.mrb[106].mxu0  ;;  %v1892_v34 = vpop.f32.mrb[106].mxu1 }
 0x1bb   :  { %2431 = vst.msk [vmem:[%s4955_s3] sm:$0xf] %vm2430_vm4, %v2886_v39  ;;  %v2887_v0 = vpack.c.bf16 %v2185_v15, %v2185_v15  ;;  %v2081_v22 = vmax.f32 %v1552_v46, %v1889_v3  ;;  %v1553_v6 = vmax.f32 %v5064_v51, %v1363_v9  ;;  %v3292_v16 = vpop.f32.mrb[107].mxu0  ;;  %v3402_v58 = vpop.f32.mrb[107].mxu1  ;;  %v5066_v9 = vmax.f32 %v4049_v32, %v4051_v33 }
 0x1bc   :  { %v5067_v32 = vmax.f32 %v4061_v37, %v4063_v38 }
 0x1bd   :  { %2432 = vst.msk [vmem:[%s4955_s3 + $0x4] sm:$0xf] %vm2430_vm4, %v2887_v0  ;;  %v2137_v13 = vadd.f32 %v4561_v27, %v2081_v22  ;;  %v2082_v14 = vmax.f32 %v1553_v6, %v1892_v34 }
 0x1bf   :  { %v2186_v63 = vmax.f32 %v2137_v13, 0.0  ;;  %v2138_v10 = vadd.f32 %v4561_v27, %v2082_v14 }
 0x1c0   :  { %v1368_v1 = vpop.f32.mrb[108].mxu0  ;;  %v1897_v15 = vpop.f32.mrb[108].mxu1 }
 0x1c1   :  { %v2888_v2 = vpack.c.bf16 %v2186_v63, %v2186_v63  ;;  %v2187_v24 = vmax.f32 %v2138_v10, 0.0  ;;  %v1554_v21 = vmax.f32 %v5065_v20, %v1368_v1  ;;  %v3295_v4 = vpop.f32.mrb[109].mxu0  ;;  %v3405_v3 = vpop.f32.mrb[109].mxu1  ;;  %v5068_v20 = vmax.f32 %v4073_v44, %v4075_v45 }
 0x1c2   :  { %v1371_v39 = vpop.f32.mrb[110].mxu0  ;;  %v1900_v40 = vpop.f32.mrb[110].mxu1  ;;  %v5069_v44 = vmax.f32 %v4085_v49, %v4087_v50 }
 0x1c3   :  { %2433 = vst.msk [vmem:[%s4955_s3 + $0x8] sm:$0xf] %vm2430_vm4, %v2888_v2  ;;  %v2889_v46 = vpack.c.bf16 %v2187_v24, %v2187_v24  ;;  %v2083_v8 = vmax.f32 %v1554_v21, %v1897_v15  ;;  %v1555_v34 = vmax.f32 %v5066_v9, %v1371_v39  ;;  %v3296_v0 = vpop.f32.mrb[111].mxu0  ;;  %v3406_v22 = vpop.f32.mrb[111].mxu1 }
 0x1c5   :  { %2434 = vst.msk [vmem:[%s4955_s3 + $0xc] sm:$0xf] %vm2430_vm4, %v2889_v46  ;;  %v2139_v25 = vadd.f32 %v4561_v27, %v2083_v8  ;;  %v2084_v26 = vmax.f32 %v1555_v34, %v1900_v40 }
 0x1c7   :  { %v2188_v51 = vmax.f32 %v2139_v25, 0.0  ;;  %v2140_v6 = vadd.f32 %v4561_v27, %v2084_v26 }
 0x1c8   :  { %v1376_v16 = vpop.f32.mrb[112].mxu0  ;;  %v1905_v58 = vpop.f32.mrb[112].mxu1 }
 0x1c9   :  { %v2890_v13 = vpack.c.bf16 %v2188_v51, %v2188_v51  ;;  %v2189_v14 = vmax.f32 %v2140_v6, 0.0  ;;  %v1556_v33 = vmax.f32 %v5067_v32, %v1376_v16  ;;  %v3299_v63 = vpop.f32.mrb[113].mxu0  ;;  %v3409_v10 = vpop.f32.mrb[113].mxu1  ;;  %v5070_v16 = vmax.f32 %v4097_v56, %v4099_v57 }
 0x1ca   :  { %v1379_v1 = vpop.f32.mrb[114].mxu0  ;;  %v1908_v15 = vpop.f32.mrb[114].mxu1  ;;  %v5071_v56 = vmax.f32 %v4109_v61, %v4111_v62 }
 0x1cb   :  { %2435 = vst.msk [vmem:[%s4955_s3 + $0x10] sm:$0xf] %vm2430_vm4, %v2890_v13  ;;  %v2891_v2 = vpack.c.bf16 %v2189_v14, %v2189_v14  ;;  %v2085_v24 = vmax.f32 %v1556_v33, %v1905_v58  ;;  %v1557_v21 = vmax.f32 %v5068_v20, %v1379_v1  ;;  %v3300_v4 = vpop.f32.mrb[115].mxu0  ;;  %v3410_v3 = vpop.f32.mrb[115].mxu1 }
 0x1cd   :  { %2436 = vst.msk [vmem:[%s4955_s3 + $0x14] sm:$0xf] %vm2430_vm4, %v2891_v2  ;;  %v2141_v37 = vadd.f32 %v4561_v27, %v2085_v24  ;;  %v2086_v38 = vmax.f32 %v1557_v21, %v1908_v15 }
 0x1cf   :  { %v2190_v39 = vmax.f32 %v2141_v37, 0.0  ;;  %v2142_v40 = vadd.f32 %v4561_v27, %v2086_v38  ;;  %v5072_v37 = vmax.f32 %v4121_v11, %v4123_v12  ;;  %v5073_v11 = vmax.f32 %v4133_v19, %v4135_v23 }
 0x1d0   :  { %v1384_v46 = vpop.f32.mrb[116].mxu0  ;;  %v1913_v8 = vpop.f32.mrb[116].mxu1 }
 0x1d1   :  { %v2892_v9 = vpack.c.bf16 %v2190_v39, %v2190_v39  ;;  %v2191_v34 = vmax.f32 %v2142_v40, 0.0  ;;  %v1558_v45 = vmax.f32 %v5069_v44, %v1384_v46  ;;  %v3303_v0 = vpop.f32.mrb[117].mxu0  ;;  %v3413_v22 = vpop.f32.mrb[117].mxu1 }
 0x1d2   :  { %v1387_v25 = vpop.f32.mrb[118].mxu0  ;;  %v1916_v26 = vpop.f32.mrb[118].mxu1 }
 0x1d3   :  { %2437 = vst.msk [vmem:[%s4955_s3 + $0x18] sm:$0xf] %vm2430_vm4, %v2892_v9  ;;  %v2893_v51 = vpack.c.bf16 %v2191_v34, %v2191_v34  ;;  %v2087_v6 = vmax.f32 %v1558_v45, %v1913_v8  ;;  %v1559_v58 = vmax.f32 %v5070_v16, %v1387_v25  ;;  %v3304_v13 = vpop.f32.mrb[119].mxu0  ;;  %v3414_v14 = vpop.f32.mrb[119].mxu1  ;;  %v5074_v16 = vmax.f32 %v4145_v35, %v4147_v36 }
 0x1d4   :  { %v5075_v35 = vmax.f32 %v4157_v43, %v4159_v47 }
 0x1d5   :  { %2438 = vst.msk [vmem:[%s4955_s3 + $0x1c] sm:$0xf] %vm2430_vm4, %v2893_v51  ;;  %v2143_v49 = vadd.f32 %v4561_v27, %v2087_v6  ;;  %v2088_v50 = vmax.f32 %v1559_v58, %v1916_v26 }
 0x1d7   :  { %v2192_v32 = vmax.f32 %v2143_v49, 0.0  ;;  %v2144_v33 = vadd.f32 %v4561_v27, %v2088_v50 }
 0x1d8   :  { %v1392_v63 = vpop.f32.mrb[120].mxu0  ;;  %v1921_v10 = vpop.f32.mrb[120].mxu1 }
 0x1d9   :  { %v2894_v1 = vpack.c.bf16 %v2192_v32, %v2192_v32  ;;  %v2193_v15 = vmax.f32 %v2144_v33, 0.0  ;;  %v1560_v57 = vmax.f32 %v5071_v56, %v1392_v63  ;;  %v3307_v2 = vpop.f32.mrb[121].mxu0  ;;  %v3417_v24 = vpop.f32.mrb[121].mxu1 }
 0x1da   :  { %v1395_v20 = vpop.f32.mrb[122].mxu0  ;;  %v1924_v21 = vpop.f32.mrb[122].mxu1 }
 0x1db   :  { %2439 = vst.msk [vmem:[%s4955_s3 + $0x20] sm:$0xf] %vm2430_vm4, %v2894_v1  ;;  %v2895_v4 = vpack.c.bf16 %v2193_v15, %v2193_v15  ;;  %v2089_v3 = vmax.f32 %v1560_v57, %v1921_v10  ;;  %v1561_v38 = vmax.f32 %v5072_v37, %v1395_v20  ;;  %v3308_v39 = vpop.f32.mrb[123].mxu0  ;;  %v3418_v40 = vpop.f32.mrb[123].mxu1  ;;  %v5076_v20 = vmax.f32 %v4169_v59, %v4171_v60 }
 0x1dc   :  { %v5077_v59 = vmax.f32 %v4181_v7, %v4183_v17 }
 0x1dd   :  { %2440 = vst.msk [vmem:[%s4955_s3 + $0x24] sm:$0xf] %vm2430_vm4, %v2895_v4  ;;  %v2145_v61 = vadd.f32 %v4561_v27, %v2089_v3  ;;  %v2090_v62 = vmax.f32 %v1561_v38, %v1924_v21 }
 0x1df   :  { %v2194_v46 = vmax.f32 %v2145_v61, 0.0  ;;  %v2146_v8 = vadd.f32 %v4561_v27, %v2090_v62 }
 0x1e0   :  { %v1400_v9 = vpop.f32.mrb[124].mxu0  ;;  %v1929_v34 = vpop.f32.mrb[124].mxu1 }
 0x1e1   :  { %v2896_v44 = vpack.c.bf16 %v2194_v46, %v2194_v46  ;;  %v2195_v45 = vmax.f32 %v2146_v8, 0.0  ;;  %v1562_v12 = vmax.f32 %v5073_v11, %v1400_v9  ;;  %v3311_v0 = vpop.f32.mrb[125].mxu0  ;;  %v3421_v22 = vpop.f32.mrb[125].mxu1  ;;  %v5078_v11 = vmax.f32 %v4193_v41, %v4195_v42 }
 0x1e2   :  { %v1403_v25 = vpop.f32.mrb[126].mxu0  ;;  %v1932_v26 = vpop.f32.mrb[126].mxu1  ;;  %v5079_v41 = vmax.f32 %v4205_v55, %v4207_v5 }
 0x1e3   :  { %2441 = vst.msk [vmem:[%s4955_s3 + $0x28] sm:$0xf] %vm2430_vm4, %v2896_v44  ;;  %v2897_v51 = vpack.c.bf16 %v2195_v45, %v2195_v45  ;;  %v2091_v6 = vmax.f32 %v1562_v12, %v1929_v34  ;;  %v1563_v58 = vmax.f32 %v5074_v16, %v1403_v25  ;;  %v3312_v13 = vpop.f32.mrb[127].mxu0  ;;  %v3422_v14 = vpop.f32.mrb[127].mxu1 }
 0x1e5   :  { %2442 = vst.msk [vmem:[%s4955_s3 + $0x2c] sm:$0xf] %vm2430_vm4, %v2897_v51  ;;  %v2147_v19 = vadd.f32 %v4561_v27, %v2091_v6  ;;  %v2092_v23 = vmax.f32 %v1563_v58, %v1932_v26 }
 0x1e7   :  { %v2196_v49 = vmax.f32 %v2147_v19, 0.0  ;;  %v2148_v50 = vadd.f32 %v4561_v27, %v2092_v23 }
 0x1e8   :  { %v1408_v32 = vpop.f32.mrb[128].mxu0  ;;  %v1937_v33 = vpop.f32.mrb[128].mxu1 }
 0x1e9   :  { %v2898_v63 = vpack.c.bf16 %v2196_v49, %v2196_v49  ;;  %v2197_v10 = vmax.f32 %v2148_v50, 0.0  ;;  %v1564_v36 = vmax.f32 %v5075_v35, %v1408_v32  ;;  %v3315_v1 = vpop.f32.mrb[129].mxu0  ;;  %v3425_v15 = vpop.f32.mrb[129].mxu1  ;;  %v5080_v32 = vmax.f32 %v4217_v53, %v4219_v54 }
 0x1ea   :  { %v1411_v56 = vpop.f32.mrb[130].mxu0  ;;  %v1940_v57 = vpop.f32.mrb[130].mxu1  ;;  %v5081_v53 = vmax.f32 %v4229_v28, %v4231_v29 }
 0x1eb   :  { %2443 = vst.msk [vmem:[%s4955_s3 + $0x30] sm:$0xf] %vm2430_vm4, %v2898_v63  ;;  %v2899_v2 = vpack.c.bf16 %v2197_v10, %v2197_v10  ;;  %v2093_v24 = vmax.f32 %v1564_v36, %v1937_v33  ;;  %v1565_v21 = vmax.f32 %v5076_v20, %v1411_v56  ;;  %v3316_v4 = vpop.f32.mrb[131].mxu0  ;;  %v3426_v3 = vpop.f32.mrb[131].mxu1 }
 0x1ed   :  { %2444 = vst.msk [vmem:[%s4955_s3 + $0x34] sm:$0xf] %vm2430_vm4, %v2899_v2  ;;  %v2149_v43 = vadd.f32 %v4561_v27, %v2093_v24  ;;  %v2094_v47 = vmax.f32 %v1565_v21, %v1940_v57 }
 0x1ef   :  { %v2198_v37 = vmax.f32 %v2149_v43, 0.0  ;;  %v2150_v38 = vadd.f32 %v4561_v27, %v2094_v47  ;;  %v5082_v43 = vmax.f32 %v4241_v31, %v4243_v48  ;;  %v5083_v48 = vmax.f32 %v4253_v52, %v4255_v18 }
 0x1f0   :  { %v1416_v39 = vpop.f32.mrb[132].mxu0  ;;  %v1945_v40 = vpop.f32.mrb[132].mxu1 }
 0x1f1   :  { %v2900_v61 = vpack.c.bf16 %v2198_v37, %v2198_v37  ;;  %v2199_v62 = vmax.f32 %v2150_v38, 0.0  ;;  %v1566_v60 = vmax.f32 %v5077_v59, %v1416_v39  ;;  %v3319_v46 = vpop.f32.mrb[133].mxu0  ;;  %v3429_v8 = vpop.f32.mrb[133].mxu1 }
 0x1f2   :  { %v1419_v9 = vpop.f32.mrb[134].mxu0  ;;  %v1948_v34 = vpop.f32.mrb[134].mxu1 }
 0x1f3   :  { %2445 = vst.msk [vmem:[%s4955_s3 + $0x38] sm:$0xf] %vm2430_vm4, %v2900_v61  ;;  %v2901_v44 = vpack.c.bf16 %v2199_v62, %v2199_v62  ;;  %v2095_v45 = vmax.f32 %v1566_v60, %v1945_v40  ;;  %v1567_v12 = vmax.f32 %v5078_v11, %v1419_v9  ;;  %v3320_v0 = vpop.f32.mrb[135].mxu0  ;;  %v3430_v22 = vpop.f32.mrb[135].mxu1  ;;  %v5084_v11 = vld [vmem:[#allocation2_spill] sm:$0xff] }
 0x1f5   :  { %2446 = vst.msk [vmem:[%s4955_s3 + $0x3c] sm:$0xf] %vm2430_vm4, %v2901_v44  ;;  %v2151_v7 = vadd.f32 %v4561_v27, %v2095_v45  ;;  %v2096_v17 = vmax.f32 %v1567_v12, %v1948_v34  ;;  %v5085_v12 = vmax.f32 %v4265_v30, %v5084_v11  ;;  %v5087_v30 = vld [vmem:[#allocation4_spill] sm:$0xff] }
 0x1f7   :  { %v2200_v25 = vmax.f32 %v2151_v7, 0.0  ;;  %v2152_v26 = vadd.f32 %v4561_v27, %v2096_v17 }
 0x1f8   :  { %v1424_v51 = vpop.f32.mrb[136].mxu0  ;;  %v1953_v6 = vpop.f32.mrb[136].mxu1 }
 0x1f9   :  { %v2902_v16 = vpack.c.bf16 %v2200_v25, %v2200_v25  ;;  %v2201_v58 = vmax.f32 %v2152_v26, 0.0  ;;  %v1568_v42 = vmax.f32 %v5079_v41, %v1424_v51  ;;  %v3323_v13 = vpop.f32.mrb[137].mxu0  ;;  %v3433_v14 = vpop.f32.mrb[137].mxu1 }
 0x1fa   :  { %v1427_v19 = vpop.f32.mrb[138].mxu0  ;;  %v1956_v23 = vpop.f32.mrb[138].mxu1 }
 0x1fb   :  { %2447 = vst.msk [vmem:[%s4955_s3 + $0x40] sm:$0xf] %vm2430_vm4, %v2902_v16  ;;  %v2903_v49 = vpack.c.bf16 %v2201_v58, %v2201_v58  ;;  %v2097_v50 = vmax.f32 %v1568_v42, %v1953_v6  ;;  %v1569_v33 = vmax.f32 %v5080_v32, %v1427_v19  ;;  %v3324_v63 = vpop.f32.mrb[139].mxu0  ;;  %v3434_v10 = vpop.f32.mrb[139].mxu1  ;;  %v5086_v58 = vld [vmem:[#allocation3_spill] sm:$0xff]  ;;  %v5089_v32 = vld [vmem:[#allocation5_spill] sm:$0xff] }
 0x1fc   :  { %v5088_v41 = vmax.f32 %v5086_v58, %v5087_v30 }
 0x1fd   :  { %2448 = vst.msk [vmem:[%s4955_s3 + $0x44] sm:$0xf] %vm2430_vm4, %v2903_v49  ;;  %v2153_v55 = vadd.f32 %v4561_v27, %v2097_v50  ;;  %v2098_v5 = vmax.f32 %v1569_v33, %v1956_v23  ;;  %v5090_v33 = vld [vmem:[#allocation6_spill] sm:$0xff] }
 0x1fe   :  { %v5091_v63 = vmax.f32 %v5089_v32, %v5090_v33  ;;  %v5105_v32 = vld [vmem:[#allocation16_spill] sm:$0xff] }
 0x1ff   :  { %v2202_v35 = vmax.f32 %v2153_v55, 0.0  ;;  %v2154_v36 = vadd.f32 %v4561_v27, %v2098_v5 }
 0x200   :  { %v1432_v1 = vpop.f32.mrb[140].mxu0  ;;  %v1961_v15 = vpop.f32.mrb[140].mxu1 }
 0x201   :  { %v2904_v56 = vpack.c.bf16 %v2202_v35, %v2202_v35  ;;  %v2203_v57 = vmax.f32 %v2154_v36, 0.0  ;;  %v1570_v54 = vmax.f32 %v5081_v53, %v1432_v1  ;;  %v3327_v2 = vpop.f32.mrb[141].mxu0  ;;  %v3437_v24 = vpop.f32.mrb[141].mxu1 }
 0x202   :  { %v1435_v20 = vpop.f32.mrb[142].mxu0  ;;  %v1964_v21 = vpop.f32.mrb[142].mxu1  ;;  %v5092_v2 = vld [vmem:[#allocation7_spill] sm:$0xff]  ;;  %v5093_v24 = vld [vmem:[#allocation8_spill] sm:$0xff] }
 0x203   :  { %2449 = vst.msk [vmem:[%s4955_s3 + $0x48] sm:$0xf] %vm2430_vm4, %v2904_v56  ;;  %v2905_v4 = vpack.c.bf16 %v2203_v57, %v2203_v57  ;;  %v2099_v3 = vmax.f32 %v1570_v54, %v1961_v15  ;;  %v1571_v47 = vmax.f32 %v5082_v43, %v1435_v20  ;;  %v3328_v37 = vpop.f32.mrb[143].mxu0  ;;  %v3438_v38 = vpop.f32.mrb[143].mxu1  ;;  %v5094_v20 = vmax.f32 %v5092_v2, %v5093_v24 }
 0x205   :  { %2450 = vst.msk [vmem:[%s4955_s3 + $0x4c] sm:$0xf] %vm2430_vm4, %v2905_v4  ;;  %v2155_v28 = vadd.f32 %v4561_v27, %v2099_v3  ;;  %v2100_v29 = vmax.f32 %v1571_v47, %v1964_v21 }
 0x207   :  { %v2204_v39 = vmax.f32 %v2155_v28, 0.0  ;;  %v2156_v40 = vadd.f32 %v4561_v27, %v2100_v29  ;;  %v5095_v28 = vld [vmem:[#allocation9_spill] sm:$0xff]  ;;  %v5096_v29 = vld [vmem:[#allocation10_spill] sm:$0xff] }
 0x208   :  { %v1440_v61 = vpop.f32.mrb[144].mxu0  ;;  %v1969_v62 = vpop.f32.mrb[144].mxu1 }
 0x209   :  { %v2906_v59 = vpack.c.bf16 %v2204_v39, %v2204_v39  ;;  %v2205_v60 = vmax.f32 %v2156_v40, 0.0  ;;  %v1572_v31 = vmax.f32 %v5083_v48, %v1440_v61  ;;  %v3331_v46 = vpop.f32.mrb[145].mxu0  ;;  %v3441_v8 = vpop.f32.mrb[145].mxu1  ;;  %v5097_v39 = vmax.f32 %v5095_v28, %v5096_v29  ;;  %v5111_v28 = vld [vmem:[#allocation20_spill] sm:$0xff] }
 0x20a   :  { %v1443_v9 = vpop.f32.mrb[146].mxu0  ;;  %v1972_v34 = vpop.f32.mrb[146].mxu1 }
 0x20b   :  { %2451 = vst.msk [vmem:[%s4955_s3 + $0x50] sm:$0xf] %vm2430_vm4, %v2906_v59  ;;  %v2907_v44 = vpack.c.bf16 %v2205_v60, %v2205_v60  ;;  %v2101_v45 = vmax.f32 %v1572_v31, %v1969_v62  ;;  %v1573_v0 = vmax.f32 %v5085_v12, %v1443_v9  ;;  %v3332_v22 = vpop.f32.mrb[147].mxu0  ;;  %v3442_v7 = vpop.f32.mrb[147].mxu1 }
 0x20d   :  { %2452 = vst.msk [vmem:[%s4955_s3 + $0x54] sm:$0xf] %vm2430_vm4, %v2907_v44  ;;  %v2157_v52 = vadd.f32 %v4561_v27, %v2101_v45  ;;  %v2102_v18 = vmax.f32 %v1573_v0, %v1972_v34  ;;  %v5098_v44 = vld [vmem:[#allocation11_spill] sm:$0xff]  ;;  %v5099_v45 = vld [vmem:[#allocation12_spill] sm:$0xff] }
 0x20e   :  { %v5100_v11 = vmax.f32 %v5098_v44, %v5099_v45 }
 0x20f   :  { %v2206_v17 = vmax.f32 %v2157_v52, 0.0  ;;  %v2158_v25 = vadd.f32 %v4561_v27, %v2102_v18 }
 0x210   :  { %v1448_v26 = vpop.f32.mrb[148].mxu0  ;;  %v1977_v51 = vpop.f32.mrb[148].mxu1 }
 0x211   :  { %v2908_v6 = vpack.c.bf16 %v2206_v17, %v2206_v17  ;;  %v2207_v16 = vmax.f32 %v2158_v25, 0.0  ;;  %v1574_v42 = vmax.f32 %v5088_v41, %v1448_v26  ;;  %v3335_v13 = vpop.f32.mrb[149].mxu0  ;;  %v3445_v14 = vpop.f32.mrb[149].mxu1  ;;  %v5101_v25 = vld [vmem:[#allocation13_spill] sm:$0xff]  ;;  %v5102_v26 = vld [vmem:[#allocation14_spill] sm:$0xff] }
 0x212   :  { %v1451_v19 = vpop.f32.mrb[150].mxu0  ;;  %v1980_v23 = vpop.f32.mrb[150].mxu1 }
 0x213   :  { %2453 = vst.msk [vmem:[%s4955_s3 + $0x58] sm:$0xf] %vm2430_vm4, %v2908_v6  ;;  %v2909_v49 = vpack.c.bf16 %v2207_v16, %v2207_v16  ;;  %v2103_v50 = vmax.f32 %v1574_v42, %v1977_v51  ;;  %v1575_v10 = vmax.f32 %v5091_v63, %v1451_v19  ;;  %v3336_v55 = vpop.f32.mrb[151].mxu0  ;;  %v3446_v5 = vpop.f32.mrb[151].mxu1  ;;  %v5103_v51 = vmax.f32 %v5101_v25, %v5102_v26  ;;  %v5117_v25 = vld [vmem:[#allocation24_spill] sm:$0xff] }
 0x215   :  { %2454 = vst.msk [vmem:[%s4955_s3 + $0x5c] sm:$0xf] %vm2430_vm4, %v2909_v49  ;;  %v2159_v35 = vadd.f32 %v4561_v27, %v2103_v50  ;;  %v2104_v36 = vmax.f32 %v1575_v10, %v1980_v23  ;;  %v5104_v50 = vld [vmem:[#allocation15_spill] sm:$0xff] }
 0x216   :  { %v5106_v33 = vmax.f32 %v5104_v50, %v5105_v32 }
 0x217   :  { %v2208_v1 = vmax.f32 %v2159_v35, 0.0  ;;  %v2160_v15 = vadd.f32 %v4561_v27, %v2104_v36 }
 0x218   :  { %v1456_v56 = vpop.f32.mrb[152].mxu0  ;;  %v1985_v57 = vpop.f32.mrb[152].mxu1 }
 0x219   :  { %v2910_v53 = vpack.c.bf16 %v2208_v1, %v2208_v1  ;;  %v2209_v54 = vmax.f32 %v2160_v15, 0.0  ;;  %v1576_v21 = vmax.f32 %v5094_v20, %v1456_v56  ;;  %v3339_v4 = vpop.f32.mrb[153].mxu0  ;;  %v3449_v3 = vpop.f32.mrb[153].mxu1  ;;  %v5107_v15 = vld [vmem:[#allocation17_spill] sm:$0xff]  ;;  %v5108_v56 = vld [vmem:[#allocation18_spill] sm:$0xff] }
 0x21a   :  { %v1459_v43 = vpop.f32.mrb[154].mxu0  ;;  %v1988_v47 = vpop.f32.mrb[154].mxu1 }
 0x21b   :  { %2455 = vst.msk [vmem:[%s4955_s3 + $0x60] sm:$0xf] %vm2430_vm4, %v2910_v53  ;;  %v2911_v37 = vpack.c.bf16 %v2209_v54, %v2209_v54  ;;  %v2105_v38 = vmax.f32 %v1576_v21, %v1985_v57  ;;  %v1577_v40 = vmax.f32 %v5097_v39, %v1459_v43  ;;  %v3340_v61 = vpop.f32.mrb[155].mxu0  ;;  %v3450_v62 = vpop.f32.mrb[155].mxu1  ;;  %v5109_v57 = vmax.f32 %v5107_v15, %v5108_v56  ;;  %v5123_v15 = vld [vmem:[#allocation28_spill] sm:$0xff] }
 0x21d   :  { %2456 = vst.msk [vmem:[%s4955_s3 + $0x64] sm:$0xf] %vm2430_vm4, %v2911_v37  ;;  %v2161_v59 = vadd.f32 %v4561_v27, %v2105_v38  ;;  %v2106_v60 = vmax.f32 %v1577_v40, %v1988_v47  ;;  %v5110_v38 = vld [vmem:[#allocation19_spill] sm:$0xff] }
 0x21e   :  { %v5112_v29 = vmax.f32 %v5110_v38, %v5111_v28 }
 0x21f   :  { %v2210_v48 = vmax.f32 %v2161_v59, 0.0  ;;  %v2162_v31 = vadd.f32 %v4561_v27, %v2106_v60 }
 0x220   :  { %v1464_v46 = vpop.f32.mrb[156].mxu0  ;;  %v1993_v8 = vpop.f32.mrb[156].mxu1 }
 0x221   :  { %v2912_v9 = vpack.c.bf16 %v2210_v48, %v2210_v48  ;;  %v2211_v34 = vmax.f32 %v2162_v31, 0.0  ;;  %v1578_v12 = vmax.f32 %v5100_v11, %v1464_v46  ;;  %v3343_v0 = vpop.f32.mrb[157].mxu0  ;;  %v3453_v22 = vpop.f32.mrb[157].mxu1  ;;  %v5113_v31 = vld [vmem:[#allocation21_spill] sm:$0xff]  ;;  %v5114_v46 = vld [vmem:[#allocation22_spill] sm:$0xff] }
 0x222   :  { %v1467_v7 = vpop.f32.mrb[158].mxu0  ;;  %v1996_v52 = vpop.f32.mrb[158].mxu1 }
 0x223   :  { %2457 = vst.msk [vmem:[%s4955_s3 + $0x68] sm:$0xf] %vm2430_vm4, %v2912_v9  ;;  %v2913_v18 = vpack.c.bf16 %v2211_v34, %v2211_v34  ;;  %v2107_v17 = vmax.f32 %v1578_v12, %v1993_v8  ;;  %v1579_v6 = vmax.f32 %v5103_v51, %v1467_v7  ;;  %v3344_v16 = vpop.f32.mrb[159].mxu0  ;;  %v3454_v58 = vpop.f32.mrb[159].mxu1  ;;  %v5115_v8 = vmax.f32 %v5113_v31, %v5114_v46  ;;  %v5129_v31 = vld [vmem:[#allocation32_spill] sm:$0xff] }
 0x225   :  { %2458 = vst.msk [vmem:[%s4955_s3 + $0x6c] sm:$0xf] %vm2430_vm4, %v2913_v18  ;;  %v2163_v30 = vadd.f32 %v4561_v27, %v2107_v17  ;;  %v2108_v41 = vmax.f32 %v1579_v6, %v1996_v52  ;;  %v5116_v17 = vld [vmem:[#allocation23_spill] sm:$0xff] }
 0x226   :  { %v5118_v26 = vmax.f32 %v5116_v17, %v5117_v25 }
 0x227   :  { %v2212_v42 = vmax.f32 %v2163_v30, 0.0  ;;  %v2164_v13 = vadd.f32 %v4561_v27, %v2108_v41 }
 0x228   :  { %v1472_v14 = vpop.f32.mrb[160].mxu0  ;;  %v2001_v19 = vpop.f32.mrb[160].mxu1 }
 0x229   :  { %v2914_v23 = vpack.c.bf16 %v2212_v42, %v2212_v42  ;;  %v2213_v49 = vmax.f32 %v2164_v13, 0.0  ;;  %v1580_v63 = vmax.f32 %v5106_v33, %v1472_v14  ;;  %v3347_v10 = vpop.f32.mrb[161].mxu0  ;;  %v3457_v55 = vpop.f32.mrb[161].mxu1  ;;  %v5119_v13 = vld [vmem:[#allocation25_spill] sm:$0xff]  ;;  %v5120_v14 = vld [vmem:[#allocation26_spill] sm:$0xff] }
 0x22a   :  { %v1475_v5 = vpop.f32.mrb[162].mxu0  ;;  %v2004_v35 = vpop.f32.mrb[162].mxu1 }
 0x22b   :  { %2459 = vst.msk [vmem:[%s4955_s3 + $0x70] sm:$0xf] %vm2430_vm4, %v2914_v23  ;;  %v2915_v36 = vpack.c.bf16 %v2213_v49, %v2213_v49  ;;  %v2109_v1 = vmax.f32 %v1580_v63, %v2001_v19  ;;  %v1581_v53 = vmax.f32 %v5109_v57, %v1475_v5  ;;  %v3348_v54 = vpop.f32.mrb[163].mxu0  ;;  %v3458_v2 = vpop.f32.mrb[163].mxu1  ;;  %v5121_v19 = vmax.f32 %v5119_v13, %v5120_v14  ;;  %v5135_v13 = vld [vmem:[#allocation36_spill] sm:$0xff] }
 0x22d   :  { %2460 = vst.msk [vmem:[%s4955_s3 + $0x74] sm:$0xf] %vm2430_vm4, %v2915_v36  ;;  %v2165_v24 = vadd.f32 %v4561_v27, %v2109_v1  ;;  %v2110_v20 = vmax.f32 %v1581_v53, %v2004_v35  ;;  %v5122_v1 = vld [vmem:[#allocation27_spill] sm:$0xff] }
 0x22e   :  { %v5124_v56 = vmax.f32 %v5122_v1, %v5123_v15 }
 0x22f   :  { %v2214_v21 = vmax.f32 %v2165_v24, 0.0  ;;  %v2166_v4 = vadd.f32 %v4561_v27, %v2110_v20 }
 0x230   :  { %v1480_v3 = vpop.f32.mrb[164].mxu0  ;;  %v2009_v43 = vpop.f32.mrb[164].mxu1 }
 0x231   :  { %v2916_v47 = vpack.c.bf16 %v2214_v21, %v2214_v21  ;;  %v2215_v37 = vmax.f32 %v2166_v4, 0.0  ;;  %v1582_v39 = vmax.f32 %v5112_v29, %v1480_v3  ;;  %v3351_v40 = vpop.f32.mrb[165].mxu0  ;;  %v3461_v61 = vpop.f32.mrb[165].mxu1  ;;  %v5125_v4 = vld [vmem:[#allocation29_spill] sm:$0xff]  ;;  %v5126_v3 = vld [vmem:[#allocation30_spill] sm:$0xff] }
 0x232   :  { %v1483_v62 = vpop.f32.mrb[166].mxu0  ;;  %v2012_v59 = vpop.f32.mrb[166].mxu1 }
 0x233   :  { %2461 = vst.msk [vmem:[%s4955_s3 + $0x78] sm:$0xf] %vm2430_vm4, %v2916_v47  ;;  %v2917_v60 = vpack.c.bf16 %v2215_v37, %v2215_v37  ;;  %v2111_v48 = vmax.f32 %v1582_v39, %v2009_v43  ;;  %v1583_v9 = vmax.f32 %v5115_v8, %v1483_v62  ;;  %v3352_v34 = vpop.f32.mrb[167].mxu0  ;;  %v3462_v44 = vpop.f32.mrb[167].mxu1  ;;  %v5127_v43 = vmax.f32 %v5125_v4, %v5126_v3  ;;  %v5141_v4 = vld [vmem:[#allocation40_spill] sm:$0xff] }
 0x235   :  { %2462 = vst.msk [vmem:[%s4955_s3 + $0x7c] sm:$0xf] %vm2430_vm4, %v2917_v60  ;;  %v2167_v45 = vadd.f32 %v4561_v27, %v2111_v48  ;;  %v2112_v11 = vmax.f32 %v1583_v9, %v2012_v59  ;;  %v5128_v48 = vld [vmem:[#allocation31_spill] sm:$0xff] }
 0x236   :  { %v5130_v46 = vmax.f32 %v5128_v48, %v5129_v31 }
 0x237   :  { %v2216_v12 = vmax.f32 %v2167_v45, 0.0  ;;  %v2168_v0 = vadd.f32 %v4561_v27, %v2112_v11 }
 0x238   :  { %v1488_v22 = vpop.f32.mrb[168].mxu0  ;;  %v2017_v7 = vpop.f32.mrb[168].mxu1 }
 0x239   :  { %v2918_v52 = vpack.c.bf16 %v2216_v12, %v2216_v12  ;;  %v2217_v18 = vmax.f32 %v2168_v0, 0.0  ;;  %v1584_v51 = vmax.f32 %v5118_v26, %v1488_v22  ;;  %v3355_v6 = vpop.f32.mrb[169].mxu0  ;;  %v3465_v16 = vpop.f32.mrb[169].mxu1  ;;  %v5131_v0 = vld [vmem:[#allocation33_spill] sm:$0xff]  ;;  %v5132_v22 = vld [vmem:[#allocation34_spill] sm:$0xff] }
 0x23a   :  { %v1491_v58 = vpop.f32.mrb[170].mxu0  ;;  %v2020_v30 = vpop.f32.mrb[170].mxu1 }
 0x23b   :  { %2463 = vst.msk [vmem:[%s4955_s3 + $0x80] sm:$0xf] %vm2430_vm4, %v2918_v52  ;;  %v2919_v41 = vpack.c.bf16 %v2217_v18, %v2217_v18  ;;  %v2113_v42 = vmax.f32 %v1584_v51, %v2017_v7  ;;  %v1585_v23 = vmax.f32 %v5121_v19, %v1491_v58  ;;  %v3356_v49 = vpop.f32.mrb[171].mxu0  ;;  %v3466_v50 = vpop.f32.mrb[171].mxu1  ;;  %v5133_v7 = vmax.f32 %v5131_v0, %v5132_v22  ;;  %v5147_v0 = vld [vmem:[#allocation44_spill] sm:$0xff] }
 0x23d   :  { %2464 = vst.msk [vmem:[%s4955_s3 + $0x84] sm:$0xf] %vm2430_vm4, %v2919_v41  ;;  %v2169_v32 = vadd.f32 %v4561_v27, %v2113_v42  ;;  %v2114_v33 = vmax.f32 %v1585_v23, %v2020_v30  ;;  %v5134_v42 = vld [vmem:[#allocation35_spill] sm:$0xff] }
 0x23e   :  { %v5136_v14 = vmax.f32 %v5134_v42, %v5135_v13 }
 0x23f   :  { %v2218_v63 = vmax.f32 %v2169_v32, 0.0  ;;  %v2170_v10 = vadd.f32 %v4561_v27, %v2114_v33 }
 0x240   :  { %v1496_v55 = vpop.f32.mrb[172].mxu0  ;;  %v2025_v5 = vpop.f32.mrb[172].mxu1 }
 0x241   :  { %v2920_v35 = vpack.c.bf16 %v2218_v63, %v2218_v63  ;;  %v2219_v36 = vmax.f32 %v2170_v10, 0.0  ;;  %v1586_v57 = vmax.f32 %v5124_v56, %v1496_v55  ;;  %v3359_v53 = vpop.f32.mrb[173].mxu0  ;;  %v3469_v54 = vpop.f32.mrb[173].mxu1  ;;  %v5137_v10 = vld [vmem:[#allocation37_spill] sm:$0xff]  ;;  %v5138_v55 = vld [vmem:[#allocation38_spill] sm:$0xff] }
 0x242   :  { %v1499_v2 = vpop.f32.mrb[174].mxu0  ;;  %v2028_v24 = vpop.f32.mrb[174].mxu1 }
 0x243   :  { %2465 = vst.msk [vmem:[%s4955_s3 + $0x88] sm:$0xf] %vm2430_vm4, %v2920_v35  ;;  %v2921_v20 = vpack.c.bf16 %v2219_v36, %v2219_v36  ;;  %v2115_v21 = vmax.f32 %v1586_v57, %v2025_v5  ;;  %v1587_v47 = vmax.f32 %v5127_v43, %v1499_v2  ;;  %v3360_v37 = vpop.f32.mrb[175].mxu0  ;;  %v3470_v38 = vpop.f32.mrb[175].mxu1  ;;  %v5139_v5 = vmax.f32 %v5137_v10, %v5138_v55  ;;  %v5153_v10 = vld [vmem:[#allocation48_spill] sm:$0xff] }
 0x245   :  { %2466 = vst.msk [vmem:[%s4955_s3 + $0x8c] sm:$0xf] %vm2430_vm4, %v2921_v20  ;;  %v2171_v28 = vadd.f32 %v4561_v27, %v2115_v21  ;;  %v2116_v29 = vmax.f32 %v1587_v47, %v2028_v24  ;;  %v5140_v21 = vld [vmem:[#allocation39_spill] sm:$0xff] }
 0x246   :  { %v5142_v3 = vmax.f32 %v5140_v21, %v5141_v4 }
 0x247   :  { %v2220_v39 = vmax.f32 %v2171_v28, 0.0  ;;  %v2172_v40 = vadd.f32 %v4561_v27, %v2116_v29 }
 0x248   :  { %v1504_v61 = vpop.f32.mrb[176].mxu0  ;;  %v2033_v62 = vpop.f32.mrb[176].mxu1 }
 0x249   :  { %v2922_v59 = vpack.c.bf16 %v2220_v39, %v2220_v39  ;;  %v2221_v60 = vmax.f32 %v2172_v40, 0.0  ;;  %v1588_v8 = vmax.f32 %v5130_v46, %v1504_v61  ;;  %v3363_v9 = vpop.f32.mrb[177].mxu0  ;;  %v3473_v34 = vpop.f32.mrb[177].mxu1  ;;  %v5143_v40 = vld [vmem:[#allocation41_spill] sm:$0xff]  ;;  %v5144_v61 = vld [vmem:[#allocation42_spill] sm:$0xff] }
 0x24a   :  { %v1507_v44 = vpop.f32.mrb[178].mxu0  ;;  %v2036_v45 = vpop.f32.mrb[178].mxu1 }
 0x24b   :  { %2467 = vst.msk [vmem:[%s4955_s3 + $0x90] sm:$0xf] %vm2430_vm4, %v2922_v59  ;;  %v2923_v11 = vpack.c.bf16 %v2221_v60, %v2221_v60  ;;  %v2117_v12 = vmax.f32 %v1588_v8, %v2033_v62  ;;  %v1589_v52 = vmax.f32 %v5133_v7, %v1507_v44  ;;  %v3364_v18 = vpop.f32.mrb[179].mxu0  ;;  %v3474_v17 = vpop.f32.mrb[179].mxu1  ;;  %v5145_v62 = vmax.f32 %v5143_v40, %v5144_v61  ;;  %v5159_v40 = vld [vmem:[#allocation52_spill] sm:$0xff] }
 0x24d   :  { %2468 = vst.msk [vmem:[%s4955_s3 + $0x94] sm:$0xf] %vm2430_vm4, %v2923_v11  ;;  %v2173_v25 = vadd.f32 %v4561_v27, %v2117_v12  ;;  %v2118_v26 = vmax.f32 %v1589_v52, %v2036_v45  ;;  %v5146_v12 = vld [vmem:[#allocation43_spill] sm:$0xff] }
 0x24e   :  { %v5148_v22 = vmax.f32 %v5146_v12, %v5147_v0 }
 0x24f   :  { %v2222_v51 = vmax.f32 %v2173_v25, 0.0  ;;  %v2174_v6 = vadd.f32 %v4561_v27, %v2118_v26 }
 0x250   :  { %v1512_v16 = vpop.f32.mrb[180].mxu0  ;;  %v2041_v58 = vpop.f32.mrb[180].mxu1 }
 0x251   :  { %v2924_v30 = vpack.c.bf16 %v2222_v51, %v2222_v51  ;;  %v2223_v41 = vmax.f32 %v2174_v6, 0.0  ;;  %v1590_v19 = vmax.f32 %v5136_v14, %v1512_v16  ;;  %v3367_v23 = vpop.f32.mrb[181].mxu0  ;;  %v3477_v49 = vpop.f32.mrb[181].mxu1  ;;  %v5149_v6 = vld [vmem:[#allocation45_spill] sm:$0xff]  ;;  %v5150_v16 = vld [vmem:[#allocation46_spill] sm:$0xff] }
 0x252   :  { %v1515_v50 = vpop.f32.mrb[182].mxu0  ;;  %v2044_v32 = vpop.f32.mrb[182].mxu1 }
 0x253   :  { %2469 = vst.msk [vmem:[%s4955_s3 + $0x98] sm:$0xf] %vm2430_vm4, %v2924_v30  ;;  %v2925_v33 = vpack.c.bf16 %v2223_v41, %v2223_v41  ;;  %v2119_v63 = vmax.f32 %v1590_v19, %v2041_v58  ;;  %v1591_v35 = vmax.f32 %v5139_v5, %v1515_v50  ;;  %v3368_v36 = vpop.f32.mrb[183].mxu0  ;;  %v3478_v1 = vpop.f32.mrb[183].mxu1  ;;  %v5151_v58 = vmax.f32 %v5149_v6, %v5150_v16 }
 0x255   :  { %2470 = vst.msk [vmem:[%s4955_s3 + $0x9c] sm:$0xf] %vm2430_vm4, %v2925_v33  ;;  %v2175_v15 = vadd.f32 %v4561_v27, %v2119_v63  ;;  %v2120_v56 = vmax.f32 %v1591_v35, %v2044_v32  ;;  %v5152_v63 = vld [vmem:[#allocation47_spill] sm:$0xff] }
 0x256   :  { %v5154_v55 = vmax.f32 %v5152_v63, %v5153_v10 }
 0x257   :  { %v2224_v57 = vmax.f32 %v2175_v15, 0.0  ;;  %v2176_v53 = vadd.f32 %v4561_v27, %v2120_v56 }
 0x258   :  { %v1520_v54 = vpop.f32.mrb[184].mxu0  ;;  %v2049_v2 = vpop.f32.mrb[184].mxu1 }
 0x259   :  { %v2926_v24 = vpack.c.bf16 %v2224_v57, %v2224_v57  ;;  %v2225_v20 = vmax.f32 %v2176_v53, 0.0  ;;  %v1592_v43 = vmax.f32 %v5142_v3, %v1520_v54  ;;  %v3371_v47 = vpop.f32.mrb[185].mxu0  ;;  %v3481_v37 = vpop.f32.mrb[185].mxu1  ;;  %v5155_v53 = vld [vmem:[#allocation49_spill] sm:$0xff]  ;;  %v5156_v54 = vld [vmem:[#allocation50_spill] sm:$0xff] }
 0x25a   :  { %v1523_v38 = vpop.f32.mrb[186].mxu0  ;;  %v2052_v28 = vpop.f32.mrb[186].mxu1 }
 0x25b   :  { %2471 = vst.msk [vmem:[%s4955_s3 + $0xa0] sm:$0xf] %vm2430_vm4, %v2926_v24  ;;  %v2927_v29 = vpack.c.bf16 %v2225_v20, %v2225_v20  ;;  %v2121_v39 = vmax.f32 %v1592_v43, %v2049_v2  ;;  %v1593_v59 = vmax.f32 %v5145_v62, %v1523_v38  ;;  %v3372_v60 = vpop.f32.mrb[187].mxu0  ;;  %v3482_v48 = vpop.f32.mrb[187].mxu1  ;;  %v5157_v2 = vmax.f32 %v5155_v53, %v5156_v54 }
 0x25d   :  { %2472 = vst.msk [vmem:[%s4955_s3 + $0xa4] sm:$0xf] %vm2430_vm4, %v2927_v29  ;;  %v2177_v31 = vadd.f32 %v4561_v27, %v2121_v39  ;;  %v2122_v46 = vmax.f32 %v1593_v59, %v2052_v28  ;;  %v5158_v39 = vld [vmem:[#allocation51_spill] sm:$0xff] }
 0x25e   :  { %v5160_v61 = vmax.f32 %v5158_v39, %v5159_v40 }
 0x25f   :  { %v2226_v8 = vmax.f32 %v2177_v31, 0.0  ;;  %v2178_v9 = vadd.f32 %v4561_v27, %v2122_v46 }
 0x260   :  { %v1528_v34 = vpop.f32.mrb[188].mxu0  ;;  %v2057_v44 = vpop.f32.mrb[188].mxu1 }
 0x261   :  { %v2928_v45 = vpack.c.bf16 %v2226_v8, %v2226_v8  ;;  %v2227_v11 = vmax.f32 %v2178_v9, 0.0  ;;  %v1594_v7 = vmax.f32 %v5148_v22, %v1528_v34  ;;  %v3375_v52 = vpop.f32.mrb[189].mxu0  ;;  %v3485_v18 = vpop.f32.mrb[189].mxu1 }
 0x262   :  { %v1531_v17 = vpop.f32.mrb[190].mxu0  ;;  %v2060_v25 = vpop.f32.mrb[190].mxu1 }
 0x263   :  { %2473 = vst.msk [vmem:[%s4955_s3 + $0xa8] sm:$0xf] %vm2430_vm4, %v2928_v45  ;;  %v2929_v26 = vpack.c.bf16 %v2227_v11, %v2227_v11  ;;  %v2123_v51 = vmax.f32 %v1594_v7, %v2057_v44  ;;  %v1595_v30 = vmax.f32 %v5151_v58, %v1531_v17  ;;  %v3376_v41 = vpop.f32.mrb[191].mxu0  ;;  %v3486_v42 = vpop.f32.mrb[191].mxu1 }
 0x265   :  { %2474 = vst.msk [vmem:[%s4955_s3 + $0xac] sm:$0xf] %vm2430_vm4, %v2929_v26  ;;  %v2179_v13 = vadd.f32 %v4561_v27, %v2123_v51  ;;  %v2124_v14 = vmax.f32 %v1595_v30, %v2060_v25 }
 0x267   :  { %v2228_v19 = vmax.f32 %v2179_v13, 0.0  ;;  %v2180_v23 = vadd.f32 %v4561_v27, %v2124_v14 }
 0x268   :  { %v1536_v49 = vpop.f32.mrb[192].mxu0  ;;  %v2065_v50 = vpop.f32.mrb[192].mxu1 }
 0x269   :  { %v2930_v32 = vpack.c.bf16 %v2228_v19, %v2228_v19  ;;  %v2229_v33 = vmax.f32 %v2180_v23, 0.0  ;;  %v1596_v5 = vmax.f32 %v5154_v55, %v1536_v49  ;;  %v3379_v35 = vpop.f32.mrb[193].mxu0  ;;  %v3489_v36 = vpop.f32.mrb[193].mxu1 }
 0x26a   :  { %v1539_v1 = vpop.f32.mrb[194].mxu0  ;;  %v2068_v15 = vpop.f32.mrb[194].mxu1 }
 0x26b   :  { %2475 = vst.msk [vmem:[%s4955_s3 + $0xb0] sm:$0xf] %vm2430_vm4, %v2930_v32  ;;  %v2931_v56 = vpack.c.bf16 %v2229_v33, %v2229_v33  ;;  %v2125_v57 = vmax.f32 %v1596_v5, %v2065_v50  ;;  %v1597_v24 = vmax.f32 %v5157_v2, %v1539_v1  ;;  %v3380_v20 = vpop.f32.mrb[195].mxu0  ;;  %v3490_v21 = vpop.f32.mrb[195].mxu1 }
 0x26d   :  { %2476 = vst.msk [vmem:[%s4955_s3 + $0xb4] sm:$0xf] %vm2430_vm4, %v2931_v56  ;;  %v2181_v4 = vadd.f32 %v4561_v27, %v2125_v57  ;;  %v2126_v3 = vmax.f32 %v1597_v24, %v2068_v15 }
 0x26f   :  { %v2230_v43 = vmax.f32 %v2181_v4, 0.0  ;;  %v2182_v47 = vadd.f32 %v4561_v27, %v2126_v3 }
 0x270   :  { %v1544_v37 = vpop.f32.mrb[196].mxu0  ;;  %v2073_v38 = vpop.f32.mrb[196].mxu1 }
 0x271   :  { %v2932_v28 = vpack.c.bf16 %v2230_v43, %v2230_v43  ;;  %v2231_v29 = vmax.f32 %v2182_v47, 0.0  ;;  %v1598_v62 = vmax.f32 %v5160_v61, %v1544_v37  ;;  %v3383_v59 = vpop.f32.mrb[197].mxu0  ;;  %v3493_v60 = vpop.f32.mrb[197].mxu1 }
 0x272   :  { %v1547_v48 = vpop.f32.mrb[198].mxu0  ;;  %v2076_v31 = vpop.f32.mrb[198].mxu1 }
 0x273   :  { %2477 = vst.msk [vmem:[%s4955_s3 + $0xb8] sm:$0xf] %vm2430_vm4, %v2932_v28  ;;  %v2933_v46 = vpack.c.bf16 %v2231_v29, %v2231_v29  ;;  %v2127_v8 = vmax.f32 %v1598_v62, %v2073_v38  ;;  %v3384_v9 = vpop.f32.mrb[199].mxu0  ;;  %v3494_v34 = vpop.f32.mrb[199].mxu1 }
 0x275   :  { %2478 = vst.msk [vmem:[%s4955_s3 + $0xbc] sm:$0xf] %vm2430_vm4, %v2933_v46  ;;  %v2183_v44 = vadd.f32 %v4561_v27, %v2127_v8 }
 0x277   :  { %v2232_v45 = vmax.f32 %v2183_v44, 0.0 }
 0x279   :  { %v2934_v11 = vpack.c.bf16 %v2232_v45, %v2232_v45 }
 0x27b   :  { %2479 = vst.msk [vmem:[%s4955_s3 + $0xc0] sm:$0xf] %vm2430_vm4, %v2934_v11 }

// kernel: net_forward.4
= control target key start
LH: loop header
LB: loop body
LE: loop exit
PB: predicated region body
PF: predicated region fallthrough
CT: control target
= control target key end

     0   :  { %vm572_vm0 = vcmask 261120   ;;  %vm2190_vm1 = vcmask 519168   ;;  %vm2197_vm2 = vcmask 516096   ;;  %s4268_s1 = inlined_call_operand.vmem [shape: bf16[800,64], index: 1, kind: input, shape index: {}]   ;;  %s4269_s0 = inlined_call_operand.vmem [shape: bf16[4,50,800], index: 0, kind: input, shape index: {}]   ;;  %s4270_s2 = inlined_call_operand.vmem [shape: f32[1,64], index: 2, kind: input, shape index: {}]   ;;  %s4271_s3 = inlined_call_operand.vmem [shape: bf16[50,64], index: 3, kind: output, shape index: {}]  }
   0x1   :  { %v3296_v0 = vld [vmem:[%s4268_s1 + $0x40] sm:$0xff]   ;;  %v3319_v4 = vld [vmem:[%s4268_s1 + $0x48] sm:$0xff]   ;;  %v3343_v8 = vld [vmem:[%s4268_s1 + $0x50] sm:$0xff]  }
   0x2   :  { %v3301_v1 = vld [vmem:[%s4268_s1 + $0xc0] sm:$0xff]   ;;  %2480 = vmatprep.subr.bf16.mxu0 %v3296_v0  ;;  %v3325_v5 = vld [vmem:[%s4268_s1 + $0xc8] sm:$0xff]   ;;  %v3349_v9 = vld [vmem:[%s4268_s1 + $0xd0] sm:$0xff]  }
   0x3   :  { %v3307_v2 = vld [vmem:[%s4268_s1] sm:$0xff]   ;;  %2520 = vmatprep.subr.bf16.mxu1 %v3301_v1  ;;  %v3331_v6 = vld [vmem:[%s4268_s1 + $0x8] sm:$0xff]   ;;  %v3355_v10 = vld [vmem:[%s4268_s1 + $0x10] sm:$0xff]  }
   0x4   :  { %v3313_v3 = vld [vmem:[%s4268_s1 + $0x80] sm:$0xff]   ;;  %2481 = vmatpush3.bf16.msra.mxu0 %v3307_v2  ;;  %v3337_v7 = vld [vmem:[%s4268_s1 + $0x88] sm:$0xff]   ;;  %v3361_v11 = vld [vmem:[%s4268_s1 + $0x90] sm:$0xff]  }
   0x5   :  { %2521 = vmatpush3.bf16.msra.mxu1 %v3313_v3  ;;  %2482 = vmatprep.subr.bf16.mxu0 %v3319_v4  ;;  %v3367_v12 = vld [vmem:[%s4268_s1 + $0x58] sm:$0xff]   ;;  %v3391_v16 = vld [vmem:[%s4268_s1 + $0x60] sm:$0xff]   ;;  %v3415_v20 = vld [vmem:[%s4268_s1 + $0x68] sm:$0xff]  }
   0x6   :  { %2522 = vmatprep.subr.bf16.mxu1 %v3325_v5  ;;  %v3373_v13 = vld [vmem:[%s4268_s1 + $0xd8] sm:$0xff]   ;;  %v3397_v17 = vld [vmem:[%s4268_s1 + $0xe0] sm:$0xff]   ;;  %v3421_v21 = vld [vmem:[%s4268_s1 + $0xe8] sm:$0xff]  }
   0x7   :  { %v3379_v14 = vld [vmem:[%s4268_s1 + $0x18] sm:$0xff]   ;;  %v3403_v18 = vld [vmem:[%s4268_s1 + $0x20] sm:$0xff]   ;;  %v3427_v22 = vld [vmem:[%s4268_s1 + $0x28] sm:$0xff]  }
   0x8   :  { %2483 = vmatpush3.bf16.msra.mxu0 %v3331_v6  ;;  %v3385_v15 = vld [vmem:[%s4268_s1 + $0x98] sm:$0xff]   ;;  %v3409_v19 = vld [vmem:[%s4268_s1 + $0xa0] sm:$0xff]   ;;  %v3433_v23 = vld [vmem:[%s4268_s1 + $0xa8] sm:$0xff]  }
   0x9   :  { %2523 = vmatpush3.bf16.msra.mxu1 %v3337_v7  ;;  %2484 = vmatprep.subr.bf16.mxu0 %v3343_v8  ;;  %v3439_v24 = vld [vmem:[%s4268_s1 + $0x70] sm:$0xff]   ;;  %v3463_v28 = vld [vmem:[%s4268_s1 + $0x78] sm:$0xff]   ;;  %v3082_v33 = vld [vmem:[%s4269_s0 + $0x4] ss:$28 sps:$4 sm:$0xff]  }
   0xa   :  { %2524 = vmatprep.subr.bf16.mxu1 %v3349_v9  ;;  %v3445_v25 = vld [vmem:[%s4268_s1 + $0xf0] sm:$0xff]   ;;  %v3469_v29 = vld [vmem:[%s4268_s1 + $0xf8] sm:$0xff]   ;;  %v3083_v34 = vld [vmem:[%s4269_s0 + $0x8] ss:$28 sps:$4 sm:$0xff]   ;;  %617 = vmatprep.mubr.bf16.mxu0 %v3082_v33 }
   0xb   :  { %v3451_v26 = vld [vmem:[%s4268_s1 + $0x30] sm:$0xff]   ;;  %v3475_v30 = vld [vmem:[%s4268_s1 + $0x38] sm:$0xff]   ;;  %v3085_v35 = vld [vmem:[%s4269_s0 + $0xc] ss:$28 sps:$4 sm:$0xff]  }
   0xc   :  { %2485 = vmatpush3.bf16.msra.mxu0 %v3355_v10  ;;  %v3457_v27 = vld [vmem:[%s4268_s1 + $0xb0] sm:$0xff]   ;;  %v3481_v31 = vld [vmem:[%s4268_s1 + $0xb8] sm:$0xff]   ;;  %v3500_v36 = vld [vmem:[%s4268_s1 + $0x140] sm:$0xff]   ;;  %681 = vmatprep.mubr.bf16.mxu1 %v3085_v35 }
   0xd   :  { %2525 = vmatpush3.bf16.msra.mxu1 %v3361_v11  ;;  %2486 = vmatprep.subr.bf16.mxu0 %v3367_v12  ;;  %v3080_v32 = vld [vmem:[%s4269_s0] ss:$28 sps:$4 sm:$0xff]   ;;  %v3511_v38 = vld [vmem:[%s4268_s1 + $0x148] sm:$0xff]   ;;  %v3095_v43 = vld [vmem:[%s4269_s0 + $0x38] ss:$28 sps:$4 sm:$0xff]  }
   0xe   :  { %2526 = vmatprep.subr.bf16.mxu1 %v3373_v13  ;;  %v3505_v37 = vld [vmem:[%s4268_s1 + $0x100] sm:$0xff]   ;;  %v3517_v39 = vld [vmem:[%s4268_s1 + $0x108] sm:$0xff]   ;;  %v3090_v40 = vld [vmem:[%s4269_s0 + $0x3c] ss:$28 sps:$4 sm:$0xff]  }
   0xf   :  { %v3092_v41 = vld [vmem:[%s4269_s0 + $0x44] ss:$28 sps:$4 sm:$0xff]   ;;  %v3542_v45 = vld [vmem:[%s4268_s1 + $0x150] sm:$0xff]   ;;  %v3554_v47 = vld [vmem:[%s4268_s1 + $0x158] sm:$0xff]  }
  0x10   :  { %2487 = vmatpush3.bf16.msra.mxu0 %v3379_v14  ;;  %v3529_v42 = vld [vmem:[%s4268_s1 + $0x180] sm:$0xff]   ;;  %v3548_v46 = vld [vmem:[%s4268_s1 + $0x110] sm:$0xff]   ;;  %v3560_v48 = vld [vmem:[%s4268_s1 + $0x118] sm:$0xff]  }
  0x11   :  { %2527 = vmatpush3.bf16.msra.mxu1 %v3385_v15  ;;  %2488 = vmatprep.subr.bf16.mxu0 %v3391_v16  ;;  %v3096_v44 = vld [vmem:[%s4269_s0 + $0x40] ss:$28 sps:$4 sm:$0xff]   ;;  %v3101_v49 = vld [vmem:[%s4269_s0 + $0x74] ss:$28 sps:$4 sm:$0xff]   ;;  %v3590_v55 = vld [vmem:[%s4268_s1 + $0x168] sm:$0xff]  }
  0x12   :  { %2528 = vmatprep.subr.bf16.mxu1 %v3397_v17  ;;  %v3103_v50 = vld [vmem:[%s4269_s0 + $0x7c] ss:$28 sps:$4 sm:$0xff]   ;;  %v3105_v51 = vld [vmem:[%s4269_s0 + $0x70] ss:$28 sps:$4 sm:$0xff]   ;;  %v3578_v53 = vld [vmem:[%s4268_s1 + $0x160] sm:$0xff]  }
  0x13   :  { %v3106_v52 = vld [vmem:[%s4269_s0 + $0x78] ss:$28 sps:$4 sm:$0xff]   ;;  %v3584_v54 = vld [vmem:[%s4268_s1 + $0x120] sm:$0xff]   ;;  %v3595_v56 = vld [vmem:[%s4268_s1 + $0x128] sm:$0xff]  }
  0x14   :  { %2489 = vmatpush3.bf16.msra.mxu0 %v3403_v18  ;;  %v139_v57 = vld [vmem:[%s4269_s0 + $0xa8] sm:$0x11]  ;;  %v140_v58 = vld [vmem:[%s4269_s0 + $0xb0] sm:$0x11] }
  0x15   :  { %2529 = vmatpush3.bf16.msra.mxu1 %v3409_v19  ;;  %2490 = vmatprep.subr.bf16.mxu0 %v3415_v20  ;;  %v2225_v59 = vcombine.high %v139_v57, %v139_v57  ;;  %v2227_v60 = vcombine.high %v140_v58, %v140_v58  ;;  %v3607_v61 = vld [vmem:[%s4268_s1 + $0x188] sm:$0xff]   ;;  %v3613_v62 = vld [vmem:[%s4268_s1 + $0x170] sm:$0xff]   ;;  %v2224_v63 = vcombine.low %v139_v57, %v139_v57  ;;  %v3128_v57 = vld [vmem:[%s4269_s0 + $0x84] ss:$28 sps:$4 sm:$0xff]  }
  0x16   :  { %2530 = vmatprep.subr.bf16.mxu1 %v3421_v21  ;;  %v3621_v33 = vld [vmem:[%s4268_s1 + $0x130] sm:$0xff]  }
  0x17   :  { %v3122_v35 = vld [vmem:[%s4269_s0 + $0x14] ss:$28 sps:$4 sm:$0xff]  }
  0x18   :  { %2491 = vmatpush3.bf16.msra.mxu0 %v3427_v22 }
  0x19   :  { %2531 = vmatpush3.bf16.msra.mxu1 %v3433_v23  ;;  %2492 = vmatprep.subr.bf16.mxu0 %v3439_v24 }
  0x1a   :  { %2532 = vmatprep.subr.bf16.mxu1 %v3445_v25 }
  0x1c   :  { %2493 = vmatpush3.bf16.msra.mxu0 %v3451_v26 }
  0x1d   :  { %2533 = vmatpush3.bf16.msra.mxu1 %v3457_v27  ;;  %2494 = vmatprep.subr.bf16.mxu0 %v3463_v28 }
  0x1e   :  { %2534 = vmatprep.subr.bf16.mxu1 %v3469_v29 }
  0x20   :  { %2495 = vmatpush3.bf16.msra.mxu0 %v3475_v30 }
  0x21   :  { %2535 = vmatpush3.bf16.msra.mxu1 %v3481_v31  ;;  %2560 = vmatprep.subr.bf16.mxu0 %v3500_v36 }
  0x22   :  { %2984 = vmatprep.subr.bf16.mxu1 %v3529_v42 }
  0x23   :  { %618 = vmatmul.mubr.bf16.vlgmr.msra.gmra.mrb[0].mxu0 %v3080_v32  ;;  %v2226_v32 = vcombine.low %v140_v58, %v140_v58  ;;  %v3137_v58 = vld [vmem:[%s4269_s0 + $0xd0] ss:$28 sps:$4 sm:$0xff]  }
  0x24   :  { %682 = vmatmul.mubr.bf16.vlgmr.msra.gmra.mrb[0].mxu1 %v3083_v34  ;;  %2561 = vmatpush3.bf16.msra.mxu0 %v3505_v37  ;;  %v3627_v34 = vld [vmem:[%s4268_s1 + $0x178] sm:$0xff]  }
  0x25   :  { %2562 = vmatprep.subr.bf16.mxu0 %v3511_v38  ;;  %625 = vmatprep.mubr.bf16.mxu0 %v3090_v40  ;;  %v3123_v40 = vld [vmem:[%s4269_s0 + $0x18] ss:$28 sps:$4 sm:$0xff]  }
  0x26   :  { %689 = vmatprep.mubr.bf16.mxu1 %v3092_v41  ;;  %2985 = vmatpush3.bf16.msra.mxu1 %v3529_v42  ;;  %v3640_v41 = vld [vmem:[%s4268_s1 + $0x138] sm:$0xff]  }
  0x27   :  { %2986 = vmatprep.subr.bf16.mxu1 %v3607_v61 }
  0x28   :  { %2563 = vmatpush3.bf16.msra.mxu0 %v3517_v39 }
  0x29   :  { %2564 = vmatprep.subr.bf16.mxu0 %v3542_v45 }
  0x2a   :  { %2987 = vmatpush3.bf16.msra.mxu1 %v3607_v61 }
  0x2b   :  { %626 = vmatmul.mubr.bf16.gmra.mrb[4].mxu0 %v3095_v43  ;;  %2646 = vmatprep.subr.bf16.mxu1 %v3301_v1  ;;  %v3120_v43 = vld [vmem:[%s4269_s0 + $0x10] ss:$28 sps:$4 sm:$0xff]  }
  0x2c   :  { %690 = vmatmul.mubr.bf16.gmra.mrb[4].mxu1 %v3096_v44  ;;  %2565 = vmatpush3.bf16.msra.mxu0 %v3548_v46  ;;  %v3124_v44 = vld [vmem:[%s4269_s0 + $0x50] ss:$28 sps:$4 sm:$0xff]  }
  0x2d   :  { %2566 = vmatprep.subr.bf16.mxu0 %v3554_v47  ;;  %633 = vmatprep.mubr.bf16.mxu0 %v3101_v49  ;;  %v3125_v49 = vld [vmem:[%s4269_s0 + $0x4c] ss:$28 sps:$4 sm:$0xff]  }
  0x2e   :  { %697 = vmatprep.mubr.bf16.mxu1 %v3103_v50  ;;  %v3131_v50 = vld [vmem:[%s4269_s0 + $0x88] ss:$28 sps:$4 sm:$0xff]  }
  0x30   :  { %2567 = vmatpush3.bf16.msra.mxu0 %v3560_v48 }
  0x31   :  { %2568 = vmatprep.subr.bf16.mxu0 %v3578_v53 }
  0x33   :  { %634 = vmatmul.mubr.bf16.gmra.mrb[8].mxu0 %v3105_v51  ;;  %v3127_v51 = vld [vmem:[%s4269_s0 + $0x48] ss:$28 sps:$4 sm:$0xff]  }
  0x34   :  { %698 = vmatmul.mubr.bf16.gmra.mrb[8].mxu1 %v3106_v52  ;;  %2569 = vmatpush3.bf16.msra.mxu0 %v3584_v54  ;;  %v3132_v52 = vld [vmem:[%s4269_s0 + $0xc0] ss:$0 sps:$4 sm:$0x11]  }
  0x35   :  { %2570 = vmatprep.subr.bf16.mxu0 %v3590_v55  ;;  %641 = vmatprep.mubr.bf16.mxu0 %v2225_v59  ;;  %v3130_v59 = vld [vmem:[%s4269_s0 + $0x80] ss:$28 sps:$4 sm:$0xff]  }
  0x36   :  { %705 = vmatprep.mubr.bf16.mxu1 %v2227_v60  ;;  %v141_v60 = vld [vmem:[%s4269_s0 + $0xb8] sm:$0x11] }
  0x38   :  { %2571 = vmatpush3.bf16.msra.mxu0 %v3595_v56 }
  0x39   :  { %2572 = vmatprep.subr.bf16.mxu0 %v3613_v62 }
  0x3b   :  { %642 = vmatmul.mubr.bf16.gmra.mrb[12].mxu0 %v2224_v63  ;;  %v2229_v63 = vcombine.high %v141_v60, %v141_v60 }
  0x3c   :  { %706 = vmatmul.mubr.bf16.gmra.mrb[12].mxu1 %v2226_v32  ;;  %745 = vmatprep.mubr.bf16.mxu0 %v3122_v35  ;;  %v2228_v32 = vcombine.low %v141_v60, %v141_v60  ;;  %v3140_v35 = vld [vmem:[%s4269_s0 + $0xc8] ss:$28 sps:$4 sm:$0xff]   ;;  %v3151_v60 = vld [vmem:[%s4269_s0 + $0x13c] ss:$28 sps:$4 sm:$0xff]  }
  0x3d   :  { %2573 = vmatpush3.bf16.msra.mxu0 %v3621_v33  ;;  %2988 = vmatprep.mubr.msk.bf16.mxu1 %vm572_vm0, %v3123_v40  ;;  %v3135_v40 = vld [vmem:[%s4269_s0 + $0xcc] ss:$28 sps:$4 sm:$0xff]  }
  0x3e   :  { %2574 = vmatprep.subr.bf16.mxu0 %v3627_v34 }
  0x41   :  { %2575 = vmatpush3.bf16.msra.mxu0 %v3640_v41 }
  0x42   :  { %2606 = vmatprep.subr.bf16.mxu0 %v3296_v0 }
  0x44   :  { %746 = vmatmul.mubr.bf16.vlgmr.msra.gmra.mrb[16].mxu0 %v3120_v43  ;;  %2989 = vmatmul.mubr.msk.bf16.vlgmr.msra.gmra.mrb[16].mxu1 %vm572_vm0, %v3124_v44  ;;  %v3138_v43 = vld [vmem:[%s4269_s0 + $0xc4] ss:$28 sps:$4 sm:$0xff]  }
  0x45   :  { %2647 = vmatpush3.bf16.msra.mxu1 %v3313_v3  ;;  %2607 = vmatpush3.bf16.msra.mxu0 %v3307_v2  ;;  %v3141_v44 = vld [vmem:[%s4269_s0 + $0x108] ss:$28 sps:$4 sm:$0xff]  }
  0x46   :  { %2648 = vmatprep.subr.bf16.mxu1 %v3325_v5  ;;  %2608 = vmatprep.subr.bf16.mxu0 %v3319_v4 }
  0x47   :  { %753 = vmatprep.mubr.bf16.mxu0 %v3125_v49  ;;  %2992 = vmatprep.mubr.msk.bf16.mxu1 %vm572_vm0, %v3131_v50  ;;  %v3143_v49 = vld [vmem:[%s4269_s0 + $0x100] ss:$28 sps:$4 sm:$0xff]  }
  0x48   :  { %v3145_v50 = vld [vmem:[%s4269_s0 + $0x104] ss:$28 sps:$4 sm:$0xff]  }
  0x49   :  { %2649 = vmatpush3.bf16.msra.mxu1 %v3337_v7  ;;  %2609 = vmatpush3.bf16.msra.mxu0 %v3331_v6 }
  0x4a   :  { %2650 = vmatprep.subr.bf16.mxu1 %v3349_v9  ;;  %2610 = vmatprep.subr.bf16.mxu0 %v3343_v8 }
  0x4c   :  { %754 = vmatmul.mubr.bf16.gmra.mrb[20].mxu0 %v3127_v51  ;;  %2993 = vmatmul.mubr.msk.bf16.gmra.mrb[20].mxu1 %vm572_vm0, %v3132_v52  ;;  %v3146_v51 = vld [vmem:[%s4269_s0 + $0xfc] ss:$28 sps:$4 sm:$0xff]  }
  0x4d   :  { %2651 = vmatpush3.bf16.msra.mxu1 %v3361_v11  ;;  %2611 = vmatpush3.bf16.msra.mxu0 %v3355_v10  ;;  %v3147_v52 = vld [vmem:[%s4269_s0 + $0x140] ss:$28 sps:$4 sm:$0xff]  }
  0x4e   :  { %2652 = vmatprep.subr.bf16.mxu1 %v3373_v13  ;;  %2612 = vmatprep.subr.bf16.mxu0 %v3367_v12 }
  0x4f   :  { %761 = vmatprep.mubr.bf16.mxu0 %v3128_v57  ;;  %1107 = vmatprep.mubr.bf16.mxu1 %v3137_v58  ;;  %v3149_v57 = vld [vmem:[%s4269_s0 + $0x138] ss:$28 sps:$4 sm:$0xff]  }
  0x50   :  { %v2310_v58 = vld [vmem:[%s4269_s0 + $0x174] sm:$0x11] }
  0x51   :  { %2653 = vmatpush3.bf16.msra.mxu1 %v3385_v15  ;;  %2613 = vmatpush3.bf16.msra.mxu0 %v3379_v14 }
  0x52   :  { %2654 = vmatprep.subr.bf16.mxu1 %v3397_v17  ;;  %2614 = vmatprep.subr.bf16.mxu0 %v3391_v16 }
  0x54   :  { %762 = vmatmul.mubr.bf16.gmra.mrb[24].mxu0 %v3130_v59  ;;  %v2309_v59 = vld [vmem:[%s4269_s0 + $0x16c] sm:$0x11] }
  0x55   :  { %2655 = vmatpush3.bf16.msra.mxu1 %v3409_v19  ;;  %2615 = vmatpush3.bf16.msra.mxu0 %v3403_v18 }
  0x56   :  { %2656 = vmatprep.subr.bf16.mxu1 %v3421_v21  ;;  %2616 = vmatprep.subr.bf16.mxu0 %v3415_v20 }
  0x57   :  { %769 = vmatprep.mubr.bf16.mxu0 %v2229_v63  ;;  %v3152_v63 = vld [vmem:[%s4269_s0 + $0x134] ss:$28 sps:$4 sm:$0xff]  }
  0x59   :  { %2657 = vmatpush3.bf16.msra.mxu1 %v3433_v23  ;;  %2617 = vmatpush3.bf16.msra.mxu0 %v3427_v22 }
  0x5a   :  { %2658 = vmatprep.subr.bf16.mxu1 %v3445_v25  ;;  %2618 = vmatprep.subr.bf16.mxu0 %v3439_v24 }
  0x5c   :  { %770 = vmatmul.mubr.bf16.gmra.mrb[28].mxu0 %v2228_v32  ;;  %v2337_v32 = vcombine.high %v2310_v58, %v2310_v58 }
  0x5d   :  { %2659 = vmatpush3.bf16.msra.mxu1 %v3457_v27  ;;  %2619 = vmatpush3.bf16.msra.mxu0 %v3451_v26 }
  0x5e   :  { %2660 = vmatprep.subr.bf16.mxu1 %v3469_v29  ;;  %2620 = vmatprep.subr.bf16.mxu0 %v3463_v28 }
  0x5f   :  { %1043 = vmatprep.mubr.bf16.mxu0 %v3140_v35  ;;  %v2335_v35 = vcombine.high %v2309_v59, %v2309_v59 }
  0x61   :  { %2661 = vmatpush3.bf16.msra.mxu1 %v3481_v31  ;;  %2621 = vmatpush3.bf16.msra.mxu0 %v3475_v30 }
  0x62   :  { %2686 = vmatprep.subr.bf16.mxu0 %v3500_v36  ;;  %2996 = vmatprep.subr.bf16.mxu1 %v3529_v42 }
  0x64   :  { %1108 = vmatmul.mubr.bf16.vlgmr.msra.gmra.mrb[24].mxu1 %v3135_v40  ;;  %1044 = vmatmul.mubr.bf16.vlgmr.msra.gmra.mrb[32].mxu0 %v3138_v43  ;;  %v2334_v40 = vcombine.low %v2309_v59, %v2309_v59  ;;  %v3157_v43 = vld [vmem:[%s4269_s0 + $0xdc] ss:$28 sps:$4 sm:$0xff]  }
  0x65   :  { %2687 = vmatpush3.bf16.msra.mxu0 %v3505_v37  ;;  %1115 = vmatprep.mubr.bf16.mxu1 %v3141_v44  ;;  %v3160_v44 = vld [vmem:[%s4269_s0 + $0xd8] ss:$28 sps:$4 sm:$0xff]  }
  0x66   :  { %2688 = vmatprep.subr.bf16.mxu0 %v3511_v38  ;;  %1051 = vmatprep.mubr.bf16.mxu0 %v3143_v49  ;;  %v3158_v49 = vld [vmem:[%s4269_s0 + $0xd4] ss:$28 sps:$4 sm:$0xff]   ;;  %v3198_v59 = vld [vmem:[%s4269_s0 + $0x19c] ss:$28 sps:$4 sm:$0xff]  }
  0x67   :  { %2997 = vmatpush3.bf16.msra.mxu1 %v3529_v42 }
  0x68   :  { %2998 = vmatprep.subr.bf16.mxu1 %v3607_v61 }
  0x69   :  { %2689 = vmatpush3.bf16.msra.mxu0 %v3517_v39 }
  0x6a   :  { %2690 = vmatprep.subr.bf16.mxu0 %v3542_v45 }
  0x6b   :  { %2999 = vmatpush3.bf16.msra.mxu1 %v3607_v61 }
  0x6c   :  { %1116 = vmatmul.mubr.bf16.gmra.mrb[28].mxu1 %v3145_v50  ;;  %1052 = vmatmul.mubr.bf16.gmra.mrb[36].mxu0 %v3146_v51  ;;  %v3161_v50 = vld [vmem:[%s4269_s0 + $0x114] ss:$28 sps:$4 sm:$0xff]  }
  0x6d   :  { %2691 = vmatpush3.bf16.msra.mxu0 %v3548_v46  ;;  %1123 = vmatprep.mubr.bf16.mxu1 %v3147_v52  ;;  %v3162_v51 = vld [vmem:[%s4269_s0 + $0x110] ss:$28 sps:$4 sm:$0xff]  }
  0x6e   :  { %2692 = vmatprep.subr.bf16.mxu0 %v3554_v47  ;;  %1059 = vmatprep.mubr.bf16.mxu0 %v3149_v57  ;;  %v3168_v52 = vld [vmem:[%s4269_s0 + $0x14c] ss:$28 sps:$4 sm:$0xff]   ;;  %v3169_v57 = vld [vmem:[%s4269_s0 + $0x184] ss:$0 sps:$4 sm:$0x11]  }
  0x6f   :  { %2772 = vmatprep.subr.bf16.mxu1 %v3301_v1  ;;  %v2336_v1 = vcombine.low %v2310_v58, %v2310_v58  ;;  %v3194_v58 = vld [vmem:[%s4269_s0 + $0x1a0] ss:$28 sps:$4 sm:$0xff]  }
  0x71   :  { %2693 = vmatpush3.bf16.msra.mxu0 %v3560_v48 }
  0x72   :  { %2694 = vmatprep.subr.bf16.mxu0 %v3578_v53 }
  0x74   :  { %1124 = vmatmul.mubr.bf16.gmra.mrb[32].mxu1 %v3151_v60  ;;  %1060 = vmatmul.mubr.bf16.gmra.mrb[40].mxu0 %v3152_v63  ;;  %v3195_v60 = vld [vmem:[%s4269_s0 + $0x1d8] ss:$28 sps:$4 sm:$0xff]  }
  0x75   :  { %2695 = vmatpush3.bf16.msra.mxu0 %v3584_v54  ;;  %1131 = vmatprep.mubr.bf16.mxu1 %v2337_v32  ;;  %v3196_v63 = vld [vmem:[%s4269_s0 + $0x198] ss:$28 sps:$4 sm:$0xff]   ;;  %v3247_v32 = vld [vmem:[%s4268_s1 + $0x40] sm:$0xff]  }
  0x76   :  { %2696 = vmatprep.subr.bf16.mxu0 %v3590_v55  ;;  %1067 = vmatprep.mubr.bf16.mxu0 %v2335_v35  ;;  %v3199_v35 = vld [vmem:[%s4269_s0 + $0x1d4] ss:$28 sps:$4 sm:$0xff]  }
  0x79   :  { %2697 = vmatpush3.bf16.msra.mxu0 %v3595_v56 }
  0x7a   :  { %2698 = vmatprep.subr.bf16.mxu0 %v3613_v62 }
  0x7c   :  { %1132 = vmatmul.mubr.bf16.gmra.mrb[36].mxu1 %v2336_v1  ;;  %1068 = vmatmul.mubr.bf16.gmra.mrb[44].mxu0 %v2334_v40  ;;  %v3205_v1 = vld [vmem:[%s4269_s0 + $0x210] ss:$28 sps:$4 sm:$0xff]   ;;  %v3248_v40 = vld [vmem:[%s4268_s1 + $0x80] sm:$0xff]  }
  0x7d   :  { %2699 = vmatpush3.bf16.msra.mxu0 %v3621_v33  ;;  %3000 = vmatprep.mubr.msk.bf16.mxu1 %vm572_vm0, %v3157_v43  ;;  %v3249_v43 = vld [vmem:[%s4268_s1] sm:$0xff]  }
  0x7e   :  { %2700 = vmatprep.subr.bf16.mxu0 %v3627_v34  ;;  %1171 = vmatprep.mubr.bf16.mxu0 %v3160_v44  ;;  %v3250_v44 = vld [vmem:[%s4268_s1 + $0xc8] sm:$0xff]  }
  0x81   :  { %2701 = vmatpush3.bf16.msra.mxu0 %v3640_v41 }
  0x82   :  { %2732 = vmatprep.subr.bf16.mxu0 %v3296_v0  ;;  %v3164_v0 = vld [vmem:[%s4269_s0 + $0x10c] ss:$28 sps:$4 sm:$0xff]  }
  0x84   :  { %3001 = vmatmul.mubr.msk.bf16.vlgmr.msra.gmra.mrb[40].mxu1 %vm572_vm0, %v3161_v50  ;;  %1172 = vmatmul.mubr.bf16.vlgmr.msra.gmra.mrb[48].mxu0 %v3158_v49  ;;  %v3251_v49 = vld [vmem:[%s4268_s1 + $0x48] sm:$0xff]  }
  0x85   :  { %2773 = vmatpush3.bf16.msra.mxu1 %v3313_v3  ;;  %2733 = vmatpush3.bf16.msra.mxu0 %v3307_v2  ;;  %v3165_v2 = vld [vmem:[%s4269_s0 + $0x148] ss:$28 sps:$4 sm:$0xff]   ;;  %v3174_v3 = vld [vmem:[%s4269_s0 + $0x194] ss:$28 sps:$4 sm:$0xff]  }
  0x86   :  { %2774 = vmatprep.subr.bf16.mxu1 %v3325_v5  ;;  %2734 = vmatprep.subr.bf16.mxu0 %v3319_v4  ;;  %v3167_v4 = vld [vmem:[%s4269_s0 + $0x144] ss:$28 sps:$4 sm:$0xff]   ;;  %v3201_v50 = vld [vmem:[%s4269_s0 + $0x1d0] ss:$28 sps:$4 sm:$0xff]  }
  0x87   :  { %1179 = vmatprep.mubr.bf16.mxu0 %v3162_v51  ;;  %3004 = vmatprep.mubr.msk.bf16.mxu1 %vm572_vm0, %v3168_v52  ;;  %v2311_v5 = vld [vmem:[%s4269_s0 + $0x17c] sm:$0x11]  ;;  %v3206_v51 = vld [vmem:[%s4269_s0 + $0x248] ss:$0 sps:$4 sm:$0x11]  }
  0x88   :  { %v3252_v52 = vld [vmem:[%s4268_s1 + $0x88] sm:$0xff]  }
  0x89   :  { %2775 = vmatpush3.bf16.msra.mxu1 %v3337_v7  ;;  %2735 = vmatpush3.bf16.msra.mxu0 %v3331_v6  ;;  %v2339_v6 = vcombine.high %v2311_v5, %v2311_v5  ;;  %v2338_v7 = vcombine.low %v2311_v5, %v2311_v5  ;;  %v3256_v5 = vld [vmem:[%s4268_s1 + $0x90] sm:$0xff]  }
  0x8a   :  { %2776 = vmatprep.subr.bf16.mxu1 %v3349_v9  ;;  %2736 = vmatprep.subr.bf16.mxu0 %v3343_v8  ;;  %v3177_v8 = vld [vmem:[%s4269_s0 + $0x18c] ss:$28 sps:$4 sm:$0xff]  }
  0x8b   :  { %v3172_v9 = vld [vmem:[%s4269_s0 + $0x190] ss:$28 sps:$4 sm:$0xff]  }
  0x8c   :  { %1180 = vmatmul.mubr.bf16.gmra.mrb[52].mxu0 %v3164_v0  ;;  %3005 = vmatmul.mubr.msk.bf16.gmra.mrb[44].mxu1 %vm572_vm0, %v3169_v57  ;;  %v3253_v0 = vld [vmem:[%s4268_s1 + $0x8] sm:$0xff]   ;;  %v3254_v57 = vld [vmem:[%s4268_s1 + $0xd0] sm:$0xff]  }
  0x8d   :  { %2777 = vmatpush3.bf16.msra.mxu1 %v3361_v11  ;;  %2737 = vmatpush3.bf16.msra.mxu0 %v3355_v10  ;;  %v3175_v10 = vld [vmem:[%s4269_s0 + $0x188] ss:$28 sps:$4 sm:$0xff]  }
  0x8e   :  { %2778 = vmatprep.subr.bf16.mxu1 %v3373_v13  ;;  %2738 = vmatprep.subr.bf16.mxu0 %v3367_v12  ;;  %v3178_v11 = vld [vmem:[%s4269_s0 + $0x1cc] ss:$28 sps:$4 sm:$0xff]   ;;  %v3181_v12 = vld [vmem:[%s4269_s0 + $0x1c4] ss:$28 sps:$4 sm:$0xff]  }
  0x8f   :  { %1187 = vmatprep.mubr.bf16.mxu0 %v3165_v2  ;;  %1540 = vmatprep.mubr.bf16.mxu1 %v3174_v3  ;;  %v3180_v13 = vld [vmem:[%s4269_s0 + $0x1c8] ss:$28 sps:$4 sm:$0xff]   ;;  %v3255_v2 = vld [vmem:[%s4268_s1 + $0x50] sm:$0xff]  }
  0x90   :  { %v3202_v3 = vld [vmem:[%s4269_s0 + $0x20c] ss:$28 sps:$4 sm:$0xff]  }
  0x91   :  { %2779 = vmatpush3.bf16.msra.mxu1 %v3385_v15  ;;  %2739 = vmatpush3.bf16.msra.mxu0 %v3379_v14  ;;  %v3183_v14 = vld [vmem:[%s4269_s0 + $0x1c0] ss:$28 sps:$4 sm:$0xff]  }
  0x92   :  { %2780 = vmatprep.subr.bf16.mxu1 %v3397_v17  ;;  %2740 = vmatprep.subr.bf16.mxu0 %v3391_v16  ;;  %v3184_v15 = vld [vmem:[%s4269_s0 + $0x204] ss:$28 sps:$4 sm:$0xff]   ;;  %v3187_v16 = vld [vmem:[%s4269_s0 + $0x1fc] ss:$28 sps:$4 sm:$0xff]  }
  0x93   :  { %v3246_v17 = vld [vmem:[%s4268_s1 + $0xc0] sm:$0xff]  }
  0x94   :  { %1188 = vmatmul.mubr.bf16.gmra.mrb[56].mxu0 %v3167_v4  ;;  %v3211_v4 = vld [vmem:[%s4269_s0 + $0x258] ss:$28 sps:$4 sm:$0xff]  }
  0x95   :  { %2781 = vmatpush3.bf16.msra.mxu1 %v3409_v19  ;;  %2741 = vmatpush3.bf16.msra.mxu0 %v3403_v18  ;;  %v2370_v18 = vld [vmem:[%s4269_s0 + $0x238] sm:$0x11]  ;;  %v2369_v19 = vld [vmem:[%s4269_s0 + $0x230] sm:$0x11] }
  0x96   :  { %2782 = vmatprep.subr.bf16.mxu1 %v3421_v21  ;;  %2742 = vmatprep.subr.bf16.mxu0 %v3415_v20  ;;  %v3186_v20 = vld [vmem:[%s4269_s0 + $0x200] ss:$28 sps:$4 sm:$0xff]   ;;  %v3189_v21 = vld [vmem:[%s4269_s0 + $0x1f8] ss:$28 sps:$4 sm:$0xff]  }
  0x97   :  { %1195 = vmatprep.mubr.bf16.mxu0 %v2339_v6  ;;  %v3257_v6 = vld [vmem:[%s4268_s1 + $0x10] sm:$0xff]  }
  0x99   :  { %2783 = vmatpush3.bf16.msra.mxu1 %v3433_v23  ;;  %2743 = vmatpush3.bf16.msra.mxu0 %v3427_v22  ;;  %v2397_v22 = vcombine.high %v2370_v18, %v2370_v18  ;;  %v2395_v23 = vcombine.high %v2369_v19, %v2369_v19 }
  0x9a   :  { %2784 = vmatprep.subr.bf16.mxu1 %v3445_v25  ;;  %2744 = vmatprep.subr.bf16.mxu0 %v3439_v24  ;;  %v2396_v24 = vcombine.low %v2370_v18, %v2370_v18  ;;  %v3266_v18 = vld [vmem:[%s4268_s1 + $0xe8] sm:$0xff]  }
  0x9c   :  { %1196 = vmatmul.mubr.bf16.gmra.mrb[60].mxu0 %v2338_v7  ;;  %v3258_v7 = vld [vmem:[%s4268_s1 + $0xd8] sm:$0xff]  }
  0x9d   :  { %2785 = vmatpush3.bf16.msra.mxu1 %v3457_v27  ;;  %2745 = vmatpush3.bf16.msra.mxu0 %v3451_v26 }
  0x9e   :  { %2786 = vmatprep.subr.bf16.mxu1 %v3469_v29  ;;  %2746 = vmatprep.subr.bf16.mxu0 %v3463_v28 }
  0x9f   :  { %1476 = vmatprep.mubr.bf16.mxu0 %v3177_v8  ;;  %v3259_v8 = vld [vmem:[%s4268_s1 + $0x58] sm:$0xff]  }
  0xa1   :  { %2787 = vmatpush3.bf16.msra.mxu1 %v3481_v31  ;;  %2747 = vmatpush3.bf16.msra.mxu0 %v3475_v30 }
  0xa2   :  { %2812 = vmatprep.subr.bf16.mxu0 %v3500_v36  ;;  %3008 = vmatprep.subr.bf16.mxu1 %v3529_v42 }
  0xa4   :  { %1541 = vmatmul.mubr.bf16.vlgmr.msra.gmra.mrb[48].mxu1 %v3172_v9  ;;  %1477 = vmatmul.mubr.bf16.vlgmr.msra.gmra.mrb[64].mxu0 %v3175_v10  ;;  %v3204_v9 = vld [vmem:[%s4269_s0 + $0x208] ss:$28 sps:$4 sm:$0xff]  }
  0xa5   :  { %2813 = vmatpush3.bf16.msra.mxu0 %v3505_v37  ;;  %1548 = vmatprep.mubr.bf16.mxu1 %v3178_v11  ;;  %v2371_v10 = vld [vmem:[%s4269_s0 + $0x240] sm:$0x11]  ;;  %v3260_v11 = vld [vmem:[%s4268_s1 + $0x98] sm:$0xff]  }
  0xa6   :  { %2814 = vmatprep.subr.bf16.mxu0 %v3511_v38  ;;  %3009 = vmatpush3.bf16.msra.mxu1 %v3529_v42  ;;  %v2394_v42 = vcombine.low %v2369_v19, %v2369_v19  ;;  %v3267_v19 = vld [vmem:[%s4268_s1 + $0x68] sm:$0xff]  }
  0xa7   :  { %1484 = vmatprep.mubr.bf16.mxu0 %v3181_v12  ;;  %3010 = vmatprep.subr.bf16.mxu1 %v3607_v61  ;;  %v3261_v12 = vld [vmem:[%s4268_s1 + $0x18] sm:$0xff]  }
  0xa9   :  { %2815 = vmatpush3.bf16.msra.mxu0 %v3517_v39 }
  0xaa   :  { %2816 = vmatprep.subr.bf16.mxu0 %v3542_v45  ;;  %3011 = vmatpush3.bf16.msra.mxu1 %v3607_v61 }
  0xab   :  { %2898 = vmatprep.subr.bf16.mxu1 %v3246_v17  ;;  %v3265_v17 = vld [vmem:[%s4268_s1 + $0x20] sm:$0xff]  }
  0xac   :  { %1549 = vmatmul.mubr.bf16.gmra.mrb[52].mxu1 %v3180_v13  ;;  %1485 = vmatmul.mubr.bf16.gmra.mrb[68].mxu0 %v3183_v14  ;;  %v3262_v13 = vld [vmem:[%s4268_s1 + $0xe0] sm:$0xff]  }
  0xad   :  { %2817 = vmatpush3.bf16.msra.mxu0 %v3548_v46  ;;  %1556 = vmatprep.mubr.bf16.mxu1 %v3184_v15  ;;  %v3263_v14 = vld [vmem:[%s4268_s1 + $0x60] sm:$0xff]   ;;  %v2399_v15 = vcombine.high %v2371_v10, %v2371_v10 }
  0xae   :  { %2818 = vmatprep.subr.bf16.mxu0 %v3554_v47  ;;  %1492 = vmatprep.mubr.bf16.mxu0 %v3187_v16  ;;  %v3264_v16 = vld [vmem:[%s4268_s1 + $0xa0] sm:$0xff]  }
  0xb1   :  { %2819 = vmatpush3.bf16.msra.mxu0 %v3560_v48 }
  0xb2   :  { %2820 = vmatprep.subr.bf16.mxu0 %v3578_v53 }
  0xb4   :  { %1557 = vmatmul.mubr.bf16.gmra.mrb[56].mxu1 %v3186_v20  ;;  %1493 = vmatmul.mubr.bf16.gmra.mrb[72].mxu0 %v3189_v21  ;;  %v2398_v20 = vcombine.low %v2371_v10, %v2371_v10  ;;  %v3268_v21 = vld [vmem:[%s4268_s1 + $0xa8] sm:$0xff]  }
  0xb5   :  { %2821 = vmatpush3.bf16.msra.mxu0 %v3584_v54  ;;  %1564 = vmatprep.mubr.bf16.mxu1 %v2397_v22  ;;  %v3269_v22 = vld [vmem:[%s4268_s1 + $0x28] sm:$0xff]  }
  0xb6   :  { %2822 = vmatprep.subr.bf16.mxu0 %v3590_v55  ;;  %1500 = vmatprep.mubr.bf16.mxu0 %v2395_v23  ;;  %v3270_v23 = vld [vmem:[%s4268_s1 + $0x70] sm:$0xff]  }
  0xb9   :  { %2823 = vmatpush3.bf16.msra.mxu0 %v3595_v56 }
  0xba   :  { %2824 = vmatprep.subr.bf16.mxu0 %v3613_v62 }
  0xbc   :  { %1565 = vmatmul.mubr.bf16.gmra.mrb[60].mxu1 %v2396_v24  ;;  %1501 = vmatmul.mubr.bf16.gmra.mrb[76].mxu0 %v2394_v42  ;;  %v3214_v24 = vld [vmem:[%s4269_s0 + $0x250] ss:$28 sps:$4 sm:$0xff]  }
  0xbd   :  { %2825 = vmatpush3.bf16.msra.mxu0 %v3621_v33  ;;  %3012 = vmatprep.mubr.msk.bf16.mxu1 %vm572_vm0, %v3194_v58  ;;  %v3212_v42 = vld [vmem:[%s4269_s0 + $0x24c] ss:$28 sps:$4 sm:$0xff]  }
  0xbe   :  { %2826 = vmatprep.subr.bf16.mxu0 %v3627_v34  ;;  %1604 = vmatprep.mubr.bf16.mxu0 %v3198_v59 }
  0xc1   :  { %2827 = vmatpush3.bf16.msra.mxu0 %v3640_v41 }
  0xc2   :  { %2858 = vmatprep.subr.bf16.mxu0 %v3247_v32 }
  0xc4   :  { %3013 = vmatmul.mubr.msk.bf16.vlgmr.msra.gmra.mrb[64].mxu1 %vm572_vm0, %v3195_v60  ;;  %1605 = vmatmul.mubr.bf16.vlgmr.msra.gmra.mrb[80].mxu0 %v3196_v63 }
  0xc5   :  { %2899 = vmatpush3.bf16.msra.mxu1 %v3248_v40  ;;  %2859 = vmatpush3.bf16.msra.mxu0 %v3249_v43 }
  0xc6   :  { %2900 = vmatprep.subr.bf16.mxu1 %v3250_v44  ;;  %2860 = vmatprep.subr.bf16.mxu0 %v3251_v49 }
  0xc7   :  { %1612 = vmatprep.mubr.bf16.mxu0 %v3199_v35  ;;  %3016 = vmatprep.mubr.msk.bf16.mxu1 %vm572_vm0, %v3205_v1  ;;  %v2431_v35 = vld [vmem:[%s4269_s0 + $0x304] sm:$0x11] }
  0xc9   :  { %2901 = vmatpush3.bf16.msra.mxu1 %v3252_v52  ;;  %2861 = vmatpush3.bf16.msra.mxu0 %v3253_v0 }
  0xca   :  { %2902 = vmatprep.subr.bf16.mxu1 %v3254_v57  ;;  %2862 = vmatprep.subr.bf16.mxu0 %v3255_v2 }
  0xcc   :  { %1613 = vmatmul.mubr.bf16.gmra.mrb[84].mxu0 %v3201_v50  ;;  %3017 = vmatmul.mubr.msk.bf16.gmra.mrb[68].mxu1 %vm572_vm0, %v3206_v51  ;;  %v2459_v50 = vcombine.high %v2431_v35, %v2431_v35  ;;  %v3235_v51 = vld [vmem:[%s4269_s0 + $0x260] ss:$28 sps:$4 sm:$0xff]  }
  0xcd   :  { %2903 = vmatpush3.bf16.msra.mxu1 %v3256_v5  ;;  %2863 = vmatpush3.bf16.msra.mxu0 %v3257_v6  ;;  %v3233_v5 = vld [vmem:[%s4269_s0 + $0x25c] ss:$28 sps:$4 sm:$0xff]  }
  0xce   :  { %2904 = vmatprep.subr.bf16.mxu1 %v3258_v7  ;;  %2864 = vmatprep.subr.bf16.mxu0 %v3259_v8  ;;  %v3271_v8 = vld [vmem:[%s4268_s1 + $0x180] sm:$0xff]  }
  0xcf   :  { %1620 = vmatprep.mubr.bf16.mxu0 %v3202_v3  ;;  %1973 = vmatprep.mubr.bf16.mxu1 %v3211_v4  ;;  %v2458_v3 = vcombine.low %v2431_v35, %v2431_v35 }
  0xd1   :  { %2905 = vmatpush3.bf16.msra.mxu1 %v3260_v11  ;;  %2865 = vmatpush3.bf16.msra.mxu0 %v3261_v12  ;;  %v3238_v11 = vld [vmem:[%s4269_s0 + $0x298] ss:$28 sps:$4 sm:$0xff]  }
  0xd2   :  { %2906 = vmatprep.subr.bf16.mxu1 %v3262_v13  ;;  %2866 = vmatprep.subr.bf16.mxu0 %v3263_v14 }
  0xd4   :  { %1621 = vmatmul.mubr.bf16.gmra.mrb[88].mxu0 %v3204_v9 }
  0xd5   :  { %2907 = vmatpush3.bf16.msra.mxu1 %v3264_v16  ;;  %2867 = vmatpush3.bf16.msra.mxu0 %v3265_v17 }
  0xd6   :  { %2908 = vmatprep.subr.bf16.mxu1 %v3266_v18  ;;  %2868 = vmatprep.subr.bf16.mxu0 %v3267_v19 }
  0xd7   :  { %1628 = vmatprep.mubr.bf16.mxu0 %v2399_v15 }
  0xd9   :  { %2909 = vmatpush3.bf16.msra.mxu1 %v3268_v21  ;;  %2869 = vmatpush3.bf16.msra.mxu0 %v3269_v22  ;;  %v3240_v21 = vld [vmem:[%s4269_s0 + $0x294] ss:$28 sps:$4 sm:$0xff]   ;;  %v3272_v22 = vld [vmem:[%s4268_s1 + $0x188] sm:$0xff]  }
  0xda   :  { %2910 = vmatprep.subr.bf16.mxu1 %v3445_v25  ;;  %2870 = vmatprep.subr.bf16.mxu0 %v3270_v23  ;;  %v3209_v25 = vld [vmem:[%s4269_s0 + $0x254] ss:$28 sps:$4 sm:$0xff]  }
  0xdc   :  { %1629 = vmatmul.mubr.bf16.gmra.mrb[92].mxu0 %v2398_v20  ;;  %v3237_v20 = vld [vmem:[%s4269_s0 + $0x29c] ss:$28 sps:$4 sm:$0xff]  }
  0xdd   :  { %2911 = vmatpush3.bf16.msra.mxu1 %v3457_v27  ;;  %2871 = vmatpush3.bf16.msra.mxu0 %v3451_v26  ;;  %v3215_v26 = vld [vmem:[%s4269_s0 + $0x290] ss:$28 sps:$4 sm:$0xff]   ;;  %v3218_v27 = vld [vmem:[%s4269_s0 + $0x288] ss:$28 sps:$4 sm:$0xff]  }
  0xde   :  { %2912 = vmatprep.subr.bf16.mxu1 %v3469_v29  ;;  %2872 = vmatprep.subr.bf16.mxu0 %v3463_v28  ;;  %v3217_v28 = vld [vmem:[%s4269_s0 + $0x28c] ss:$28 sps:$4 sm:$0xff]   ;;  %v3220_v29 = vld [vmem:[%s4269_s0 + $0x284] ss:$28 sps:$4 sm:$0xff]  }
  0xdf   :  { %1909 = vmatprep.mubr.bf16.mxu0 %v3214_v24 }
  0xe1   :  { %2913 = vmatpush3.bf16.msra.mxu1 %v3481_v31  ;;  %2873 = vmatpush3.bf16.msra.mxu0 %v3475_v30  ;;  %v3221_v30 = vld [vmem:[%s4269_s0 + $0x2c8] ss:$28 sps:$4 sm:$0xff]   ;;  %v3224_v31 = vld [vmem:[%s4269_s0 + $0x2c0] ss:$28 sps:$4 sm:$0xff]  }
  0xe2   :  { %3032 = vmatprep.subr.bf16.mxu1 %v3500_v36  ;;  %2938 = vmatprep.subr.bf16.mxu0 %v3500_v36  ;;  %v2430_v36 = vld [vmem:[%s4269_s0 + $0x2fc] sm:$0x11] }
  0xe3   :  { %v2456_v63 = vcombine.low %v2430_v36, %v2430_v36 }
  0xe4   :  { %1974 = vmatmul.mubr.bf16.vlgmr.msra.gmra.mrb[72].mxu1 %v3209_v25  ;;  %1910 = vmatmul.mubr.bf16.vlgmr.msra.gmra.mrb[96].mxu0 %v3212_v42  ;;  %v3241_v25 = vld [vmem:[%s4269_s0 + $0x2d4] ss:$28 sps:$4 sm:$0xff]  }
  0xe5   :  { %3040 = vmatpush3.bf16.msra.mxu1 %v3505_v37  ;;  %2939 = vmatpush3.bf16.msra.mxu0 %v3505_v37  ;;  %v3223_v37 = vld [vmem:[%s4269_s0 + $0x2c4] ss:$28 sps:$4 sm:$0xff]   ;;  %v3243_v42 = vld [vmem:[%s4269_s0 + $0x2d0] ss:$28 sps:$4 sm:$0xff]  }
  0xe6   :  { %3033 = vmatprep.subr.bf16.mxu1 %v3511_v38  ;;  %1981 = vmatprep.mubr.bf16.mxu1 %v3215_v26 }
  0xe7   :  { %2940 = vmatprep.subr.bf16.mxu0 %v3511_v38  ;;  %1917 = vmatprep.mubr.bf16.mxu0 %v3218_v27  ;;  %v3226_v38 = vld [vmem:[%s4269_s0 + $0x2bc] ss:$28 sps:$4 sm:$0xff]  }
  0xe9   :  { %3041 = vmatpush3.bf16.msra.mxu1 %v3517_v39  ;;  %2941 = vmatpush3.bf16.msra.mxu0 %v3517_v39  ;;  %v2429_v39 = vld [vmem:[%s4269_s0 + $0x2f4] sm:$0x11] }
  0xea   :  { %3034 = vmatprep.subr.bf16.mxu1 %v3542_v45  ;;  %2942 = vmatprep.subr.bf16.mxu0 %v3542_v45  ;;  %v2457_v45 = vcombine.high %v2430_v36, %v2430_v36  ;;  %v2454_v32 = vcombine.low %v2429_v39, %v2429_v39 }
  0xec   :  { %1982 = vmatmul.mubr.bf16.gmra.mrb[76].mxu1 %v3217_v28  ;;  %1918 = vmatmul.mubr.bf16.gmra.mrb[100].mxu0 %v3220_v29 }
  0xed   :  { %3042 = vmatpush3.bf16.msra.mxu1 %v3548_v46  ;;  %2943 = vmatpush3.bf16.msra.mxu0 %v3548_v46  ;;  %v2455_v46 = vcombine.high %v2429_v39, %v2429_v39 }
  0xee   :  { %3035 = vmatprep.subr.bf16.mxu1 %v3554_v47  ;;  %1989 = vmatprep.mubr.bf16.mxu1 %v3221_v30 }
  0xef   :  { %2944 = vmatprep.subr.bf16.mxu0 %v3554_v47  ;;  %1925 = vmatprep.mubr.bf16.mxu0 %v3224_v31 }
  0xf1   :  { %3043 = vmatpush3.bf16.msra.mxu1 %v3560_v48  ;;  %2945 = vmatpush3.bf16.msra.mxu0 %v3560_v48 }
  0xf2   :  { %3036 = vmatprep.subr.bf16.mxu1 %v3578_v53  ;;  %2946 = vmatprep.subr.bf16.mxu0 %v3578_v53 }
  0xf4   :  { %1990 = vmatmul.mubr.bf16.gmra.mrb[80].mxu1 %v3223_v37  ;;  %1926 = vmatmul.mubr.bf16.gmra.mrb[104].mxu0 %v3226_v38  ;;  %v3242_v38 = vld [vmem:[%s4269_s0 + $0x30c] ss:$0 sps:$4 sm:$0x11]  }
  0xf5   :  { %3044 = vmatpush3.bf16.msra.mxu1 %v3584_v54  ;;  %2947 = vmatpush3.bf16.msra.mxu0 %v3584_v54 }
  0xf6   :  { %3037 = vmatprep.subr.bf16.mxu1 %v3590_v55  ;;  %v2496_v47 = vpop.f32.mrb[0].mxu0  ;;  %1997 = vmatprep.mubr.bf16.mxu1 %v2457_v45 }
  0xf7   :  { %v2536_v58 = vpop.f32.mrb[0].mxu1  ;;  %v2497_v59 = vpop.f32.mrb[1].mxu0  ;;  %2948 = vmatprep.subr.bf16.mxu0 %v3590_v55  ;;  %1933 = vmatprep.mubr.bf16.mxu0 %v2455_v46 }
  0xf8   :  { %v2498_v48 = vadd.f32 %v2497_v59, %v2496_v47  ;;  %v2537_v60 = vpop.f32.mrb[1].mxu1  ;;  %v2499_v53 = vpop.f32.mrb[2].mxu0  ;;  %v3245_v47 = vld [vmem:[%s4269_s0 + $0x2cc] ss:$28 sps:$4 sm:$0xff]  }
  0xf9   :  { %3045 = vmatpush3.bf16.msra.mxu1 %v3595_v56  ;;  %v2538_v54 = vadd.f32 %v2537_v60, %v2536_v58  ;;  %v2539_v1 = vpop.f32.mrb[2].mxu1  ;;  %2949 = vmatpush3.bf16.msra.mxu0 %v3595_v56  ;;  %v2500_v40 = vpop.f32.mrb[3].mxu0 }
  0xfa   :  { %3038 = vmatprep.subr.bf16.mxu1 %v3613_v62  ;;  %v2501_v55 = vadd.f32 %v2500_v40, %v2499_v53  ;;  %v2540_v43 = vpop.f32.mrb[3].mxu1  ;;  %2950 = vmatprep.subr.bf16.mxu0 %v3613_v62 }
  0xfb   :  { %v4089_v44 = vadd.f32 %v2538_v54, %v2498_v48  ;;  %v2541_v49 = vadd.f32 %v2540_v43, %v2539_v1 }
  0xfc   :  { %1998 = vmatmul.mubr.bf16.gmra.mrb[84].mxu1 %v2456_v63  ;;  %1934 = vmatmul.mubr.bf16.gmra.mrb[108].mxu0 %v2454_v32 }
  0xfd   :  { %v4094_v52 = vadd.f32 %v2541_v49, %v2501_v55  ;;  %3046 = vmatpush3.bf16.msra.mxu1 %v3621_v33  ;;  %2951 = vmatpush3.bf16.msra.mxu0 %v3621_v33 }
  0xfe   :  { %3039 = vmatprep.subr.bf16.mxu1 %v3627_v34  ;;  %v2502_v56 = vpop.f32.mrb[4].mxu0  ;;  %2952 = vmatprep.subr.bf16.mxu0 %v3627_v34  ;;  %v3236_v34 = vld [vmem:[%s4269_s0 + $0x264] ss:$28 sps:$4 sm:$0xff]  }
  0xff   :  { %v2542_v62 = vpop.f32.mrb[4].mxu1  ;;  %v2503_v0 = vpop.f32.mrb[5].mxu0  ;;  %2061 = vmatprep.mubr.bf16.mxu1 %v2459_v50  ;;  %2037 = vmatprep.mubr.bf16.mxu0 %v3235_v51 }
 0x100   :  { %v2504_v57 = vadd.f32 %v2503_v0, %v2502_v56  ;;  %v2543_v2 = vpop.f32.mrb[5].mxu1  ;;  %v2505_v4 = vpop.f32.mrb[6].mxu0 }
 0x101   :  { %3047 = vmatpush3.bf16.msra.mxu1 %v3640_v41  ;;  %v2544_v33 = vadd.f32 %v2543_v2, %v2542_v62  ;;  %v2545_v6 = vpop.f32.mrb[6].mxu1  ;;  %2953 = vmatpush3.bf16.msra.mxu0 %v3640_v41  ;;  %v2506_v7 = vpop.f32.mrb[7].mxu0 }
 0x102   :  { %3020 = vmatprep.subr.bf16.mxu1 %v3271_v8  ;;  %v2507_v9 = vadd.f32 %v2506_v7, %v2505_v4  ;;  %v2546_v10 = vpop.f32.mrb[7].mxu1 }
 0x103   :  { %v4114_v12 = vadd.f32 %v2544_v33, %v2504_v57  ;;  %v2547_v13 = vadd.f32 %v2546_v10, %v2545_v6 }
 0x104   :  { %2062 = vmatmul.mubr.bf16.vlgmr.msra.gmra.mrb[88].mxu1 %v2458_v3  ;;  %2038 = vmatmul.mubr.bf16.vlgmr.msra.gmra.mrb[112].mxu0 %v3233_v5 }
 0x105   :  { %v4116_v41 = vadd.f32 %v2547_v13, %v2507_v9  ;;  %3021 = vmatpush3.bf16.msra.mxu1 %v3271_v8  ;;  %3024 = vmatprep.mubr.msk.bf16.mxu1 %vm572_vm0, %v3236_v34 }
 0x106   :  { %3022 = vmatprep.subr.bf16.mxu1 %v3607_v61  ;;  %v2508_v14 = vpop.f32.mrb[8].mxu0  ;;  %2045 = vmatprep.mubr.bf16.mxu0 %v3238_v11 }
 0x107   :  { %v2548_v15 = vpop.f32.mrb[8].mxu1  ;;  %v2509_v16 = vpop.f32.mrb[9].mxu0 }
 0x108   :  { %v2510_v17 = vadd.f32 %v2509_v16, %v2508_v14  ;;  %v2549_v18 = vpop.f32.mrb[9].mxu1  ;;  %v2511_v19 = vpop.f32.mrb[10].mxu0 }
 0x109   :  { %3023 = vmatpush3.bf16.msra.mxu1 %v3272_v22  ;;  %v2550_v61 = vadd.f32 %v2549_v18, %v2548_v15  ;;  %v2551_v23 = vpop.f32.mrb[10].mxu1  ;;  %v2512_v24 = vpop.f32.mrb[11].mxu0 }
 0x10a   :  { %v2513_v26 = vadd.f32 %v2512_v24, %v2511_v19  ;;  %v2552_v27 = vpop.f32.mrb[11].mxu1 }
 0x10b   :  { %v700_v28 = vadd.f32 %v2550_v61, %v2510_v17  ;;  %v2553_v29 = vadd.f32 %v2552_v27, %v2551_v23 }
 0x10c   :  { %3025 = vmatmul.mubr.msk.bf16.vlgmr.msra.gmra.mrb[92].mxu1 %vm572_vm0, %v3237_v20  ;;  %2046 = vmatmul.mubr.bf16.gmra.mrb[116].mxu0 %v3240_v21 }
 0x10d   :  { %v703_v30 = vadd.f32 %v2553_v29, %v2513_v26  ;;  %3028 = vmatprep.mubr.msk.bf16.mxu1 %vm572_vm0, %v3241_v25  ;;  %2053 = vmatprep.mubr.bf16.mxu0 %v3243_v42 }
 0x10e   :  { %v2514_v31 = vpop.f32.mrb[12].mxu0 }
 0x10f   :  { %v2554_v36 = vpop.f32.mrb[12].mxu1  ;;  %v2515_v37 = vpop.f32.mrb[13].mxu0 }
 0x110   :  { %v2516_v39 = vadd.f32 %v2515_v37, %v2514_v31  ;;  %v2555_v45 = vpop.f32.mrb[13].mxu1  ;;  %v2517_v46 = vpop.f32.mrb[14].mxu0 }
 0x111   :  { %v2556_v58 = vadd.f32 %v2555_v45, %v2554_v36  ;;  %v2518_v59 = vpop.f32.mrb[15].mxu0  ;;  %v2557_v48 = vpop.f32.mrb[14].mxu1 }
 0x112   :  { %v2558_v60 = vpop.f32.mrb[15].mxu1 }
 0x113   :  { %v708_v53 = vadd.f32 %v2556_v58, %v2516_v39 }
 0x114   :  { %3029 = vmatmul.mubr.msk.bf16.gmra.mrb[96].mxu1 %vm572_vm0, %v3242_v38  ;;  %2054 = vmatmul.mubr.bf16.gmra.mrb[120].mxu0 %v3245_v47 }
 0x117   :  { %v2576_v63 = vpop.f32.mrb[16].mxu0  ;;  %v2990_v32 = vpop.f32.mrb[16].mxu1 }
 0x118   :  { %v2577_v35 = vpop.f32.mrb[17].mxu0  ;;  %v811_v54 = vpop.f32.mrb[17].mxu1 }
 0x119   :  { %v2578_v1 = vadd.f32 %v2577_v35, %v2576_v63  ;;  %v2579_v40 = vpop.f32.mrb[18].mxu0  ;;  %v2991_v55 = vpop.f32.mrb[18].mxu1 }
 0x11a   :  { %v2580_v43 = vpop.f32.mrb[19].mxu0  ;;  %v814_v49 = vpop.f32.mrb[19].mxu1 }
 0x11b   :  { %v2581_v50 = vadd.f32 %v2580_v43, %v2579_v40  ;;  %v748_v51 = vadd.f32 %v2578_v1, %v4089_v44 }
 0x11d   :  { %v4145_v56 = vadd.f32 %v811_v54, %v748_v51  ;;  %v751_v62 = vadd.f32 %v2581_v50, %v4094_v52 }
 0x11f   :  { %v4148_v0 = vadd.f32 %v814_v49, %v751_v62  ;;  %v2582_v57 = vpop.f32.mrb[20].mxu0  ;;  %v2994_v2 = vpop.f32.mrb[20].mxu1 }
 0x120   :  { %v2583_v3 = vpop.f32.mrb[21].mxu0  ;;  %v827_v4 = vpop.f32.mrb[21].mxu1 }
 0x121   :  { %v2584_v5 = vadd.f32 %v2583_v3, %v2582_v57  ;;  %v2585_v33 = vpop.f32.mrb[22].mxu0  ;;  %v2995_v6 = vpop.f32.mrb[22].mxu1 }
 0x122   :  { %v2586_v7 = vpop.f32.mrb[23].mxu0  ;;  %v830_v34 = vpop.f32.mrb[23].mxu1 }
 0x123   :  { %v756_v8 = vadd.f32 %v2584_v5, %v4114_v12  ;;  %v2587_v9 = vadd.f32 %v2586_v7, %v2585_v33 }
 0x125   :  { %v4151_v10 = vadd.f32 %v2990_v32, %v756_v8  ;;  %v759_v44 = vadd.f32 %v2587_v9, %v4116_v41 }
 0x127   :  { %v4154_v11 = vadd.f32 %v2991_v55, %v759_v44  ;;  %v2588_v52 = vpop.f32.mrb[24].mxu0 }
 0x128   :  { %v2589_v13 = vpop.f32.mrb[25].mxu0 }
 0x129   :  { %v2590_v14 = vadd.f32 %v2589_v13, %v2588_v52  ;;  %v2591_v15 = vpop.f32.mrb[26].mxu0 }
 0x12a   :  { %v2592_v16 = vpop.f32.mrb[27].mxu0 }
 0x12b   :  { %v2593_v17 = vadd.f32 %v2592_v16, %v2591_v15  ;;  %v764_v18 = vadd.f32 %v2590_v14, %v700_v28 }
 0x12d   :  { %v4156_v19 = vadd.f32 %v827_v4, %v764_v18  ;;  %v767_v20 = vadd.f32 %v2593_v17, %v703_v30 }
 0x12f   :  { %v4158_v21 = vadd.f32 %v830_v34, %v767_v20  ;;  %v2594_v12 = vpop.f32.mrb[28].mxu0 }
 0x130   :  { %v2595_v22 = vpop.f32.mrb[29].mxu0 }
 0x131   :  { %v2596_v61 = vadd.f32 %v2595_v22, %v2594_v12  ;;  %v2597_v23 = vpop.f32.mrb[30].mxu0 }
 0x132   :  { %v2598_v24 = vpop.f32.mrb[31].mxu0 }
 0x133   :  { %v772_v41 = vadd.f32 %v2596_v61, %v708_v53 }
 0x135   :  { %v4160_v25 = vadd.f32 %v2994_v2, %v772_v41 }
 0x137   :  { %v2622_v42 = vpop.f32.mrb[32].mxu0  ;;  %v2662_v26 = vpop.f32.mrb[24].mxu1 }
 0x138   :  { %v2623_v27 = vpop.f32.mrb[33].mxu0  ;;  %v2663_v29 = vpop.f32.mrb[25].mxu1 }
 0x139   :  { %v2624_v31 = vadd.f32 %v2623_v27, %v2622_v42  ;;  %v2664_v36 = vadd.f32 %v2663_v29, %v2662_v26  ;;  %v2625_v28 = vpop.f32.mrb[34].mxu0  ;;  %v2665_v37 = vpop.f32.mrb[26].mxu1 }
 0x13a   :  { %v2626_v38 = vpop.f32.mrb[35].mxu0  ;;  %v2666_v30 = vpop.f32.mrb[27].mxu1 }
 0x13b   :  { %v1110_v39 = vadd.f32 %v2664_v36, %v2624_v31  ;;  %v2627_v45 = vadd.f32 %v2626_v38, %v2625_v28  ;;  %v2667_v46 = vadd.f32 %v2666_v30, %v2665_v37 }
 0x13d   :  { %v1113_v47 = vadd.f32 %v2667_v46, %v2627_v45 }
 0x13f   :  { %v2628_v58 = vpop.f32.mrb[36].mxu0  ;;  %v2668_v59 = vpop.f32.mrb[28].mxu1 }
 0x140   :  { %v2629_v48 = vpop.f32.mrb[37].mxu0  ;;  %v2669_v60 = vpop.f32.mrb[29].mxu1 }
 0x141   :  { %v2630_v53 = vadd.f32 %v2629_v48, %v2628_v58  ;;  %v2670_v63 = vadd.f32 %v2669_v60, %v2668_v59  ;;  %v2631_v32 = vpop.f32.mrb[38].mxu0  ;;  %v2671_v35 = vpop.f32.mrb[30].mxu1 }
 0x142   :  { %v2632_v54 = vpop.f32.mrb[39].mxu0  ;;  %v2672_v1 = vpop.f32.mrb[31].mxu1 }
 0x143   :  { %v1118_v40 = vadd.f32 %v2670_v63, %v2630_v53  ;;  %v2633_v55 = vadd.f32 %v2632_v54, %v2631_v32  ;;  %v2673_v43 = vadd.f32 %v2672_v1, %v2671_v35 }
 0x145   :  { %v1121_v49 = vadd.f32 %v2673_v43, %v2633_v55 }
 0x147   :  { %v2634_v50 = vpop.f32.mrb[40].mxu0  ;;  %v2674_v51 = vpop.f32.mrb[32].mxu1 }
 0x148   :  { %v2635_v62 = vpop.f32.mrb[41].mxu0  ;;  %v2675_v57 = vpop.f32.mrb[33].mxu1 }
 0x149   :  { %v2636_v2 = vadd.f32 %v2635_v62, %v2634_v50  ;;  %v2676_v3 = vadd.f32 %v2675_v57, %v2674_v51  ;;  %v2637_v4 = vpop.f32.mrb[42].mxu0  ;;  %v2677_v5 = vpop.f32.mrb[34].mxu1 }
 0x14a   :  { %v2638_v33 = vpop.f32.mrb[43].mxu0  ;;  %v2678_v6 = vpop.f32.mrb[35].mxu1 }
 0x14b   :  { %v1126_v7 = vadd.f32 %v2676_v3, %v2636_v2  ;;  %v2639_v34 = vadd.f32 %v2638_v33, %v2637_v4  ;;  %v2679_v8 = vadd.f32 %v2678_v6, %v2677_v5 }
 0x14d   :  { %v1129_v9 = vadd.f32 %v2679_v8, %v2639_v34 }
 0x14f   :  { %v2640_v44 = vpop.f32.mrb[44].mxu0  ;;  %v2680_v52 = vpop.f32.mrb[36].mxu1 }
 0x150   :  { %v2641_v13 = vpop.f32.mrb[45].mxu0  ;;  %v2681_v14 = vpop.f32.mrb[37].mxu1 }
 0x151   :  { %v2642_v15 = vadd.f32 %v2641_v13, %v2640_v44  ;;  %v2682_v16 = vadd.f32 %v2681_v14, %v2680_v52  ;;  %v2643_v17 = vpop.f32.mrb[46].mxu0  ;;  %v2683_v18 = vpop.f32.mrb[38].mxu1 }
 0x152   :  { %v2644_v20 = vpop.f32.mrb[47].mxu0  ;;  %v2684_v12 = vpop.f32.mrb[39].mxu1 }
 0x153   :  { %v1134_v22 = vadd.f32 %v2682_v16, %v2642_v15 }
 0x157   :  { %v2702_v61 = vpop.f32.mrb[48].mxu0  ;;  %v3002_v23 = vpop.f32.mrb[40].mxu1 }
 0x158   :  { %v2703_v24 = vpop.f32.mrb[49].mxu0  ;;  %v1237_v41 = vpop.f32.mrb[41].mxu1 }
 0x159   :  { %v2704_v42 = vadd.f32 %v2703_v24, %v2702_v61  ;;  %v2705_v26 = vpop.f32.mrb[50].mxu0  ;;  %v3003_v27 = vpop.f32.mrb[42].mxu1 }
 0x15a   :  { %v2706_v29 = vpop.f32.mrb[51].mxu0  ;;  %v1240_v31 = vpop.f32.mrb[43].mxu1 }
 0x15b   :  { %v2707_v36 = vadd.f32 %v2706_v29, %v2705_v26  ;;  %v1174_v28 = vadd.f32 %v2704_v42, %v1110_v39 }
 0x15d   :  { %v4162_v37 = vadd.f32 %v1237_v41, %v1174_v28  ;;  %v1177_v38 = vadd.f32 %v2707_v36, %v1113_v47 }
 0x15f   :  { %v1267_v30 = vmax.f32 %v4145_v56, %v4162_v37  ;;  %v4166_v45 = vadd.f32 %v1240_v31, %v1177_v38  ;;  %v2708_v46 = vpop.f32.mrb[52].mxu0  ;;  %v3006_v58 = vpop.f32.mrb[44].mxu1 }
 0x160   :  { %v2709_v59 = vpop.f32.mrb[53].mxu0  ;;  %v1253_v48 = vpop.f32.mrb[45].mxu1 }
 0x161   :  { %v1268_v60 = vmax.f32 %v4148_v0, %v4166_v45  ;;  %v2710_v53 = vadd.f32 %v2709_v59, %v2708_v46  ;;  %v2711_v63 = vpop.f32.mrb[54].mxu0  ;;  %v3007_v32 = vpop.f32.mrb[46].mxu1 }
 0x162   :  { %v2712_v35 = vpop.f32.mrb[55].mxu0  ;;  %v1256_v39 = vpop.f32.mrb[47].mxu1 }
 0x163   :  { %v1182_v54 = vadd.f32 %v2710_v53, %v1118_v40  ;;  %v2713_v1 = vadd.f32 %v2712_v35, %v2711_v63 }
 0x165   :  { %v4170_v47 = vadd.f32 %v3002_v23, %v1182_v54  ;;  %v1185_v55 = vadd.f32 %v2713_v1, %v1121_v49 }
 0x167   :  { %v1269_v43 = vmax.f32 %v4151_v10, %v4170_v47  ;;  %v4174_v50 = vadd.f32 %v3003_v27, %v1185_v55  ;;  %v2714_v51 = vpop.f32.mrb[56].mxu0 }
 0x168   :  { %v2715_v62 = vpop.f32.mrb[57].mxu0 }
 0x169   :  { %v1270_v57 = vmax.f32 %v4154_v11, %v4174_v50  ;;  %v2716_v2 = vadd.f32 %v2715_v62, %v2714_v51  ;;  %v2717_v3 = vpop.f32.mrb[58].mxu0 }
 0x16a   :  { %v2718_v4 = vpop.f32.mrb[59].mxu0 }
 0x16b   :  { %v2719_v5 = vadd.f32 %v2718_v4, %v2717_v3  ;;  %v1190_v33 = vadd.f32 %v2716_v2, %v1126_v7 }
 0x16d   :  { %v4178_v40 = vadd.f32 %v1253_v48, %v1190_v33  ;;  %v1193_v6 = vadd.f32 %v2719_v5, %v1129_v9 }
 0x16f   :  { %v1271_v49 = vmax.f32 %v4156_v19, %v4178_v40  ;;  %v4182_v34 = vadd.f32 %v1256_v39, %v1193_v6  ;;  %v2720_v8 = vpop.f32.mrb[60].mxu0 }
 0x170   :  { %v2721_v44 = vpop.f32.mrb[61].mxu0 }
 0x171   :  { %v1272_v52 = vmax.f32 %v4158_v21, %v4182_v34  ;;  %v2722_v13 = vadd.f32 %v2721_v44, %v2720_v8  ;;  %v2723_v14 = vpop.f32.mrb[62].mxu0 }
 0x172   :  { %v2724_v15 = vpop.f32.mrb[63].mxu0 }
 0x173   :  { %v1198_v16 = vadd.f32 %v2722_v13, %v1134_v22 }
 0x175   :  { %v4186_v17 = vadd.f32 %v3006_v58, %v1198_v16 }
 0x177   :  { %v2748_v7 = vpop.f32.mrb[64].mxu0  ;;  %v2788_v18 = vpop.f32.mrb[48].mxu1  ;;  %v1273_v9 = vmax.f32 %v4160_v25, %v4186_v17 }
 0x178   :  { %v2749_v20 = vpop.f32.mrb[65].mxu0  ;;  %v2789_v12 = vpop.f32.mrb[49].mxu1 }
 0x179   :  { %v2750_v61 = vadd.f32 %v2749_v20, %v2748_v7  ;;  %v2790_v23 = vadd.f32 %v2789_v12, %v2788_v18  ;;  %v2751_v24 = vpop.f32.mrb[66].mxu0  ;;  %v2791_v41 = vpop.f32.mrb[50].mxu1 }
 0x17a   :  { %v2752_v42 = vpop.f32.mrb[67].mxu0  ;;  %v2792_v26 = vpop.f32.mrb[51].mxu1 }
 0x17b   :  { %v1543_v27 = vadd.f32 %v2790_v23, %v2750_v61  ;;  %v2753_v29 = vadd.f32 %v2752_v42, %v2751_v24  ;;  %v2793_v31 = vadd.f32 %v2792_v26, %v2791_v41 }
 0x17d   :  { %v1546_v36 = vadd.f32 %v2793_v31, %v2753_v29 }
 0x17f   :  { %v2754_v22 = vpop.f32.mrb[68].mxu0  ;;  %v2794_v28 = vpop.f32.mrb[52].mxu1 }
 0x180   :  { %v2755_v38 = vpop.f32.mrb[69].mxu0  ;;  %v2795_v46 = vpop.f32.mrb[53].mxu1 }
 0x181   :  { %v2756_v58 = vadd.f32 %v2755_v38, %v2754_v22  ;;  %v2796_v59 = vadd.f32 %v2795_v46, %v2794_v28  ;;  %v2757_v48 = vpop.f32.mrb[70].mxu0  ;;  %v2797_v53 = vpop.f32.mrb[54].mxu1 }
 0x182   :  { %v2758_v63 = vpop.f32.mrb[71].mxu0  ;;  %v2798_v32 = vpop.f32.mrb[55].mxu1 }
 0x183   :  { %v1551_v35 = vadd.f32 %v2796_v59, %v2756_v58  ;;  %v2759_v39 = vadd.f32 %v2758_v63, %v2757_v48  ;;  %v2799_v54 = vadd.f32 %v2798_v32, %v2797_v53 }
 0x185   :  { %v1554_v1 = vadd.f32 %v2799_v54, %v2759_v39 }
 0x187   :  { %v2760_v55 = vpop.f32.mrb[72].mxu0  ;;  %v2800_v51 = vpop.f32.mrb[56].mxu1 }
 0x188   :  { %v2761_v62 = vpop.f32.mrb[73].mxu0  ;;  %v2801_v2 = vpop.f32.mrb[57].mxu1 }
 0x189   :  { %v2762_v3 = vadd.f32 %v2761_v62, %v2760_v55  ;;  %v2802_v4 = vadd.f32 %v2801_v2, %v2800_v51  ;;  %v2763_v5 = vpop.f32.mrb[74].mxu0  ;;  %v2803_v33 = vpop.f32.mrb[58].mxu1 }
 0x18a   :  { %v2764_v6 = vpop.f32.mrb[75].mxu0  ;;  %v2804_v8 = vpop.f32.mrb[59].mxu1 }
 0x18b   :  { %v1559_v44 = vadd.f32 %v2802_v4, %v2762_v3  ;;  %v2765_v13 = vadd.f32 %v2764_v6, %v2763_v5  ;;  %v2805_v14 = vadd.f32 %v2804_v8, %v2803_v33 }
 0x18d   :  { %v1562_v15 = vadd.f32 %v2805_v14, %v2765_v13 }
 0x18f   :  { %v2766_v16 = vpop.f32.mrb[76].mxu0  ;;  %v2806_v7 = vpop.f32.mrb[60].mxu1 }
 0x190   :  { %v2767_v18 = vpop.f32.mrb[77].mxu0  ;;  %v2807_v20 = vpop.f32.mrb[61].mxu1 }
 0x191   :  { %v2768_v12 = vadd.f32 %v2767_v18, %v2766_v16  ;;  %v2808_v61 = vadd.f32 %v2807_v20, %v2806_v7  ;;  %v2769_v23 = vpop.f32.mrb[78].mxu0  ;;  %v2809_v24 = vpop.f32.mrb[62].mxu1 }
 0x192   :  { %v2770_v41 = vpop.f32.mrb[79].mxu0  ;;  %v2810_v42 = vpop.f32.mrb[63].mxu1 }
 0x193   :  { %v1567_v26 = vadd.f32 %v2808_v61, %v2768_v12 }
 0x197   :  { %v2828_v29 = vpop.f32.mrb[80].mxu0  ;;  %v3014_v31 = vpop.f32.mrb[64].mxu1 }
 0x198   :  { %v2829_v22 = vpop.f32.mrb[81].mxu0  ;;  %v1670_v28 = vpop.f32.mrb[65].mxu1 }
 0x199   :  { %v2830_v38 = vadd.f32 %v2829_v22, %v2828_v29  ;;  %v2831_v46 = vpop.f32.mrb[82].mxu0  ;;  %v3015_v58 = vpop.f32.mrb[66].mxu1 }
 0x19a   :  { %v2832_v59 = vpop.f32.mrb[83].mxu0  ;;  %v1673_v48 = vpop.f32.mrb[67].mxu1 }
 0x19b   :  { %v2833_v53 = vadd.f32 %v2832_v59, %v2831_v46  ;;  %v1607_v63 = vadd.f32 %v2830_v38, %v1543_v27 }
 0x19d   :  { %v1671_v32 = vadd.f32 %v1670_v28, %v1607_v63  ;;  %v1610_v39 = vadd.f32 %v2833_v53, %v1546_v36 }
 0x19f   :  { %v4193_v54 = vmax.f32 %v1267_v30, %v1671_v32  ;;  %v1674_v55 = vadd.f32 %v1673_v48, %v1610_v39  ;;  %v2834_v51 = vpop.f32.mrb[84].mxu0  ;;  %v3018_v62 = vpop.f32.mrb[68].mxu1 }
 0x1a0   :  { %v2835_v2 = vpop.f32.mrb[85].mxu0  ;;  %v1686_v3 = vpop.f32.mrb[69].mxu1 }
 0x1a1   :  { %v4198_v4 = vmax.f32 %v1268_v60, %v1674_v55  ;;  %v2836_v5 = vadd.f32 %v2835_v2, %v2834_v51  ;;  %v2837_v33 = vpop.f32.mrb[86].mxu0  ;;  %v3019_v27 = vpop.f32.mrb[70].mxu1 }
 0x1a2   :  { %v2838_v6 = vpop.f32.mrb[87].mxu0  ;;  %v1689_v36 = vpop.f32.mrb[71].mxu1 }
 0x1a3   :  { %v1615_v8 = vadd.f32 %v2836_v5, %v1551_v35  ;;  %v2839_v13 = vadd.f32 %v2838_v6, %v2837_v33 }
 0x1a5   :  { %v1679_v56 = vadd.f32 %v3014_v31, %v1615_v8  ;;  %v1618_v37 = vadd.f32 %v2839_v13, %v1554_v1 }
 0x1a7   :  { %v4203_v30 = vmax.f32 %v1269_v43, %v1679_v56  ;;  %v1682_v14 = vadd.f32 %v3015_v58, %v1618_v37  ;;  %v2840_v16 = vpop.f32.mrb[88].mxu0 }
 0x1a8   :  { %v2841_v7 = vpop.f32.mrb[89].mxu0 }
 0x1a9   :  { %v4208_v0 = vmax.f32 %v1270_v57, %v1682_v14  ;;  %v2842_v45 = vadd.f32 %v2841_v7, %v2840_v16  ;;  %v2843_v60 = vpop.f32.mrb[90].mxu0 }
 0x1aa   :  { %v2844_v18 = vpop.f32.mrb[91].mxu0 }
 0x1ab   :  { %v2845_v35 = vadd.f32 %v2844_v18, %v2843_v60  ;;  %v1623_v20 = vadd.f32 %v2842_v45, %v1559_v44 }
 0x1ad   :  { %v1687_v12 = vadd.f32 %v1686_v3, %v1623_v20  ;;  %v1626_v1 = vadd.f32 %v2845_v35, %v1562_v15 }
 0x1af   :  { %v4213_v10 = vmax.f32 %v1271_v49, %v1687_v12  ;;  %v1690_v47 = vadd.f32 %v1689_v36, %v1626_v1  ;;  %v2846_v43 = vpop.f32.mrb[92].mxu0 }
 0x1b0   :  { %v2847_v61 = vpop.f32.mrb[93].mxu0 }
 0x1b1   :  { %v4218_v11 = vmax.f32 %v1272_v52, %v1690_v47  ;;  %v2848_v50 = vadd.f32 %v2847_v61, %v2846_v43  ;;  %v2849_v57 = vpop.f32.mrb[94].mxu0 }
 0x1b2   :  { %v2850_v23 = vpop.f32.mrb[95].mxu0 }
 0x1b3   :  { %v1631_v24 = vadd.f32 %v2848_v50, %v1567_v26 }
 0x1b5   :  { %v1695_v44 = vadd.f32 %v3018_v62, %v1631_v24 }
 0x1b7   :  { %v2874_v41 = vpop.f32.mrb[96].mxu0  ;;  %v2914_v15 = vpop.f32.mrb[72].mxu1  ;;  %v4223_v19 = vmax.f32 %v1273_v9, %v1695_v44 }
 0x1b8   :  { %v2875_v40 = vpop.f32.mrb[97].mxu0  ;;  %v2915_v49 = vpop.f32.mrb[73].mxu1 }
 0x1b9   :  { %v2876_v42 = vadd.f32 %v2875_v40, %v2874_v41  ;;  %v2916_v29 = vadd.f32 %v2915_v49, %v2914_v15  ;;  %v2877_v31 = vpop.f32.mrb[98].mxu0  ;;  %v2917_v21 = vpop.f32.mrb[74].mxu1 }
 0x1ba   :  { %v2878_v34 = vpop.f32.mrb[99].mxu0  ;;  %v2918_v52 = vpop.f32.mrb[75].mxu1 }
 0x1bb   :  { %v1976_v22 = vadd.f32 %v2916_v29, %v2876_v42  ;;  %v2879_v28 = vadd.f32 %v2878_v34, %v2877_v31  ;;  %v2919_v38 = vadd.f32 %v2918_v52, %v2917_v21 }
 0x1bd   :  { %v1979_v26 = vadd.f32 %v2919_v38, %v2879_v28 }
 0x1bf   :  { %v2880_v46 = vpop.f32.mrb[100].mxu0  ;;  %v2920_v58 = vpop.f32.mrb[76].mxu1 }
 0x1c0   :  { %v2881_v59 = vpop.f32.mrb[101].mxu0  ;;  %v2921_v48 = vpop.f32.mrb[77].mxu1 }
 0x1c1   :  { %v2882_v53 = vadd.f32 %v2881_v59, %v2880_v46  ;;  %v2922_v25 = vadd.f32 %v2921_v48, %v2920_v58  ;;  %v2883_v17 = vpop.f32.mrb[102].mxu0  ;;  %v2923_v9 = vpop.f32.mrb[78].mxu1 }
 0x1c2   :  { %v2884_v63 = vpop.f32.mrb[103].mxu0  ;;  %v2924_v32 = vpop.f32.mrb[79].mxu1 }
 0x1c3   :  { %v1984_v39 = vadd.f32 %v2922_v25, %v2882_v53  ;;  %v2885_v55 = vadd.f32 %v2884_v63, %v2883_v17  ;;  %v2925_v51 = vadd.f32 %v2924_v32, %v2923_v9  ;;  %v2465_v17 = vld [vmem:[%s4270_s2] ss:$0 sm:$0xff] }
 0x1c5   :  { %v1987_v62 = vadd.f32 %v2925_v51, %v2885_v55 }
 0x1c7   :  { %v2886_v2 = vpop.f32.mrb[104].mxu0  ;;  %v2926_v3 = vpop.f32.mrb[80].mxu1 }
 0x1c8   :  { %v2887_v5 = vpop.f32.mrb[105].mxu0  ;;  %v2927_v33 = vpop.f32.mrb[81].mxu1 }
 0x1c9   :  { %v2888_v27 = vadd.f32 %v2887_v5, %v2886_v2  ;;  %v2928_v6 = vadd.f32 %v2927_v33, %v2926_v3  ;;  %v2889_v36 = vpop.f32.mrb[106].mxu0  ;;  %v2929_v8 = vpop.f32.mrb[82].mxu1 }
 0x1ca   :  { %v2890_v13 = vpop.f32.mrb[107].mxu0  ;;  %v2930_v56 = vpop.f32.mrb[83].mxu1 }
 0x1cb   :  { %v4225_v37 = vadd.f32 %v2928_v6, %v2888_v27  ;;  %v2891_v14 = vadd.f32 %v2890_v13, %v2889_v36  ;;  %v2931_v16 = vadd.f32 %v2930_v56, %v2929_v8 }
 0x1cd   :  { %v4227_v7 = vadd.f32 %v2931_v16, %v2891_v14 }
 0x1cf   :  { %v2892_v45 = vpop.f32.mrb[108].mxu0  ;;  %v2932_v60 = vpop.f32.mrb[84].mxu1 }
 0x1d0   :  { %v2893_v18 = vpop.f32.mrb[109].mxu0  ;;  %v2933_v35 = vpop.f32.mrb[85].mxu1 }
 0x1d1   :  { %v2894_v20 = vadd.f32 %v2893_v18, %v2892_v45  ;;  %v2934_v12 = vadd.f32 %v2933_v35, %v2932_v60  ;;  %v2895_v1 = vpop.f32.mrb[110].mxu0  ;;  %v2935_v47 = vpop.f32.mrb[86].mxu1 }
 0x1d2   :  { %v2896_v43 = vpop.f32.mrb[111].mxu0  ;;  %v2936_v61 = vpop.f32.mrb[87].mxu1 }
 0x1d3   :  { %v2000_v50 = vadd.f32 %v2934_v12, %v2894_v20 }
 0x1d7   :  { %v2972_v57 = vpop.f32.mrb[88].mxu1  ;;  %v2954_v23 = vpop.f32.mrb[112].mxu0 }
 0x1d8   :  { %v2973_v24 = vpop.f32.mrb[89].mxu1  ;;  %v2955_v44 = vpop.f32.mrb[113].mxu0 }
 0x1d9   :  { %v2974_v41 = vadd.f32 %v2973_v24, %v2972_v57  ;;  %v2956_v15 = vadd.f32 %v2955_v44, %v2954_v23  ;;  %v2957_v40 = vpop.f32.mrb[114].mxu0  ;;  %v2975_v49 = vpop.f32.mrb[90].mxu1 }
 0x1da   :  { %v2958_v42 = vpop.f32.mrb[115].mxu0  ;;  %v2976_v29 = vpop.f32.mrb[91].mxu1 }
 0x1db   :  { %v2959_v31 = vadd.f32 %v2958_v42, %v2957_v40  ;;  %v2040_v21 = vadd.f32 %v2956_v15, %v1976_v22  ;;  %v2064_v34 = vadd.f32 %v2974_v41, %v2000_v50 }
 0x1dd   :  { %v2043_v52 = vadd.f32 %v2959_v31, %v1979_v26 }
 0x1df   :  { %v3026_v28 = vpop.f32.mrb[92].mxu1  ;;  %v2960_v38 = vpop.f32.mrb[116].mxu0 }
 0x1e0   :  { %v2103_v46 = vpop.f32.mrb[93].mxu1  ;;  %v2961_v58 = vpop.f32.mrb[117].mxu0 }
 0x1e1   :  { %v2104_v59 = vadd.f32 %v2103_v46, %v2040_v21  ;;  %v3027_v48 = vpop.f32.mrb[94].mxu1  ;;  %v2962_v53 = vadd.f32 %v2961_v58, %v2960_v38  ;;  %v2963_v25 = vpop.f32.mrb[118].mxu0 }
 0x1e2   :  { %v2106_v9 = vpop.f32.mrb[95].mxu1  ;;  %v2964_v63 = vpop.f32.mrb[119].mxu0 }
 0x1e3   :  { %v2133_v32 = vmax.f32 %v4193_v54, %v2104_v59  ;;  %v2107_v55 = vadd.f32 %v2106_v9, %v2043_v52  ;;  %v2048_v22 = vadd.f32 %v2962_v53, %v1984_v39  ;;  %v2965_v51 = vadd.f32 %v2964_v63, %v2963_v25 }
 0x1e5   :  { %v2147_v26 = vadd.f32 %v2465_v17, %v2133_v32  ;;  %v2134_v2 = vmax.f32 %v4198_v4, %v2107_v55  ;;  %v2112_v3 = vadd.f32 %v3026_v28, %v2048_v22  ;;  %v2051_v5 = vadd.f32 %v2965_v51, %v1987_v62 }
 0x1e7   :  { %v2154_v33 = vmax.f32 %v2147_v26, 0.0  ;;  %v2148_v27 = vadd.f32 %v2465_v17, %v2134_v2  ;;  %v2135_v6 = vmax.f32 %v4203_v30, %v2112_v3  ;;  %v2115_v36 = vadd.f32 %v3027_v48, %v2051_v5  ;;  %v3030_v8 = vpop.f32.mrb[96].mxu1  ;;  %v2966_v13 = vpop.f32.mrb[120].mxu0 }
 0x1e8   :  { %v2128_v56 = vadd.f32 %v3030_v8, %v2064_v34  ;;  %v2967_v14 = vpop.f32.mrb[121].mxu0  ;;  %v2119_v16 = vpop.f32.mrb[97].mxu1 }
 0x1e9   :  { %v2473_v54 = vpack.c.bf16 %v2154_v33, %v2154_v33  ;;  %v2155_v45 = vmax.f32 %v2148_v27, 0.0  ;;  %v2149_v39 = vadd.f32 %v2465_v17, %v2135_v6  ;;  %v2136_v60 = vmax.f32 %v4208_v0, %v2115_v36  ;;  %v2969_v18 = vpop.f32.mrb[122].mxu0  ;;  %v3031_v4 = vpop.f32.mrb[98].mxu1 }
 0x1ea   :  { %v2139_v62 = vmax.f32 %v4223_v19, %v2128_v56  ;;  %v2968_v35 = vadd.f32 %v2967_v14, %v2966_v13  ;;  %v2970_v20 = vpop.f32.mrb[123].mxu0  ;;  %v2122_v12 = vpop.f32.mrb[99].mxu1 }
 0x1eb   :  { %2191 = vst.msk [vmem:[%s4271_s3] sm:$0xf] %vm2190_vm1, %v2473_v54  ;;  %v2474_v30 = vpack.c.bf16 %v2155_v45, %v2155_v45  ;;  %v2156_v1 = vmax.f32 %v2149_v39, 0.0  ;;  %v2150_v47 = vadd.f32 %v2465_v17, %v2136_v60  ;;  %v2971_v43 = vadd.f32 %v2970_v20, %v2969_v18 }
 0x1ec   :  { %v2153_v61 = vadd.f32 %v2465_v17, %v2139_v62  ;;  %v2056_v50 = vadd.f32 %v2968_v35, %v4225_v37 }
 0x1ed   :  { %2192 = vst.msk [vmem:[%s4271_s3 + $0x4] sm:$0xf] %vm2190_vm1, %v2474_v30  ;;  %v2475_v0 = vpack.c.bf16 %v2156_v1, %v2156_v1  ;;  %v2157_v19 = vmax.f32 %v2150_v47, 0.0  ;;  %v2059_v57 = vadd.f32 %v2971_v43, %v4227_v7 }
 0x1ee   :  { %v2160_v23 = vmax.f32 %v2153_v61, 0.0  ;;  %v2120_v24 = vadd.f32 %v2119_v16, %v2056_v50 }
 0x1ef   :  { %2193 = vst.msk [vmem:[%s4271_s3 + $0x8] sm:$0xf] %vm2190_vm1, %v2475_v0  ;;  %v2476_v44 = vpack.c.bf16 %v2157_v19, %v2157_v19  ;;  %v2123_v41 = vadd.f32 %v2122_v12, %v2059_v57 }
 0x1f0   :  { %v2479_v37 = vpack.c.bf16 %v2160_v23, %v2160_v23  ;;  %v2137_v15 = vmax.f32 %v4213_v10, %v2120_v24 }
 0x1f1   :  { %2194 = vst.msk [vmem:[%s4271_s3 + $0xc] sm:$0xf] %vm2190_vm1, %v2476_v44  ;;  %v2138_v7 = vmax.f32 %v4218_v11, %v2123_v41 }
 0x1f2   :  { %2198 = vst.msk [vmem:[%s4271_s3 + $0x18] sm:$0x1] %vm2197_vm2, %v2479_v37  ;;  %v2151_v40 = vadd.f32 %v2465_v17, %v2137_v15 }
 0x1f3   :  { %v2152_v49 = vadd.f32 %v2465_v17, %v2138_v7 }
 0x1f4   :  { %v2158_v42 = vmax.f32 %v2151_v40, 0.0 }
 0x1f5   :  { %v2159_v29 = vmax.f32 %v2152_v49, 0.0 }
 0x1f6   :  { %v2477_v31 = vpack.c.bf16 %v2158_v42, %v2158_v42 }
 0x1f7   :  { %v2478_v21 = vpack.c.bf16 %v2159_v29, %v2159_v29 }
 0x1f8   :  { %2195 = vst.msk [vmem:[%s4271_s3 + $0x10] sm:$0xf] %vm2190_vm1, %v2477_v31 }
 0x1f9   :  { %2196 = vst.msk [vmem:[%s4271_s3 + $0x14] sm:$0xf] %vm2190_vm1, %v2478_v21 }

// kernel: net_forward.5
= control target key start
LH: loop header
LB: loop body
LE: loop exit
PB: predicated region body
PF: predicated region fallthrough
CT: control target
= control target key end

     0   :  { %v243_v27 = vlaneseq  ;;  %v1954_v35 = vmov 1966171168   ;;  %vm1956_vm0 = vmmov 0   ;;  %s2420_s0 = inlined_call_operand.vmem [shape: bf16[2,1600], index: 0, kind: input, shape index: {}]   ;;  %s2421_s1 = inlined_call_operand.vmem [shape: bf16[1600,128], index: 1, kind: input, shape index: {}]   ;;  %s2422_s2 = inlined_call_operand.vmem [shape: f32[1,128], index: 2, kind: input, shape index: {}]   ;;  %s2423_s3 = inlined_call_operand.vmem [shape: bf16[128,128], index: 3, kind: input, shape index: {}]   ;;  %s2424_s4 = inlined_call_operand.vmem [shape: f32[1,128], index: 4, kind: input, shape index: {}]   ;;  %s2425_s5 = inlined_call_operand.vmem [shape: bf16[128,10], index: 5, kind: input, shape index: {}]   ;;  %s2426_s6 = inlined_call_operand.vmem [shape: f32[1,10], index: 6, kind: input, shape index: {}]   ;;  %s2427_s7 = inlined_call_operand.hbm [shape: f32[2,10], index: 7, kind: output, shape index: {}]  }
   0x1   :  { %v1808_v0 = vld [vmem:[%s2421_s1 + $0x40] sm:$0xff]   ;;  %v1812_v4 = vld [vmem:[%s2421_s1 + $0x48] sm:$0xff]   ;;  %v1816_v8 = vld [vmem:[%s2421_s1 + $0x50] sm:$0xff]   ;;  %v241_v36 = vunpack.c.l.s4 %v1954_v35 }
   0x2   :  { %v1809_v1 = vld [vmem:[%s2421_s1] sm:$0xff]   ;;  %1597 = vmatprep.subr.bf16.mxu0 %v1808_v0  ;;  %v1813_v5 = vld [vmem:[%s2421_s1 + $0x8] sm:$0xff]   ;;  %v1817_v9 = vld [vmem:[%s2421_s1 + $0x10] sm:$0xff]   ;;  %v244_v32 = vshrl.u32 %v243_v27, 7 }
   0x3   :  { %v1810_v2 = vld [vmem:[%s2421_s1 + $0xc0] sm:$0xff]   ;;  %1598 = vmatpush3.bf16.msra.mxu0 %v1809_v1  ;;  %v1814_v6 = vld [vmem:[%s2421_s1 + $0xc8] sm:$0xff]   ;;  %v1818_v10 = vld [vmem:[%s2421_s1 + $0xd0] sm:$0xff]   ;;  %v242_v39 = vunpack.c.0.s8 %v241_v36 }
   0x4   :  { %v1811_v3 = vld [vmem:[%s2421_s1 + $0x80] sm:$0xff]   ;;  %1619 = vmatprep.subr.bf16.mxu1 %v1810_v2  ;;  %1599 = vmatprep.subr.bf16.mxu0 %v1812_v4  ;;  %v1815_v7 = vld [vmem:[%s2421_s1 + $0x88] sm:$0xff]   ;;  %v1819_v11 = vld [vmem:[%s2421_s1 + $0x90] sm:$0xff]  }
   0x5   :  { %1620 = vmatpush3.bf16.msra.mxu1 %v1811_v3  ;;  %v1820_v12 = vld [vmem:[%s2421_s1 + $0x58] sm:$0xff]   ;;  %v1824_v16 = vld [vmem:[%s2421_s1 + $0x60] sm:$0xff]   ;;  %v1828_v20 = vld [vmem:[%s2421_s1 + $0x68] sm:$0xff]   ;;  %v2103_v41 = vsub.s32 %v242_v39, %v244_v32 }
   0x6   :  { %1621 = vmatprep.subr.bf16.mxu1 %v1814_v6  ;;  %v1821_v13 = vld [vmem:[%s2421_s1 + $0x18] sm:$0xff]   ;;  %v1825_v17 = vld [vmem:[%s2421_s1 + $0x20] sm:$0xff]   ;;  %v1829_v21 = vld [vmem:[%s2421_s1 + $0x28] sm:$0xff]  }
   0x7   :  { %1600 = vmatpush3.bf16.msra.mxu0 %v1813_v5  ;;  %v1822_v14 = vld [vmem:[%s2421_s1 + $0xd8] sm:$0xff]   ;;  %v1826_v18 = vld [vmem:[%s2421_s1 + $0xe0] sm:$0xff]   ;;  %v1830_v22 = vld [vmem:[%s2421_s1 + $0xe8] sm:$0xff]  }
   0x8   :  { %1601 = vmatprep.subr.bf16.mxu0 %v1816_v8  ;;  %v1823_v15 = vld [vmem:[%s2421_s1 + $0x98] sm:$0xff]   ;;  %v1827_v19 = vld [vmem:[%s2421_s1 + $0xa0] sm:$0xff]   ;;  %v1831_v23 = vld [vmem:[%s2421_s1 + $0xa8] sm:$0xff]  }
   0x9   :  { %1622 = vmatpush3.bf16.msra.mxu1 %v1815_v7  ;;  %v1832_v24 = vld [vmem:[%s2421_s1 + $0x70] sm:$0xff]   ;;  %v1836_v29 = vld [vmem:[%s2421_s1 + $0x78] sm:$0xff]   ;;  %v28_v33 = vld [vmem:[%s2420_s0] sm:$0xff] }
   0xa   :  { %1623 = vmatprep.subr.bf16.mxu1 %v1818_v10  ;;  %v1833_v25 = vld [vmem:[%s2421_s1 + $0x30] sm:$0xff]   ;;  %v1837_v30 = vld [vmem:[%s2421_s1 + $0x38] sm:$0xff]   ;;  %v1841_v37 = vld [vmem:[%s2421_s1 + $0x140] sm:$0xff]   ;;  %v239_v38 = vcombine.high %v28_v33, %v28_v33  ;;  %v246_v42 = vrot.slane %v28_v33, %v2103_v41 }
   0xb   :  { %1602 = vmatpush3.bf16.msra.mxu0 %v1817_v9  ;;  %v1834_v26 = vld [vmem:[%s2421_s1 + $0xf0] sm:$0xff]   ;;  %v1838_v31 = vld [vmem:[%s2421_s1 + $0xf8] sm:$0xff]   ;;  %v1843_v40 = vld [vmem:[%s2421_s1 + $0x1c0] sm:$0xff]  }
   0xc   :  { %1603 = vmatprep.subr.bf16.mxu0 %v1820_v12  ;;  %v1835_v28 = vld [vmem:[%s2421_s1 + $0xb0] sm:$0xff]   ;;  %v1840_v34 = vld [vmem:[%s2421_s1 + $0xb8] sm:$0xff]   ;;  %v2107_v43 = vrot.slane %v239_v38, %v2103_v41  ;;  %v254_v44 = vcombine.high %v246_v42, %v246_v42  ;;  %v262_v45 = vrot.slane %v246_v42, %v2103_v41  ;;  %v1842_v47 = vld [vmem:[%s2421_s1 + $0x100] sm:$0xff]  }
   0xd   :  { %1624 = vmatpush3.bf16.msra.mxu1 %v1819_v11  ;;  %v1844_v49 = vld [vmem:[%s2421_s1 + $0x180] sm:$0xff]   ;;  %v1845_v52 = vld [vmem:[%s2421_s1 + $0x148] sm:$0xff]   ;;  %v1849_v58 = vld [vmem:[%s2421_s1 + $0x150] sm:$0xff]  }
   0xe   :  { %1625 = vmatprep.subr.bf16.mxu1 %v1822_v14  ;;  %v255_v46 = vcombine.high %v2107_v43, %v2107_v43  ;;  %v276_v48 = vrot.slane %v254_v44, %v2103_v41  ;;  %v284_v51 = vcombine.high %v262_v45, %v262_v45  ;;  %v1846_v54 = vld [vmem:[%s2421_s1 + $0x108] sm:$0xff]   ;;  %v1850_v59 = vld [vmem:[%s2421_s1 + $0x110] sm:$0xff]   ;;  %v1853_v62 = vld [vmem:[%s2421_s1 + $0x158] sm:$0xff]  }
   0xf   :  { %1604 = vmatpush3.bf16.msra.mxu0 %v1821_v13  ;;  %v1847_v55 = vld [vmem:[%s2421_s1 + $0x1c8] sm:$0xff]   ;;  %v1851_v60 = vld [vmem:[%s2421_s1 + $0x1d0] sm:$0xff]   ;;  %v1854_v63 = vld [vmem:[%s2421_s1 + $0x118] sm:$0xff]  }
  0x10   :  { %1605 = vmatprep.subr.bf16.mxu0 %v1824_v16  ;;  %v283_v50 = vrot.slane %v255_v46, %v2103_v41  ;;  %975 = vmatprep.mubr.bf16.mxu0 %v276_v48  ;;  %v286_v53 = vcombine.high %v276_v48, %v276_v48  ;;  %v1848_v57 = vld [vmem:[%s2421_s1 + $0x188] sm:$0xff]   ;;  %v1852_v61 = vld [vmem:[%s2421_s1 + $0x190] sm:$0xff]   ;;  %v1855_v0 = vld [vmem:[%s2421_s1 + $0x1d8] sm:$0xff]  }
  0x11   :  { %1626 = vmatpush3.bf16.msra.mxu1 %v1823_v15  ;;  %v1856_v1 = vld [vmem:[%s2421_s1 + $0x198] sm:$0xff]   ;;  %v1857_v2 = vld [vmem:[%s2421_s1 + $0x160] sm:$0xff]   ;;  %v1861_v6 = vld [vmem:[%s2421_s1 + $0x168] sm:$0xff]  }
  0x12   :  { %1627 = vmatprep.subr.bf16.mxu1 %v1826_v18  ;;  %v287_v56 = vcombine.high %v283_v50, %v283_v50  ;;  %1015 = vmatprep.mubr.bf16.mxu1 %v286_v53  ;;  %v1858_v3 = vld [vmem:[%s2421_s1 + $0x120] sm:$0xff]   ;;  %v1862_v7 = vld [vmem:[%s2421_s1 + $0x128] sm:$0xff]   ;;  %v1865_v10 = vld [vmem:[%s2421_s1 + $0x170] sm:$0xff]   ;;  %v269_v18 = vrot.slane %v2107_v43, %v2103_v41 }
  0x13   :  { %1606 = vmatpush3.bf16.msra.mxu0 %v1825_v17  ;;  %v1859_v4 = vld [vmem:[%s2421_s1 + $0x1e0] sm:$0xff]   ;;  %v1863_v8 = vld [vmem:[%s2421_s1 + $0x1e8] sm:$0xff]   ;;  %v1866_v11 = vld [vmem:[%s2421_s1 + $0x130] sm:$0xff]  }
  0x14   :  { %1607 = vmatprep.subr.bf16.mxu0 %v1828_v20  ;;  %v1860_v5 = vld [vmem:[%s2421_s1 + $0x1a0] sm:$0xff]   ;;  %v1864_v9 = vld [vmem:[%s2421_s1 + $0x1a8] sm:$0xff]   ;;  %v1867_v12 = vld [vmem:[%s2421_s1 + $0x1f0] sm:$0xff]  }
  0x15   :  { %1628 = vmatpush3.bf16.msra.mxu1 %v1827_v19  ;;  %v1868_v13 = vld [vmem:[%s2421_s1 + $0x1b0] sm:$0xff]   ;;  %v1869_v14 = vld [vmem:[%s2421_s1 + $0x178] sm:$0xff]   ;;  %v1873_v19 = vld [vmem:[%s2421_s1 + $0x240] sm:$0xff]  }
  0x16   :  { %1629 = vmatprep.subr.bf16.mxu1 %v1830_v22  ;;  %v1870_v15 = vld [vmem:[%s2421_s1 + $0x138] sm:$0xff]   ;;  %v1874_v20 = vld [vmem:[%s2421_s1 + $0x200] sm:$0xff]   ;;  %v1880_v27 = vld [vmem:[%s2421_s1 + $0x288] sm:$0xff]  }
  0x17   :  { %1608 = vmatpush3.bf16.msra.mxu0 %v1829_v21  ;;  %v1871_v16 = vld [vmem:[%s2421_s1 + $0x1f8] sm:$0xff]   ;;  %v1875_v21 = vld [vmem:[%s2421_s1 + $0x2c0] sm:$0xff]   ;;  %v1894_v42 = vld [vmem:[%s2421_s1 + $0x228] sm:$0xff]  }
  0x18   :  { %1609 = vmatprep.subr.bf16.mxu0 %v1832_v24  ;;  %v1872_v17 = vld [vmem:[%s2421_s1 + $0x1b8] sm:$0xff]   ;;  %v1876_v22 = vld [vmem:[%s2421_s1 + $0x280] sm:$0xff]   ;;  %v1877_v24 = vld [vmem:[%s2421_s1 + $0x248] sm:$0xff]  }
  0x19   :  { %1630 = vmatpush3.bf16.msra.mxu1 %v1831_v23  ;;  %v285_v23 = vcombine.high %v269_v18, %v269_v18  ;;  %v1885_v32 = vld [vmem:[%s2421_s1 + $0x258] sm:$0xff]   ;;  %v1889_v36 = vld [vmem:[%s2421_s1 + $0x260] sm:$0xff]   ;;  %v1895_v43 = vld [vmem:[%s2421_s1 + $0x2e8] sm:$0xff]  }
  0x1a   :  { %1631 = vmatprep.subr.bf16.mxu1 %v1834_v26  ;;  %v1879_v26 = vld [vmem:[%s2421_s1 + $0x2c8] sm:$0xff]   ;;  %v1886_v33 = vld [vmem:[%s2421_s1 + $0x218] sm:$0xff]   ;;  %v1891_v38 = vld [vmem:[%s2421_s1 + $0x2e0] sm:$0xff]  }
  0x1b   :  { %1610 = vmatpush3.bf16.msra.mxu0 %v1833_v25  ;;  %v1878_v25 = vld [vmem:[%s2421_s1 + $0x208] sm:$0xff]   ;;  %v1888_v35 = vld [vmem:[%s2421_s1 + $0x298] sm:$0xff]   ;;  %v1892_v39 = vld [vmem:[%s2421_s1 + $0x2a0] sm:$0xff]  }
  0x1c   :  { %1611 = vmatprep.subr.bf16.mxu0 %v1836_v29  ;;  %v1882_v29 = vld [vmem:[%s2421_s1 + $0x210] sm:$0xff]   ;;  %v1896_v44 = vld [vmem:[%s2421_s1 + $0x2a8] sm:$0xff]   ;;  %v1902_v53 = vld [vmem:[%s2421_s1 + $0x238] sm:$0xff]  }
  0x1d   :  { %1632 = vmatpush3.bf16.msra.mxu1 %v1835_v28  ;;  %v1881_v28 = vld [vmem:[%s2421_s1 + $0x250] sm:$0xff]   ;;  %v29_v46 = vld [vmem:[%s2420_s0 + $0x8] sm:$0x1f] }
  0x1e   :  { %1633 = vmatprep.subr.bf16.mxu1 %v1838_v31  ;;  %v1884_v31 = vld [vmem:[%s2421_s1 + $0x290] sm:$0xff]   ;;  %v295_v48 = vrot.slane %v29_v46, %v2103_v41 }
  0x1f   :  { %1612 = vmatpush3.bf16.msra.mxu0 %v1837_v30  ;;  %v1883_v30 = vld [vmem:[%s2421_s1 + $0x2d0] sm:$0xff]  }
  0x20   :  { %1641 = vmatprep.subr.bf16.mxu0 %v1841_v37  ;;  %v1890_v37 = vld [vmem:[%s2421_s1 + $0x220] sm:$0xff]  }
  0x21   :  { %1634 = vmatpush3.bf16.msra.mxu1 %v1840_v34  ;;  %v1887_v34 = vld [vmem:[%s2421_s1 + $0x2d8] sm:$0xff]  }
  0x22   :  { %1663 = vmatprep.subr.bf16.mxu1 %v1843_v40  ;;  %976 = vmatmul.mubr.bf16.vlgmr.msra.gmra.mrb[0].mxu0 %v262_v45  ;;  %v1893_v40 = vld [vmem:[%s2421_s1 + $0x268] sm:$0xff]   ;;  %v1897_v45 = vld [vmem:[%s2421_s1 + $0x270] sm:$0xff]  }
  0x23   :  { %1642 = vmatpush3.bf16.msra.mxu0 %v1842_v47  ;;  %1055 = vmatprep.mubr.bf16.mxu0 %v283_v50  ;;  %v1898_v47 = vld [vmem:[%s2421_s1 + $0x230] sm:$0xff]  }
  0x24   :  { %1016 = vmatmul.mubr.bf16.vlgmr.msra.gmra.mrb[0].mxu1 %v284_v51  ;;  %1643 = vmatprep.subr.bf16.mxu0 %v1845_v52  ;;  %v1900_v50 = vld [vmem:[%s2421_s1 + $0x2b0] sm:$0xff]   ;;  %v303_v51 = vcombine.high %v295_v48, %v295_v48  ;;  %v1901_v52 = vld [vmem:[%s2421_s1 + $0x278] sm:$0xff]  }
  0x25   :  { %1664 = vmatpush3.bf16.msra.mxu1 %v1844_v49  ;;  %1095 = vmatprep.mubr.bf16.mxu1 %v287_v56  ;;  %v1899_v49 = vld [vmem:[%s2421_s1 + $0x2f0] sm:$0xff]   ;;  %v1905_v56 = vld [vmem:[%s2421_s1 + $0x2b8] sm:$0xff]  }
  0x26   :  { %1665 = vmatprep.subr.bf16.mxu1 %v1847_v55  ;;  %v324_v55 = vrot.slane %v303_v51, %v2103_v41 }
  0x27   :  { %1644 = vmatpush3.bf16.msra.mxu0 %v1846_v54  ;;  %v1903_v54 = vld [vmem:[%s2421_s1 + $0x2f8] sm:$0xff]  }
  0x28   :  { %1645 = vmatprep.subr.bf16.mxu0 %v1849_v58  ;;  %v310_v58 = vrot.slane %v295_v48, %v2103_v41 }
  0x29   :  { %1666 = vmatpush3.bf16.msra.mxu1 %v1848_v57  ;;  %v326_v57 = vcombine.high %v324_v55, %v324_v55 }
  0x2a   :  { %1667 = vmatprep.subr.bf16.mxu1 %v1851_v60  ;;  %v1955_v60 = vmov 0.0  }
  0x2b   :  { %1646 = vmatpush3.bf16.msra.mxu0 %v1850_v59  ;;  %v1906_v59 = vld [vmem:[%s2421_s1 + $0x300] sm:$0xff]  }
  0x2c   :  { %1647 = vmatprep.subr.bf16.mxu0 %v1853_v62  ;;  %v1907_v62 = vld [vmem:[%s2421_s1 + $0x308] sm:$0xff]  }
  0x2d   :  { %1668 = vmatpush3.bf16.msra.mxu1 %v1852_v61  ;;  %v325_v61 = vcombine.high %v310_v58, %v310_v58 }
  0x2e   :  { %1669 = vmatprep.subr.bf16.mxu1 %v1855_v0 }
  0x2f   :  { %1648 = vmatpush3.bf16.msra.mxu0 %v1854_v63 }
  0x30   :  { %1649 = vmatprep.subr.bf16.mxu0 %v1857_v2 }
  0x31   :  { %1670 = vmatpush3.bf16.msra.mxu1 %v1856_v1 }
  0x32   :  { %1671 = vmatprep.subr.bf16.mxu1 %v1859_v4 }
  0x33   :  { %1650 = vmatpush3.bf16.msra.mxu0 %v1858_v3 }
  0x34   :  { %1651 = vmatprep.subr.bf16.mxu0 %v1861_v6 }
  0x35   :  { %1672 = vmatpush3.bf16.msra.mxu1 %v1860_v5 }
  0x36   :  { %1673 = vmatprep.subr.bf16.mxu1 %v1863_v8 }
  0x37   :  { %1652 = vmatpush3.bf16.msra.mxu0 %v1862_v7 }
  0x38   :  { %1653 = vmatprep.subr.bf16.mxu0 %v1865_v10 }
  0x39   :  { %1674 = vmatpush3.bf16.msra.mxu1 %v1864_v9 }
  0x3a   :  { %1675 = vmatprep.subr.bf16.mxu1 %v1867_v12 }
  0x3b   :  { %1654 = vmatpush3.bf16.msra.mxu0 %v1866_v11 }
  0x3c   :  { %1655 = vmatprep.subr.bf16.mxu0 %v1869_v14 }
  0x3d   :  { %1676 = vmatpush3.bf16.msra.mxu1 %v1868_v13 }
  0x3e   :  { %1677 = vmatprep.subr.bf16.mxu1 %v1871_v16 }
  0x3f   :  { %1656 = vmatpush3.bf16.msra.mxu0 %v1870_v15 }
  0x40   :  { %1685 = vmatprep.subr.bf16.mxu0 %v1873_v19 }
  0x41   :  { %1678 = vmatpush3.bf16.msra.mxu1 %v1872_v17 }
  0x42   :  { %1056 = vmatmul.mubr.bf16.vlgmr.msra.gmra.mrb[4].mxu0 %v269_v18  ;;  %1707 = vmatprep.subr.bf16.mxu1 %v1875_v21 }
  0x43   :  { %1686 = vmatpush3.bf16.msra.mxu0 %v1874_v20  ;;  %1135 = vmatprep.mubr.bf16.mxu0 %v324_v55 }
  0x44   :  { %1096 = vmatmul.mubr.bf16.vlgmr.msra.gmra.mrb[4].mxu1 %v285_v23  ;;  %1687 = vmatprep.subr.bf16.mxu0 %v1877_v24 }
  0x45   :  { %1708 = vmatpush3.bf16.msra.mxu1 %v1876_v22  ;;  %1175 = vmatprep.mubr.bf16.mxu1 %v326_v57 }
  0x46   :  { %1709 = vmatprep.subr.bf16.mxu1 %v1879_v26 }
  0x47   :  { %1688 = vmatpush3.bf16.msra.mxu0 %v1878_v25 }
  0x48   :  { %1689 = vmatprep.subr.bf16.mxu0 %v1881_v28 }
  0x49   :  { %1710 = vmatpush3.bf16.msra.mxu1 %v1880_v27 }
  0x4a   :  { %1711 = vmatprep.subr.bf16.mxu1 %v1883_v30 }
  0x4b   :  { %1690 = vmatpush3.bf16.msra.mxu0 %v1882_v29 }
  0x4c   :  { %1691 = vmatprep.subr.bf16.mxu0 %v1885_v32 }
  0x4d   :  { %1712 = vmatpush3.bf16.msra.mxu1 %v1884_v31 }
  0x4e   :  { %1713 = vmatprep.subr.bf16.mxu1 %v1887_v34 }
  0x4f   :  { %1692 = vmatpush3.bf16.msra.mxu0 %v1886_v33 }
  0x50   :  { %1693 = vmatprep.subr.bf16.mxu0 %v1889_v36 }
  0x51   :  { %1714 = vmatpush3.bf16.msra.mxu1 %v1888_v35 }
  0x52   :  { %1715 = vmatprep.subr.bf16.mxu1 %v1891_v38 }
  0x53   :  { %1694 = vmatpush3.bf16.msra.mxu0 %v1890_v37 }
  0x54   :  { %1695 = vmatprep.subr.bf16.mxu0 %v1893_v40 }
  0x55   :  { %1716 = vmatpush3.bf16.msra.mxu1 %v1892_v39 }
  0x56   :  { %1717 = vmatprep.subr.bf16.mxu1 %v1895_v43 }
  0x57   :  { %1696 = vmatpush3.bf16.msra.mxu0 %v1894_v42 }
  0x58   :  { %1697 = vmatprep.subr.bf16.mxu0 %v1897_v45 }
  0x59   :  { %1718 = vmatpush3.bf16.msra.mxu1 %v1896_v44 }
  0x5a   :  { %1719 = vmatprep.subr.bf16.mxu1 %v1899_v49 }
  0x5b   :  { %1698 = vmatpush3.bf16.msra.mxu0 %v1898_v47 }
  0x5c   :  { %1699 = vmatprep.subr.bf16.mxu0 %v1901_v52 }
  0x5d   :  { %1720 = vmatpush3.bf16.msra.mxu1 %v1900_v50 }
  0x5e   :  { %1721 = vmatprep.subr.bf16.mxu1 %v1903_v54 }
  0x5f   :  { %1700 = vmatpush3.bf16.msra.mxu0 %v1902_v53 }
  0x60   :  { %1752 = vmatprep.subr.bf16.mxu0 %v1955_v60 }
  0x61   :  { %1722 = vmatpush3.bf16.msra.mxu1 %v1905_v56 }
  0x62   :  { %1136 = vmatmul.mubr.bf16.vlgmr.msra.gmra.mrb[8].mxu0 %v310_v58  ;;  %1764 = vmatprep.subr.bf16.mxu1 %v1955_v60 }
  0x63   :  { %1753 = vmatpush3.bf16.msra.mxu0 %v1906_v59  ;;  %1760 = vmatprep.mubr.msk.bf16.mxu0 %vm1956_vm0, %v1955_v60 }
  0x64   :  { %1176 = vmatmul.mubr.bf16.vlgmr.msra.gmra.mrb[8].mxu1 %v325_v61  ;;  %1754 = vmatprep.subr.bf16.mxu0 %v1955_v60 }
  0x65   :  { %12 = vsyncpa [#allocation3], 0  ;;  %1780 = vmatprep.mubr.msk.bf16.mxu1 %vm1956_vm0, %v1955_v60  ;;  %v288_v63 = vcombine.high %v29_v46, %v29_v46  ;;  %v1908_v0 = vld [vmem:[%s2421_s1 + $0x310] sm:$0xff]   ;;  %v1909_v2 = vld [vmem:[%s2421_s1 + $0x318] sm:$0xff]   ;;  %vm939_vm1 = vcmask 523264   ;;  %vm1449_vm2 = vcmask 74752  }
  0x66   :  { %v1910_v4 = vld [vmem:[%s2423_s3] sm:$0xff]   ;;  %v1911_v5 = vld [vmem:[%s2423_s3 + $0x8] sm:$0xff]   ;;  %v1913_v6 = vld [vmem:[%s2423_s3 + $0x18] sm:$0xff]  }
  0x67   :  { %1755 = vmatpush3.bf16.msra.mxu0 %v1907_v62  ;;  %v302_v1 = vrot.slane %v288_v63, %v2103_v41  ;;  %1765 = vmatpush3.bf16.msra.mxu1 %v1910_v4  ;;  %v1914_v7 = vld [vmem:[%s2423_s3 + $0x20] sm:$0xff]   ;;  %v1915_v8 = vld [vmem:[%s2423_s3 + $0x28] sm:$0xff]   ;;  %v1916_v9 = vld [vmem:[%s2423_s3 + $0x30] sm:$0xff]  }
  0x68   :  { %1756 = vmatprep.subr.bf16.mxu0 %v1955_v60  ;;  %1766 = vmatprep.subr.bf16.mxu1 %v1955_v60  ;;  %v1917_v10 = vld [vmem:[%s2423_s3 + $0x38] sm:$0xff]   ;;  %v1918_v11 = vld [vmem:[%s2425_s5] sm:$0xff]   ;;  %v1919_v12 = vld [vmem:[%s2425_s5 + $0x8] sm:$0xff]  }
  0x69   :  { %v317_v3 = vrot.slane %v302_v1, %v2103_v41  ;;  %v1912_v41 = vld [vmem:[%s2423_s3 + $0x10] sm:$0xff]   ;;  %v1921_v14 = vld [vmem:[%s2425_s5 + $0x18] sm:$0xff]   ;;  %v1922_v15 = vld [vmem:[%s2425_s5 + $0x20] sm:$0xff]  }
  0x6a   :  { %v1920_v13 = vld [vmem:[%s2425_s5 + $0x10] sm:$0xff]   ;;  %v1923_v16 = vld [vmem:[%s2425_s5 + $0x28] sm:$0xff]   ;;  %v1477_v18 = vld [vmem:[%s2422_s2] ss:$0 sm:$0xff] }
  0x6b   :  { %1757 = vmatpush3.bf16.msra.mxu0 %v1908_v0  ;;  %1767 = vmatpush3.bf16.msra.mxu1 %v1911_v5  ;;  %v1924_v63 = vld [vmem:[%s2425_s5 + $0x30] sm:$0xff]   ;;  %v1925_v0 = vld [vmem:[%s2425_s5 + $0x38] sm:$0xff]   ;;  %v1579_v1 = vld [vmem:[%s2424_s4] ss:$0 sm:$0xff]  ;;  %s1957_s4 = smov [#allocation2]  }
  0x6c   :  { %1758 = vmatprep.subr.bf16.mxu0 %v1955_v60  ;;  %1768 = vmatprep.subr.bf16.mxu1 %v1955_v60  ;;  %s1469_s5 = sshll.u32 %s1957_s4, 4  ;;  %s1470_s5 = int_to_ptr.vmem [resolvable:$true] %s1469_s5 }
  0x6d   :  { %p1935_p1 = scmp.lt.s32.totalorder %s1470_s5, %s1470_s5 }
  0x6f   :  { %1759 = vmatpush3.bf16.msra.mxu0 %v1909_v2  ;;  %1769 = vmatpush3.bf16.msra.mxu1 %v1912_v41 }
  0x70   :  { %1784 = vmatprep.subr.bf16.mxu0 %v1955_v60  ;;  %1770 = vmatprep.subr.bf16.mxu1 %v1955_v60 }
  0x72   :  { %1761 = vmatmul.mubr.msk.bf16.vlgmr.msra.gmra.mrb[12].mxu0 %vm939_vm1, %v317_v3 }
  0x73   :  { %1800 = vmatprep.mubr.msk.bf16.mxu0 %vm1956_vm0, %v1955_v60  ;;  %1771 = vmatpush3.bf16.msra.mxu1 %v1913_v6 }
  0x74   :  { %1772 = vmatprep.subr.bf16.mxu1 %v1955_v60  ;;  %1785 = vmatpush3.bf16.msra.mxu0 %v1918_v11 }
  0x75   :  { %1786 = vmatprep.subr.bf16.mxu0 %v1955_v60 }
  0x77   :  { %1773 = vmatpush3.bf16.msra.mxu1 %v1914_v7 }
  0x78   :  { %1774 = vmatprep.subr.bf16.mxu1 %v1955_v60  ;;  %1787 = vmatpush3.bf16.msra.mxu0 %v1919_v12 }
  0x79   :  { %1788 = vmatprep.subr.bf16.mxu0 %v1955_v60 }
  0x7b   :  { %1775 = vmatpush3.bf16.msra.mxu1 %v1915_v8 }
  0x7c   :  { %1776 = vmatprep.subr.bf16.mxu1 %v1955_v60  ;;  %1789 = vmatpush3.bf16.msra.mxu0 %v1920_v13 }
  0x7d   :  { %1790 = vmatprep.subr.bf16.mxu0 %v1955_v60 }
  0x7f   :  { %1777 = vmatpush3.bf16.msra.mxu1 %v1916_v9 }
  0x80   :  { %1778 = vmatprep.subr.bf16.mxu1 %v1955_v60  ;;  %1791 = vmatpush3.bf16.msra.mxu0 %v1921_v14 }
  0x81   :  { %1792 = vmatprep.subr.bf16.mxu0 %v1955_v60 }
  0x83   :  { %1779 = vmatpush3.bf16.msra.mxu1 %v1917_v10 }
  0x84   :  { %1793 = vmatpush3.bf16.msra.mxu0 %v1922_v15 }
  0x85   :  { %1794 = vmatprep.subr.bf16.mxu0 %v1955_v60 }
  0x88   :  { %1795 = vmatpush3.bf16.msra.mxu0 %v1923_v16 }
  0x89   :  { %1796 = vmatprep.subr.bf16.mxu0 %v1955_v60 }
  0x8c   :  { %1797 = vmatpush3.bf16.msra.mxu0 %v1924_v63 }
  0x8d   :  { %1798 = vmatprep.subr.bf16.mxu0 %v1955_v60  ;;  %v1588_v60 = vld [vmem:[%s2426_s6] ss:$0 sm:$0xff]  ;;  %s1930_s6 = scalar_lea.vmem %s1470_s5, 32 }
  0x8e   :  { %p1931_p0 = scmp.ne.s32.totalorder %s1470_s5, %s1930_s6  ;;  %p1936_p2 = scmp.lt.s32.totalorder %s1930_s6, %s1930_s6 }
  0x90   :  { %1799 = vmatpush3.bf16.msra.mxu0 %v1925_v0  ;;  %p1937_p3 = por %p1936_p2, %p1935_p1 }
  0x92   :  { %p1938_p4 = pnand %p1937_p3, %p1931_p0 }
  0xf5   :  { %v1613_v17 = vpop.f32.mrb[0].mxu0 }
  0xf6   :  { %v1614_v19 = vpop.f32.mrb[1].mxu0 }
  0xf7   :  { %v1615_v20 = vadd.f32 %v1614_v19, %v1613_v17  ;;  %v1616_v21 = vpop.f32.mrb[2].mxu0  ;;  %v1635_v22 = vpop.f32.mrb[0].mxu1 }
  0xf8   :  { %v1617_v23 = vpop.f32.mrb[3].mxu0  ;;  %v1636_v24 = vpop.f32.mrb[1].mxu1 }
  0xf9   :  { %v978_v25 = vadd.f32 %v1615_v20, %v1477_v18  ;;  %v1637_v26 = vadd.f32 %v1636_v24, %v1635_v22  ;;  %v1638_v27 = vpop.f32.mrb[2].mxu1 }
  0xfa   :  { %v1639_v28 = vpop.f32.mrb[3].mxu1 }
  0xfb   :  { %v1018_v29 = vadd.f32 %v1637_v26, %v978_v25 }
 0x115   :  { %v1657_v30 = vpop.f32.mrb[4].mxu0 }
 0x116   :  { %v1658_v31 = vpop.f32.mrb[5].mxu0 }
 0x117   :  { %v1659_v32 = vadd.f32 %v1658_v31, %v1657_v30  ;;  %v1660_v33 = vpop.f32.mrb[6].mxu0  ;;  %v1679_v34 = vpop.f32.mrb[4].mxu1 }
 0x118   :  { %v1661_v35 = vpop.f32.mrb[7].mxu0  ;;  %v1680_v36 = vpop.f32.mrb[5].mxu1 }
 0x119   :  { %v1058_v37 = vadd.f32 %v1659_v32, %v1018_v29  ;;  %v1681_v38 = vadd.f32 %v1680_v36, %v1679_v34  ;;  %v1682_v39 = vpop.f32.mrb[6].mxu1 }
 0x11a   :  { %v1683_v40 = vpop.f32.mrb[7].mxu1 }
 0x11b   :  { %v1098_v42 = vadd.f32 %v1681_v38, %v1058_v37 }
 0x135   :  { %v1701_v43 = vpop.f32.mrb[8].mxu0 }
 0x136   :  { %v1702_v44 = vpop.f32.mrb[9].mxu0 }
 0x137   :  { %v1703_v45 = vadd.f32 %v1702_v44, %v1701_v43  ;;  %v1704_v46 = vpop.f32.mrb[10].mxu0  ;;  %v1723_v47 = vpop.f32.mrb[8].mxu1 }
 0x138   :  { %v1705_v48 = vpop.f32.mrb[11].mxu0  ;;  %v1724_v49 = vpop.f32.mrb[9].mxu1 }
 0x139   :  { %v1138_v50 = vadd.f32 %v1703_v45, %v1098_v42  ;;  %v1725_v51 = vadd.f32 %v1724_v49, %v1723_v47  ;;  %v1726_v52 = vpop.f32.mrb[10].mxu1 }
 0x13a   :  { %v1727_v53 = vpop.f32.mrb[11].mxu1 }
 0x13b   :  { %v1178_v54 = vadd.f32 %v1725_v51, %v1138_v50 }
 0x145   :  { %v1217_v55 = vpop.f32.mrb[12].mxu0 }
 0x146   :  { %v1218_v56 = vadd.f32 %v1217_v55, %v1178_v54  ;;  %v1762_v57 = vpop.f32.mrb[13].mxu0 }
 0x147   :  { %v1220_v58 = vpop.f32.mrb[14].mxu0 }
 0x148   :  { %v1223_v59 = vmax.f32 %v1218_v56, 0.0  ;;  %v1763_v61 = vpop.f32.mrb[15].mxu0 }
 0x14a   :  { %v1224_v62 = vpack.c.bf16 %v1223_v59, %v1223_v59 }
 0x14c   :  { %1781 = vmatmul.mubr.bf16.vlgmr.msra.gmra.mrb[12].mxu1 %v1224_v62 }
 0x21f   :  { %v1330_v2 = vpop.f32.mrb[12].mxu1 }
 0x220   :  { %v1331_v3 = vadd.f32 %v1579_v1, %v1330_v2  ;;  %v1782_v4 = vpop.f32.mrb[13].mxu1 }
 0x221   :  { %v1333_v5 = vpop.f32.mrb[14].mxu1 }
 0x222   :  { %v1336_v41 = vmax.f32 %v1331_v3, 0.0  ;;  %v1783_v6 = vpop.f32.mrb[15].mxu1 }
 0x224   :  { %v1337_v7 = vpack.c.bf16 %v1336_v41, %v1336_v41 }
 0x226   :  { %1801 = vmatmul.mubr.bf16.vlgmr.msra.gmra.mrb[16].mxu0 %v1337_v7 }
 0x2f9   :  { %v1443_v8 = vpop.f32.mrb[16].mxu0 }
 0x2fa   :  { %v1444_v9 = vadd.f32 %v1588_v60, %v1443_v8  ;;  %v1802_v10 = vpop.f32.mrb[17].mxu0 }
 0x2fb   :  { %v1446_v11 = vpop.f32.mrb[18].mxu0 }
 0x2fc   :  { %v1803_v12 = vpop.f32.mrb[19].mxu0  ;;  %v1450_v13 = vsel %vm1449_vm2, %v1444_v9, -inf }
 0x2fd   :  { %1451 = vmax.xlane.f32.xlu0 %v1450_v13 }
 0x38a   :  { %v1452_v14 = vpop.xlane.xlu0 %1451 }
 0x38b   :  { %v1453_v15 = vsub.f32 %v1444_v9, %v1452_v14 }
 0x38d   :  { %v1454_v16 = vmul.f32 1.442695, %v1453_v15 }
 0x38f   :  { %1926 = vpow2.f32 %v1454_v16 }
 0x399   :  { %v1927_v17 = vpop.eup %1926 }
 0x39a   :  { %v1456_v18 = vsel %vm1449_vm2, %v1927_v17, 0.0 }
 0x39b   :  { %1457 = vadd.xlane.f32.xlu0 %v1456_v18 }
 0x428   :  { %v1458_v19 = vpop.xlane.xlu0 %1457 }
 0x429   :  { %1928 = vlog2.f32 %v1458_v19 }
 0x433   :  { %v1929_v20 = vpop.eup %1928 }
 0x434   :  { %v1460_v21 = vmul.f32 0.6931472, %v1929_v20 }
 0x436   :  { %v1461_v22 = vsub.f32 %v1453_v15, %v1460_v21 }
 0x438   :  { %1462 = vst.msk [vmem:[#allocation2] sm:$0x3] %vm1449_vm2, %v1461_v22 }
 0x439   :  { %1941 = shalt.err (!%p1938_p4)
}
 0x43a   :  { %s1942_s8 = scalar_lea.hbm %s2427_s7, 32 }
 0x43b   :  { %p1943_p5 = scmp.ne.s32.totalorder %s2427_s7, %s1942_s8  ;;  %p1946_p6 = scmp.lt.u32.totalorder %s1942_s8, %s2427_s7 }
 0x43d   :  { %p1948_p7 = pnand %p1946_p6, %p1943_p5 }
 0x43f   :  { %1951 = shalt.err (!%p1948_p7)
}
 0x440   :  { %1472 = dma.vmem_to_hbm [thread:$0]  %s1470_s5, 32, %s2427_s7, [#allocation3]  }
 0x441   :  { %1952 = dma.done.wait [#allocation3], 32  }
 0x442   :  { %1953 = vsyncadd [#allocation3], 4294967264 }
 0x443   :  { %1476 = vsyncpa [#allocation3], 1 }

</bundles_post_ra>
